<compile_context>
chip_gen: v7x
topology: tpu7x:2x2x1
jax: 0.10.0
libtpu: 0.0.40
codegen_flags: <defaults>
</compile_context>

<pallas_src>
import functools

import numpy as np

import jax
import jax.numpy as jnp
from jax import lax
from jax.experimental import pallas as pl
from jax.experimental.pallas import tpu as pltpu


# ----------------------------------------------------------------------------
# Fused forward kernel: conv1 -> relu -> conv2 -> relu -> fc1 -> relu -> fc2,
# expressed as four plain 2-D matmuls on bf16 operands with f32 accumulation.
# ----------------------------------------------------------------------------
def _fused_mlp_kernel(x_ref, w1_ref, b1_ref, w2_ref, b2_ref,
                      wf1_ref, bf1_ref, wf2_ref, bf2_ref, out_ref):
    bf16, f32 = jnp.bfloat16, jnp.float32

    # conv1 (+ReLU): (bm, C*H*W) @ (C*H*W, C1*s1*s1)
    h = jnp.dot(x_ref[...].astype(bf16), w1_ref[...], preferred_element_type=f32)
    h = jnp.maximum(h + b1_ref[...], 0.0)

    # conv2 (+ReLU): (bm, C1*s1*s1) @ (C1*s1*s1, C2*s2*s2)
    h = jnp.dot(h.astype(bf16), w2_ref[...], preferred_element_type=f32)
    h = jnp.maximum(h + b2_ref[...], 0.0)

    # fc1 (+ReLU): h is already in NCHW-flatten order -> no permutation needed
    h = jnp.dot(h.astype(bf16), wf1_ref[...], preferred_element_type=f32)
    h = jnp.maximum(h + bf1_ref[...], 0.0)

    # fc2 (output zero-padded to 128 lanes -> unmasked lane-dense store)
    out = jnp.dot(h.astype(bf16), wf2_ref[...], preferred_element_type=f32)
    out_ref[...] = (out + bf2_ref[...]).astype(out_ref.dtype)


# ----------------------------------------------------------------------------
# Init-time constants: dense "unrolled convolution" matrices (exact)
# ----------------------------------------------------------------------------
@functools.lru_cache(maxsize=None)
def _conv_taps_struct(h_in, w_in, h_out, w_out, k, stride, pad):
    """T[di,dj,io,jo,ii,jj] = 1 iff (ii,jj) == (stride*io+di-pad, stride*jo+dj-pad)."""
    T = np.zeros((k, k, h_out, w_out, h_in, w_in), np.float32)
    for di in range(k):
        for dj in range(k):
            for io in range(h_out):
                ii = stride * io + di - pad
                if not (0 <= ii < h_in):
                    continue
                for jo in range(w_out):
                    jj = stride * jo + dj - pad
                    if not (0 <= jj < w_in):
                        continue
                    T[di, dj, io, jo, ii, jj] = 1.0
    return T


def _conv_to_dense(conv_w, h_in, w_in, stride, pad):
    """(C_out, C_in, k, k) conv  ->  dense (C_in*h_in*w_in, C_out*h_out*w_out)
    matrix; row order (c_in, i_in, j_in), column order (c_out, i_out, j_out)
    (both NCHW flatten).  Exact: each output entry is a single conv weight."""
    c_out, c_in, k, _ = conv_w.shape
    h_out = (h_in + 2 * pad - k) // stride + 1
    w_out = (w_in + 2 * pad - k) // stride + 1
    T = jnp.asarray(_conv_taps_struct(h_in, w_in, h_out, w_out, k, stride, pad))
    W = jnp.einsum('ocij,ijpqhw->chwopq', conv_w, T)
    return W.reshape(c_in * h_in * w_in, c_out * h_out * w_out), h_out, w_out


def _round_up(v, m):
    return ((v + m - 1) // m) * m


# ----------------------------------------------------------------------------
# Parameters: PyTorch-style init, then one-time repack into kernel layouts
# ----------------------------------------------------------------------------
def init_params(key, *, in_channels_1=3, n_filters_1=32, kernel_size=3,
                image_size=16, fc_hidden_dim=128, n_classes=10):
    ks = jax.random.split(key, 8)
    k = kernel_size
    f32, bf16 = jnp.float32, jnp.bfloat16

    def lin_init(kw, kb, shape_w, fan_in):
        bound = 1.0 / jnp.sqrt(jnp.asarray(fan_in, f32))
        w = jax.random.uniform(kw, shape_w, f32, -bound, bound)
        b = jax.random.uniform(kb, (shape_w[0],), f32, -bound, bound)
        return w, b

    # conv1_classical: Conv2d(C -> 32, k=3, stride=2, pad=1)
    conv1_w, conv1_b = lin_init(ks[0], ks[1],
                                (n_filters_1, in_channels_1, k, k),
                                in_channels_1 * k * k)
    # conv2: Conv2d(32 -> 32, k=3, stride=2, pad=1)
    conv2_w, conv2_b = lin_init(ks[2], ks[3],
                                (n_filters_1, n_filters_1, k, k),
                                n_filters_1 * k * k)
    pad = k // 2
    s1 = (image_size + 2 * pad - k) // 2 + 1
    s2 = (s1 + 2 * pad - k) // 2 + 1
    flat_dim = n_filters_1 * s2 * s2
    fc1_w, fc1_b = lin_init(ks[4], ks[5], (fc_hidden_dim, flat_dim), flat_dim)
    fc2_w, fc2_b = lin_init(ks[6], ks[7], (n_classes, fc_hidden_dim), fc_hidden_dim)

    # --- repack into kernel layouts (one-time, free per forward) ------------
    w1_big, _, _ = _conv_to_dense(conv1_w, image_size, image_size, 2, pad)
    w2_big, _, _ = _conv_to_dense(conv2_w, s1, s1, 2, pad)
    b1_big = jnp.repeat(conv1_b, s1 * s1)[None, :]           # (1, C1*s1*s1)
    b2_big = jnp.repeat(conv2_b, s2 * s2)[None, :]           # (1, C2*s2*s2)

    wf1 = fc1_w.T                                             # (flat_dim, hidden)
    bf1 = fc1_b[None, :]

    n_pad = _round_up(n_classes, 128)                         # lane-dense output
    wf2_pad = jnp.zeros((fc_hidden_dim, n_pad), f32).at[:, :n_classes].set(fc2_w.T)
    bf2_pad = jnp.zeros((1, n_pad), f32).at[0, :n_classes].set(fc2_b)

    return dict(
        # kernel-layout params (matmul operands in bf16, biases in f32)
        w1_big=w1_big.astype(bf16), b1_big=b1_big,
        w2_big=w2_big.astype(bf16), b2_big=b2_big,
        wf1=wf1.astype(bf16), bf1=bf1,
        wf2_pad=wf2_pad.astype(bf16), bf2_pad=bf2_pad,
        # raw PyTorch-layout params (used only by the pure-JAX reference)
        conv1_w=conv1_w, conv1_b=conv1_b, conv2_w=conv2_w, conv2_b=conv2_b,
        fc1_w=fc1_w, fc1_b=fc1_b, fc2_w=fc2_w, fc2_b=fc2_b,
    )


# ----------------------------------------------------------------------------
# Forward (classical branch of FlexHybridCNN.forward)
# ----------------------------------------------------------------------------
def flex_hybrid_cnn_forward(params, x, *, n_classes=10):
    """x: (B, C, H, W) float32 NCHW. Returns (B, n_classes) float32."""
    B = x.shape[0]
    k_in = params["w1_big"].shape[0]
    x_flat = x.reshape(B, -1).astype(jnp.float32)             # free NCHW flatten
    assert x_flat.shape[1] == k_in, (x_flat.shape, k_in)

    # Batch row-blocks: single step at small B, "parallel" grid when B grows
    # (2-TC split on v7x). Pad rows to a sublane-aligned block.
    bm = min(_round_up(B, 8), 128)
    Bp = _round_up(B, bm)
    if Bp != B:
        x_flat = jnp.pad(x_flat, ((0, Bp - B), (0, 0)))

    n_pad = params["wf2_pad"].shape[1]
    weights = (params["w1_big"], params["b1_big"],
               params["w2_big"], params["b2_big"],
               params["wf1"], params["bf1"],
               params["wf2_pad"], params["bf2_pad"])

    in_specs = [pl.BlockSpec((bm, k_in), lambda i: (i, 0))]
    in_specs += [pl.BlockSpec(w.shape, lambda i: (0, 0)) for w in weights]

    out = pl.pallas_call(
        _fused_mlp_kernel,
        out_shape=jax.ShapeDtypeStruct((Bp, n_pad), jnp.float32),
        grid=(Bp // bm,),
        in_specs=in_specs,
        out_specs=pl.BlockSpec((bm, n_pad), lambda i: (i, 0)),
        compiler_params=pltpu.CompilerParams(
            dimension_semantics=("parallel",),
            vmem_limit_bytes=32 * 1024 * 1024),
    )(x_flat, *weights)
    return out[:B, :n_classes]


# ----------------------------------------------------------------------------
# Pure-JAX reference (mirrors the PyTorch forward) for validation
# ----------------------------------------------------------------------------
def _reference_forward(params, x):
    dn = ("NCHW", "OIHW", "NCHW")
    prec = lax.Precision.HIGHEST
    y = lax.conv_general_dilated(x, params["conv1_w"], (2, 2), ((1, 1), (1, 1)),
                                 dimension_numbers=dn, precision=prec)
    y = jnp.maximum(y + params["conv1_b"][None, :, None, None], 0.0)
    y = lax.conv_general_dilated(y, params["conv2_w"], (2, 2), ((1, 1), (1, 1)),
                                 dimension_numbers=dn, precision=prec)
    y = jnp.maximum(y + params["conv2_b"][None, :, None, None], 0.0)
    y = y.reshape(y.shape[0], -1)                       # NCHW flatten, like torch
    y = jnp.maximum(jnp.dot(y, params["fc1_w"].T, precision=prec) + params["fc1_b"], 0.0)
    return jnp.dot(y, params["fc2_w"].T, precision=prec) + params["fc2_b"]


if __name__ == "__main__":
    key = jax.random.PRNGKey(0)
    k_param, k_x = jax.random.split(key)

    # Small shapes consistent with the module (EuroSAT -> 3 input channels).
    B, C, IMG = 2, 3, 16
    params = init_params(k_param, in_channels_1=C, n_filters_1=32, kernel_size=3,
                         image_size=IMG, fc_hidden_dim=128, n_classes=10)
    x = jax.random.normal(k_x, (B, C, IMG, IMG), dtype=jnp.float32)

    fwd = jax.jit(flex_hybrid_cnn_forward)
    out = jax.block_until_ready(fwd(params, x))
    assert out.shape == (B, 10), out.shape

    # Silent correctness check against a pure-JAX replica of the PyTorch model
    # (bf16 MXU operands with f32 accumulation -> slightly loosened tolerance).
    ref = jax.block_until_ready(_reference_forward(params, x))
    assert jnp.allclose(out, ref, atol=2e-2, rtol=2e-2), \
        float(jnp.max(jnp.abs(out - ref)))

    print("KERNEL_OK")
</pallas_src>

<mosaic_0001>
module attributes {stable_mosaic.version = 11 : i64} {
  func.func @_fused_mlp_kernel(%arg0: i32, %arg1: memref<8x768xf32, #tpu.memory_space<vmem>>, %arg2: memref<768x2048xbf16, #tpu.memory_space<vmem>>, %arg3: memref<1x2048xf32, #tpu.memory_space<vmem>>, %arg4: memref<2048x512xbf16, #tpu.memory_space<vmem>>, %arg5: memref<1x512xf32, #tpu.memory_space<vmem>>, %arg6: memref<512x128xbf16, #tpu.memory_space<vmem>>, %arg7: memref<1x128xf32, #tpu.memory_space<vmem>>, %arg8: memref<128x128xbf16, #tpu.memory_space<vmem>>, %arg9: memref<1x128xf32, #tpu.memory_space<vmem>>, %arg10: memref<8x128xf32, #tpu.memory_space<vmem>>) attributes {dimension_semantics = [#tpu.dimension_semantics<parallel>], iteration_bounds = array<i64: 1>, scalar_prefetch = 0 : i64, scratch_operands = 0 : i64, tpu.core_type = #tpu.core_type<tc>, window_params = [{transform_indices = @transform_0, window_bounds = array<i64: 8, 768>}, {pipeline_mode = #tpu.pipeline_mode<synchronous>, transform_indices = @transform_1, window_bounds = array<i64: 768, 2048>}, {pipeline_mode = #tpu.pipeline_mode<synchronous>, transform_indices = @transform_2, window_bounds = array<i64: 1, 2048>}, {pipeline_mode = #tpu.pipeline_mode<synchronous>, transform_indices = @transform_3, window_bounds = array<i64: 2048, 512>}, {pipeline_mode = #tpu.pipeline_mode<synchronous>, transform_indices = @transform_4, window_bounds = array<i64: 1, 512>}, {pipeline_mode = #tpu.pipeline_mode<synchronous>, transform_indices = @transform_5, window_bounds = array<i64: 512, 128>}, {pipeline_mode = #tpu.pipeline_mode<synchronous>, transform_indices = @transform_6, window_bounds = array<i64: 1, 128>}, {pipeline_mode = #tpu.pipeline_mode<synchronous>, transform_indices = @transform_7, window_bounds = array<i64: 128, 128>}, {pipeline_mode = #tpu.pipeline_mode<synchronous>, transform_indices = @transform_8, window_bounds = array<i64: 1, 128>}, {transform_indices = @transform_9, window_bounds = array<i64: 8, 128>}]} {
    %c0 = arith.constant 0 : index
    %c0_0 = arith.constant 0 : index
    %0 = vector.load %arg1[%c0, %c0_0] : memref<8x768xf32, #tpu.memory_space<vmem>>, vector<8x768xf32>
    %1 = arith.truncf %0 : vector<8x768xf32> to vector<8x768xbf16>
    %c0_1 = arith.constant 0 : index
    %c0_2 = arith.constant 0 : index
    %2 = vector.load %arg2[%c0_1, %c0_2] : memref<768x2048xbf16, #tpu.memory_space<vmem>>, vector<768x2048xbf16>
    %cst = arith.constant dense<0.000000e+00> : vector<8x2048xf32>
    %3 = tpu.matmul %1, %2, %cst {dimension_numbers = #tpu.dot_dimension_numbers<[1], [0], [0], [1], [0, 0, 1, 1], [], []>} : vector<8x768xbf16>, vector<768x2048xbf16>, vector<8x2048xf32> -> vector<8x2048xf32>
    %c0_3 = arith.constant 0 : index
    %c0_4 = arith.constant 0 : index
    %4 = vector.load %arg3[%c0_3, %c0_4] : memref<1x2048xf32, #tpu.memory_space<vmem>>, vector<1x2048xf32>
    %5 = vector.broadcast %4 : vector<1x2048xf32> to vector<8x2048xf32>
    %6 = arith.addf %3, %5 : vector<8x2048xf32>
    %cst_5 = arith.constant 0.000000e+00 : f32
    %7 = vector.broadcast %cst_5 : f32 to vector<8x2048xf32>
    %8 = arith.maximumf %6, %7 : vector<8x2048xf32>
    %9 = arith.truncf %8 : vector<8x2048xf32> to vector<8x2048xbf16>
    %c0_6 = arith.constant 0 : index
    %c0_7 = arith.constant 0 : index
    %10 = vector.load %arg4[%c0_6, %c0_7] : memref<2048x512xbf16, #tpu.memory_space<vmem>>, vector<2048x512xbf16>
    %cst_8 = arith.constant dense<0.000000e+00> : vector<8x512xf32>
    %11 = tpu.matmul %9, %10, %cst_8 {dimension_numbers = #tpu.dot_dimension_numbers<[1], [0], [0], [1], [0, 0, 1, 1], [], []>} : vector<8x2048xbf16>, vector<2048x512xbf16>, vector<8x512xf32> -> vector<8x512xf32>
    %c0_9 = arith.constant 0 : index
    %c0_10 = arith.constant 0 : index
    %12 = vector.load %arg5[%c0_9, %c0_10] : memref<1x512xf32, #tpu.memory_space<vmem>>, vector<1x512xf32>
    %13 = vector.broadcast %12 : vector<1x512xf32> to vector<8x512xf32>
    %14 = arith.addf %11, %13 : vector<8x512xf32>
    %cst_11 = arith.constant 0.000000e+00 : f32
    %15 = vector.broadcast %cst_11 : f32 to vector<8x512xf32>
    %16 = arith.maximumf %14, %15 : vector<8x512xf32>
    %17 = arith.truncf %16 : vector<8x512xf32> to vector<8x512xbf16>
    %c0_12 = arith.constant 0 : index
    %c0_13 = arith.constant 0 : index
    %18 = vector.load %arg6[%c0_12, %c0_13] : memref<512x128xbf16, #tpu.memory_space<vmem>>, vector<512x128xbf16>
    %cst_14 = arith.constant dense<0.000000e+00> : vector<8x128xf32>
    %19 = tpu.matmul %17, %18, %cst_14 {dimension_numbers = #tpu.dot_dimension_numbers<[1], [0], [0], [1], [0, 0, 1, 1], [], []>} : vector<8x512xbf16>, vector<512x128xbf16>, vector<8x128xf32> -> vector<8x128xf32>
    %c0_15 = arith.constant 0 : index
    %c0_16 = arith.constant 0 : index
    %20 = vector.load %arg7[%c0_15, %c0_16] : memref<1x128xf32, #tpu.memory_space<vmem>>, vector<1x128xf32>
    %21 = vector.broadcast %20 : vector<1x128xf32> to vector<8x128xf32>
    %22 = arith.addf %19, %21 : vector<8x128xf32>
    %cst_17 = arith.constant 0.000000e+00 : f32
    %23 = vector.broadcast %cst_17 : f32 to vector<8x128xf32>
    %24 = arith.maximumf %22, %23 : vector<8x128xf32>
    %25 = arith.truncf %24 : vector<8x128xf32> to vector<8x128xbf16>
    %c0_18 = arith.constant 0 : index
    %c0_19 = arith.constant 0 : index
    %26 = vector.load %arg8[%c0_18, %c0_19] : memref<128x128xbf16, #tpu.memory_space<vmem>>, vector<128x128xbf16>
    %cst_20 = arith.constant dense<0.000000e+00> : vector<8x128xf32>
    %27 = tpu.matmul %25, %26, %cst_20 {dimension_numbers = #tpu.dot_dimension_numbers<[1], [0], [0], [1], [0, 0, 1, 1], [], []>} : vector<8x128xbf16>, vector<128x128xbf16>, vector<8x128xf32> -> vector<8x128xf32>
    %c0_21 = arith.constant 0 : index
    %c0_22 = arith.constant 0 : index
    %28 = vector.load %arg9[%c0_21, %c0_22] : memref<1x128xf32, #tpu.memory_space<vmem>>, vector<1x128xf32>
    %29 = vector.broadcast %28 : vector<1x128xf32> to vector<8x128xf32>
    %30 = arith.addf %27, %29 : vector<8x128xf32>
    %c0_23 = arith.constant 0 : index
    %c0_24 = arith.constant 0 : index
    %31 = vector.load %arg10[%c0_23, %c0_24] : memref<8x128xf32, #tpu.memory_space<vmem>>, vector<8x128xf32>
    tpu.vector_store %arg10[%c0_23, %c0_24], %30 {strides = array<i32>} : memref<8x128xf32, #tpu.memory_space<vmem>>, vector<8x128xf32>,
    return
  }
  func.func @transform_0(%arg0: i32) -> (i32, i32) {
    %c0_i32 = arith.constant 0 : i32
    %c0_i32_0 = arith.constant 0 : i32
    return %arg0, %c0_i32 : i32, i32
  }
  func.func @transform_1(%arg0: i32) -> (i32, i32) {
    %c0_i32 = arith.constant 0 : i32
    %c0_i32_0 = arith.constant 0 : i32
    %c0_i32_1 = arith.constant 0 : i32
    return %c0_i32, %c0_i32_0 : i32, i32
  }
  func.func @transform_2(%arg0: i32) -> (i32, i32) {
    %c0_i32 = arith.constant 0 : i32
    %c0_i32_0 = arith.constant 0 : i32
    %c0_i32_1 = arith.constant 0 : i32
    return %c0_i32, %c0_i32_0 : i32, i32
  }
  func.func @transform_3(%arg0: i32) -> (i32, i32) {
    %c0_i32 = arith.constant 0 : i32
    %c0_i32_0 = arith.constant 0 : i32
    %c0_i32_1 = arith.constant 0 : i32
    return %c0_i32, %c0_i32_0 : i32, i32
  }
  func.func @transform_4(%arg0: i32) -> (i32, i32) {
    %c0_i32 = arith.constant 0 : i32
    %c0_i32_0 = arith.constant 0 : i32
    %c0_i32_1 = arith.constant 0 : i32
    return %c0_i32, %c0_i32_0 : i32, i32
  }
  func.func @transform_5(%arg0: i32) -> (i32, i32) {
    %c0_i32 = arith.constant 0 : i32
    %c0_i32_0 = arith.constant 0 : i32
    %c0_i32_1 = arith.constant 0 : i32
    return %c0_i32, %c0_i32_0 : i32, i32
  }
  func.func @transform_6(%arg0: i32) -> (i32, i32) {
    %c0_i32 = arith.constant 0 : i32
    %c0_i32_0 = arith.constant 0 : i32
    %c0_i32_1 = arith.constant 0 : i32
    return %c0_i32, %c0_i32_0 : i32, i32
  }
  func.func @transform_7(%arg0: i32) -> (i32, i32) {
    %c0_i32 = arith.constant 0 : i32
    %c0_i32_0 = arith.constant 0 : i32
    %c0_i32_1 = arith.constant 0 : i32
    return %c0_i32, %c0_i32_0 : i32, i32
  }
  func.func @transform_8(%arg0: i32) -> (i32, i32) {
    %c0_i32 = arith.constant 0 : i32
    %c0_i32_0 = arith.constant 0 : i32
    %c0_i32_1 = arith.constant 0 : i32
    return %c0_i32, %c0_i32_0 : i32, i32
  }
  func.func @transform_9(%arg0: i32) -> (i32, i32) {
    %c0_i32 = arith.constant 0 : i32
    %c0_i32_0 = arith.constant 0 : i32
    return %arg0, %c0_i32 : i32, i32
  }
}

</mosaic_0001>

<bundles_post_ra>
// kernel: flex_hybrid_cnn_forward.1
= control target key start
LH: loop header
LB: loop body
LE: loop exit
PB: predicated region body
PF: predicated region fallthrough
CT: control target
= control target key end

     0   :  { %14 = vsyncpa [#allocation3], 0  ;;  %s12990_s0 = inlined_call_operand.vmem [shape: f32[8,768], index: 0, kind: input, shape index: {}]   ;;  %s12991_s1 = inlined_call_operand.hbm [shape: bf16[768,2048], index: 1, kind: input, shape index: {}]   ;;  %s12992_s2 = inlined_call_operand.hbm [shape: f32[1,2048], index: 2, kind: input, shape index: {}]   ;;  %s12993_s3 = inlined_call_operand.hbm [shape: bf16[2048,512], index: 3, kind: input, shape index: {}]   ;;  %s12994_s4 = inlined_call_operand.hbm [shape: f32[1,512], index: 4, kind: input, shape index: {}]   ;;  %s12995_s5 = inlined_call_operand.hbm [shape: bf16[512,128], index: 5, kind: input, shape index: {}]   ;;  %s12996_s6 = inlined_call_operand.hbm [shape: f32[1,128], index: 6, kind: input, shape index: {}]   ;;  %s12997_s7 = inlined_call_operand.hbm [shape: bf16[128,128], index: 7, kind: input, shape index: {}]   ;;  %s12998_s8 = inlined_call_operand.hbm [shape: f32[1,128], index: 8, kind: input, shape index: {}]   ;;  %s12999_s9 = inlined_call_operand.vmem [shape: f32[8,128], index: 9, kind: output, shape index: {}]  }
   0x1   :  { %15 = vsyncpa [#allocation5], 0 }
   0x2   :  { %16 = vsyncpa [#allocation8], 0 }
   0x3   :  { %17 = vsyncpa [#allocation11], 0 }
   0x4   :  { %18 = vsyncpa [#allocation14], 0  ;;  %s12624_s30 = smov [#allocation4]   ;;  %s12625_s11 = smov [#allocation7]  }
   0x5   :  { %s39_s10 = sshll.u32 %s12624_s30, 4  ;;  %s61_s12 = sshll.u32 %s12625_s11, 4  ;;  %s40_s10 = int_to_ptr.vmem [resolvable:$true] %s39_s10  ;;  %s62_s12 = int_to_ptr.vmem [resolvable:$true] %s61_s12 }
   0x6   :  { %s12438_s15 = scalar_lea.hbm %s12992_s2, 256 }
   0x7   :  { %p12439_p0 = scmp.ne.s32.totalorder %s12992_s2, %s12438_s15  ;;  %p12442_p1 = scmp.lt.u32.totalorder %s12438_s15, %s12992_s2 }
   0x9   :  { %p12444_p2 = pnand %p12442_p1, %p12439_p0 }
   0xb   :  { %12447 = shalt.err (!%p12444_p2)
}
   0xc   :  { %s12448_s20 = scalar_lea.vmem %s40_s10, 256  ;;  %p12453_p4 = scmp.lt.s32.totalorder %s40_s10, %s40_s10 }
   0xd   :  { %p12449_p3 = scmp.ne.s32.totalorder %s40_s10, %s12448_s20  ;;  %p12454_p5 = scmp.lt.s32.totalorder %s12448_s20, %s12448_s20 }
   0xf   :  { %p12455_p6 = por %p12454_p5, %p12453_p4 }
  0x11   :  { %p12456_p7 = pnand %p12455_p6, %p12449_p3 }
  0x13   :  { %12459 = shalt.err (!%p12456_p7)
}
  0x14   :  { %42 = dma.hbm_to_vmem [thread:$0]  %s12992_s2, 256, %s40_s10, [#allocation5]  }
  0x15   :  { %s12460_s25 = scalar_lea.hbm %s12994_s4, 64 }
  0x16   :  { %p12461_p8 = scmp.ne.s32.totalorder %s12994_s4, %s12460_s25  ;;  %p12464_p9 = scmp.lt.u32.totalorder %s12460_s25, %s12994_s4 }
  0x18   :  { %p12466_p10 = pnand %p12464_p9, %p12461_p8 }
  0x1a   :  { %12469 = shalt.err (!%p12466_p10)
}
  0x1b   :  { %s12470_s30 = scalar_lea.vmem %s62_s12, 64  ;;  %p12475_p12 = scmp.lt.s32.totalorder %s62_s12, %s62_s12 }
  0x1c   :  { %p12471_p11 = scmp.ne.s32.totalorder %s62_s12, %s12470_s30  ;;  %p12476_p13 = scmp.lt.s32.totalorder %s12470_s30, %s12470_s30 }
  0x1e   :  { %p12477_p0 = por %p12476_p13, %p12475_p12 }
  0x20   :  { %p12478_p1 = pnand %p12477_p0, %p12471_p11 }
  0x22   :  { %12481 = shalt.err (!%p12478_p1)
}
  0x23   :  { %64 = dma.hbm_to_vmem [thread:$0]  %s12994_s4, 64, %s62_s12, [#allocation8]  }
  0x24   :  { %s12626_s11 = smov [#allocation10]   ;;  %s12627_s14 = smov [#allocation2]  }
  0x25   :  { %s83_s13 = sshll.u32 %s12626_s11, 4  ;;  %s26_s15 = sshll.u32 %s12627_s14, 4  ;;  %s84_s13 = int_to_ptr.vmem [resolvable:$true] %s83_s13  ;;  %s12713_s15 = int_to_ptr.vmem [resolvable:$true] %s26_s15 }
  0x26   :  { %s12482_s18 = scalar_lea.hbm %s12996_s6, 16 }
  0x27   :  { %p12483_p2 = scmp.ne.s32.totalorder %s12996_s6, %s12482_s18  ;;  %p12486_p3 = scmp.lt.u32.totalorder %s12482_s18, %s12996_s6 }
  0x29   :  { %p12488_p4 = pnand %p12486_p3, %p12483_p2 }
  0x2b   :  { %12491 = shalt.err (!%p12488_p4)
}
  0x2c   :  { %s12492_s4 = scalar_lea.vmem %s84_s13, 16  ;;  %s12496_s12 = scalar_lea.vmem %s84_s13, 32 }
  0x2d   :  { %p12493_p5 = scmp.ne.s32.totalorder %s84_s13, %s12492_s4  ;;  %p12497_p6 = scmp.lt.s32.totalorder %s84_s13, %s84_s13 }
  0x2e   :  { %p12498_p7 = scmp.lt.s32.totalorder %s12496_s12, %s12492_s4 }
  0x30   :  { %p12499_p8 = por %p12498_p7, %p12497_p6 }
  0x32   :  { %p12500_p9 = pnand %p12499_p8, %p12493_p5 }
  0x34   :  { %12503 = shalt.err (!%p12500_p9)
}
  0x35   :  { %86 = dma.hbm_to_vmem [thread:$0]  %s12996_s6, 16, %s84_s13, [#allocation11]  }
  0x36   :  { %s12504_s27 = scalar_lea.hbm %s12991_s1, 98304 }
  0x37   :  { %p12505_p10 = scmp.ne.s32.totalorder %s12991_s1, %s12504_s27  ;;  %p12508_p11 = scmp.lt.u32.totalorder %s12504_s27, %s12991_s1 }
  0x39   :  { %p12510_p12 = pnand %p12508_p11, %p12505_p10 }
  0x3b   :  { %12513 = shalt.err (!%p12510_p12)
}
  0x3c   :  { %s12514_s10 = scalar_lea.vmem %s12713_s15, 98304  ;;  %p12519_p0 = scmp.lt.s32.totalorder %s12713_s15, %s12713_s15 }
  0x3d   :  { %p12515_p13 = scmp.ne.s32.totalorder %s12713_s15, %s12514_s10  ;;  %p12520_p1 = scmp.lt.s32.totalorder %s12514_s10, %s12514_s10 }
  0x3f   :  { %p12521_p2 = por %p12520_p1, %p12519_p0 }
  0x41   :  { %p12522_p3 = pnand %p12521_p2, %p12515_p13 }
  0x43   :  { %12525 = shalt.err (!%p12522_p3)
}
  0x44   :  { %s12628_s6 = smov 1024   ;;  %s12629_s11 = smov 64  }
  0x45   :  { %32 = dma.hbm_to_vmem [thread:$0]  %s12991_s1, 98304, %s12713_s15, [#allocation3], %s12628_s6, %s12628_s6, %s12629_s11  }
  0x46   :  { %s12630_s16 = smov [#allocation6]   ;;  %s12526_s20 = scalar_lea.hbm %s12993_s3, 65536 }
  0x47   :  { %s48_s17 = sshll.u32 %s12630_s16, 4  ;;  %p12527_p4 = scmp.ne.s32.totalorder %s12993_s3, %s12526_s20  ;;  %s49_s17 = int_to_ptr.vmem [resolvable:$true] %s48_s17 }
  0x48   :  { %p12530_p5 = scmp.lt.u32.totalorder %s12526_s20, %s12993_s3 }
  0x4a   :  { %p12532_p6 = pnand %p12530_p5, %p12527_p4 }
  0x4c   :  { %12535 = shalt.err (!%p12532_p6)
}
  0x4d   :  { %s12536_s23 = scalar_lea.vmem %s49_s17, 65536  ;;  %p12541_p8 = scmp.lt.s32.totalorder %s49_s17, %s49_s17 }
  0x4e   :  { %p12537_p7 = scmp.ne.s32.totalorder %s49_s17, %s12536_s23  ;;  %p12542_p9 = scmp.lt.s32.totalorder %s12536_s23, %s12536_s23 }
  0x50   :  { %p12543_p10 = por %p12542_p9, %p12541_p8 }
  0x52   :  { %p12544_p11 = pnand %p12543_p10, %p12537_p7 }
  0x54   :  { %12547 = shalt.err (!%p12544_p11)
}
  0x55   :  { %s12631_s1 = smov 256   ;;  %s12632_s15 = smov 16  }
  0x56   :  { %54 = dma.hbm_to_vmem [thread:$0]  %s12993_s3, 65536, %s49_s17, [#allocation5], %s12631_s1, %s12631_s1, %s12632_s15  }
  0x57   :  { %s12633_s26 = smov [#allocation9]   ;;  %s12548_s30 = scalar_lea.hbm %s12995_s5, 4096 }
  0x58   :  { %s70_s27 = sshll.u32 %s12633_s26, 4  ;;  %p12549_p12 = scmp.ne.s32.totalorder %s12995_s5, %s12548_s30  ;;  %s71_s27 = int_to_ptr.vmem [resolvable:$true] %s70_s27 }
  0x59   :  { %p12552_p13 = scmp.lt.u32.totalorder %s12548_s30, %s12995_s5 }
  0x5b   :  { %p12554_p0 = pnand %p12552_p13, %p12549_p12 }
  0x5d   :  { %12557 = shalt.err (!%p12554_p0)
}
  0x5e   :  { %s12558_s14 = scalar_lea.vmem %s71_s27, 4096  ;;  %p12563_p2 = scmp.lt.s32.totalorder %s71_s27, %s71_s27 }
  0x5f   :  { %p12559_p1 = scmp.ne.s32.totalorder %s71_s27, %s12558_s14  ;;  %p12564_p3 = scmp.lt.s32.totalorder %s12558_s14, %s12558_s14 }
  0x61   :  { %p12565_p4 = por %p12564_p3, %p12563_p2 }
  0x63   :  { %p12566_p5 = pnand %p12565_p4, %p12559_p1 }
  0x65   :  { %12569 = shalt.err (!%p12566_p5)
}
  0x66   :  { %s12634_s3 = smov 4   ;;  %s12635_s18 = smov [#allocation12]  }
  0x67   :  { %76 = dma.hbm_to_vmem [thread:$0]  %s12995_s5, 4096, %s71_s27, [#allocation8], %s12629_s11, %s12629_s11, %s12634_s3  }
  0x68   :  { %s92_s19 = sshll.u32 %s12635_s18, 4  ;;  %s12636_s20 = smov [#allocation13]   ;;  %s93_s19 = int_to_ptr.vmem [resolvable:$true] %s92_s19 }
  0x69   :  { %s105_s21 = sshll.u32 %s12636_s20, 4  ;;  %s12570_s12 = scalar_lea.hbm %s12997_s7, 1024  ;;  %s106_s21 = int_to_ptr.vmem [resolvable:$true] %s105_s21 }
  0x6a   :  { %p12571_p6 = scmp.ne.s32.totalorder %s12997_s7, %s12570_s12  ;;  %p12574_p7 = scmp.lt.u32.totalorder %s12570_s12, %s12997_s7 }
  0x6c   :  { %p12576_p8 = pnand %p12574_p7, %p12571_p6 }
  0x6e   :  { %12579 = shalt.err (!%p12576_p8)
}
  0x6f   :  { %s12580_s5 = scalar_lea.vmem %s93_s19, 1024  ;;  %p12585_p10 = scmp.lt.s32.totalorder %s93_s19, %s93_s19 }
  0x70   :  { %p12581_p9 = scmp.ne.s32.totalorder %s93_s19, %s12580_s5  ;;  %p12586_p11 = scmp.lt.s32.totalorder %s12580_s5, %s12580_s5 }
  0x72   :  { %p12587_p12 = por %p12586_p11, %p12585_p10 }
  0x74   :  { %p12588_p13 = pnand %p12587_p12, %p12581_p9 }
  0x76   :  { %12591 = shalt.err (!%p12588_p13)
}
  0x77   :  { %98 = dma.hbm_to_vmem [thread:$0]  %s12997_s7, 1024, %s93_s19, [#allocation11], %s12629_s11, %s12629_s11, %s12634_s3  }
  0x78   :  { %s12592_s29 = scalar_lea.hbm %s12998_s8, 16 }
  0x79   :  { %p12593_p0 = scmp.ne.s32.totalorder %s12998_s8, %s12592_s29  ;;  %p12596_p1 = scmp.lt.u32.totalorder %s12592_s29, %s12998_s8 }
  0x7b   :  { %p12598_p2 = pnand %p12596_p1, %p12593_p0 }
  0x7d   :  { %12601 = shalt.err (!%p12598_p2)
}
  0x7e   :  { %s12602_s13 = scalar_lea.vmem %s106_s21, 16  ;;  %s12606_s14 = scalar_lea.vmem %s106_s21, 32 }
  0x7f   :  { %p12603_p3 = scmp.ne.s32.totalorder %s106_s21, %s12602_s13  ;;  %p12607_p4 = scmp.lt.s32.totalorder %s106_s21, %s106_s21 }
  0x80   :  { %p12608_p5 = scmp.lt.s32.totalorder %s12606_s14, %s12602_s13 }
  0x82   :  { %p12609_p6 = por %p12608_p5, %p12607_p4 }
  0x84   :  { %p12610_p7 = pnand %p12609_p6, %p12603_p3 }
  0x86   :  { %12613 = shalt.err (!%p12610_p7)
}
  0x87   :  { %108 = dma.hbm_to_vmem [thread:$0]  %s12998_s8, 16, %s106_s21, [#allocation14]  }
  0x88   :  { %12614 = dma.done.wait [#allocation3], 98304  }
  0x89   :  { %12615 = vsyncadd [#allocation3], 4294868992 }
  0x8a   :  { %12616 = dma.done.wait [#allocation5], 65792  }
  0x8b   :  { %12617 = vsyncadd [#allocation5], 4294901504 }
  0x8c   :  { %12618 = dma.done.wait [#allocation8], 4160  }
  0x8d   :  { %12619 = vsyncadd [#allocation8], 4294963136 }
  0x8e   :  { %12620 = dma.done.wait [#allocation11], 1040  }
  0x8f   :  { %12621 = vsyncadd [#allocation11], 4294966256 }
  0x90   :  { %12622 = dma.done.wait [#allocation14], 16  }
  0x91   :  { %12623 = vsyncadd [#allocation14], 4294967280  ;;  %v146_v0 = vld [vmem:[#allocation2] sm:$0xff]  ;;  %v147_v2 = vld [vmem:[#allocation2 + $0x8] sm:$0xff]  ;;  %vm12638_vm0 = vmmov 0  }
  0x92   :  { %v154_v1 = vld [vmem:[#allocation2 + $0x40] sm:$0xff]  ;;  %v155_v4 = vld [vmem:[#allocation2 + $0x48] sm:$0xff] }
  0x93   :  { %v10079_v3 = vcombine.high %v146_v0, %v154_v1  ;;  %v10078_v5 = vcombine.low %v146_v0, %v154_v1  ;;  %v162_v6 = vld [vmem:[#allocation2 + $0x80] sm:$0xff]  ;;  %v10081_v8 = vcombine.high %v147_v2, %v155_v4  ;;  %v10080_v9 = vcombine.low %v147_v2, %v155_v4  ;;  %v163_v11 = vld [vmem:[#allocation2 + $0x88] sm:$0xff] }
  0x94   :  { %v170_v7 = vld [vmem:[#allocation2 + $0xc0] sm:$0xff]  ;;  %v171_v12 = vld [vmem:[#allocation2 + $0xc8] sm:$0xff] }
  0x95   :  { %v10095_v10 = vcombine.high %v162_v6, %v170_v7  ;;  %v178_v13 = vld [vmem:[#allocation2 + $0x100] sm:$0xff]  ;;  %4838 = vmatprep.subr.bf16.mxu0 %v10079_v3  ;;  %v10097_v14 = vcombine.high %v163_v11, %v171_v12  ;;  %v179_v16 = vld [vmem:[#allocation2 + $0x108] sm:$0xff]  ;;  %4961 = vmatprep.subr.bf16.mxu1 %v10081_v8  ;;  %v10094_v18 = vcombine.low %v162_v6, %v170_v7 }
  0x96   :  { %v186_v15 = vld [vmem:[#allocation2 + $0x140] sm:$0xff]  ;;  %v187_v17 = vld [vmem:[#allocation2 + $0x148] sm:$0xff]  ;;  %4839 = vmatpush1.bf16.msra.mxu0 %v10078_v5  ;;  %4962 = vmatpush1.bf16.msra.mxu1 %v10080_v9  ;;  %v10096_v19 = vcombine.low %v163_v11, %v171_v12 }
  0x97   :  { %4840 = vmatprep.subr.bf16.mxu0 %v10095_v10  ;;  %v10111_v20 = vcombine.high %v178_v13, %v186_v15  ;;  %4963 = vmatprep.subr.bf16.mxu1 %v10097_v14  ;;  %v10113_v21 = vcombine.high %v179_v16, %v187_v17  ;;  %v194_v22 = vld [vmem:[#allocation2 + $0x180] sm:$0xff]  ;;  %v195_v24 = vld [vmem:[#allocation2 + $0x188] sm:$0xff]  ;;  %v10110_v26 = vcombine.low %v178_v13, %v186_v15 }
  0x98   :  { %v202_v23 = vld [vmem:[#allocation2 + $0x1c0] sm:$0xff]  ;;  %v203_v25 = vld [vmem:[#allocation2 + $0x1c8] sm:$0xff]  ;;  %v10112_v27 = vcombine.low %v179_v16, %v187_v17 }
  0x99   :  { %v10127_v28 = vcombine.high %v194_v22, %v202_v23  ;;  %v10129_v29 = vcombine.high %v195_v24, %v203_v25  ;;  %v210_v30 = vld [vmem:[#allocation2 + $0x200] sm:$0xff]  ;;  %v211_v32 = vld [vmem:[#allocation2 + $0x208] sm:$0xff]  ;;  %v10126_v34 = vcombine.low %v194_v22, %v202_v23  ;;  %v10128_v35 = vcombine.low %v195_v24, %v203_v25 }
  0x9a   :  { %4841 = vmatpush1.bf16.msra.mxu0 %v10094_v18  ;;  %4964 = vmatpush1.bf16.msra.mxu1 %v10096_v19  ;;  %v218_v31 = vld [vmem:[#allocation2 + $0x240] sm:$0xff]  ;;  %v219_v33 = vld [vmem:[#allocation2 + $0x248] sm:$0xff] }
  0x9b   :  { %4842 = vmatprep.subr.bf16.mxu0 %v10111_v20  ;;  %4965 = vmatprep.subr.bf16.mxu1 %v10113_v21  ;;  %v10143_v36 = vcombine.high %v210_v30, %v218_v31  ;;  %v10145_v37 = vcombine.high %v211_v32, %v219_v33  ;;  %v226_v38 = vld [vmem:[#allocation2 + $0x280] sm:$0xff]  ;;  %v227_v40 = vld [vmem:[#allocation2 + $0x288] sm:$0xff]  ;;  %v10142_v42 = vcombine.low %v210_v30, %v218_v31 }
  0x9c   :  { %v234_v39 = vld [vmem:[#allocation2 + $0x2c0] sm:$0xff]  ;;  %v235_v41 = vld [vmem:[#allocation2 + $0x2c8] sm:$0xff]  ;;  %v10144_v43 = vcombine.low %v211_v32, %v219_v33 }
  0x9d   :  { %v10159_v44 = vcombine.high %v226_v38, %v234_v39  ;;  %v10161_v45 = vcombine.high %v227_v40, %v235_v41  ;;  %v242_v46 = vld [vmem:[#allocation2 + $0x300] sm:$0xff]  ;;  %v243_v48 = vld [vmem:[#allocation2 + $0x308] sm:$0xff]  ;;  %v10158_v50 = vcombine.low %v226_v38, %v234_v39  ;;  %v10160_v51 = vcombine.low %v227_v40, %v235_v41 }
  0x9e   :  { %4843 = vmatpush1.bf16.msra.mxu0 %v10110_v26  ;;  %4966 = vmatpush1.bf16.msra.mxu1 %v10112_v27  ;;  %v250_v47 = vld [vmem:[#allocation2 + $0x340] sm:$0xff]  ;;  %v251_v49 = vld [vmem:[#allocation2 + $0x348] sm:$0xff] }
  0x9f   :  { %4844 = vmatprep.subr.bf16.mxu0 %v10127_v28  ;;  %4967 = vmatprep.subr.bf16.mxu1 %v10129_v29  ;;  %v10175_v52 = vcombine.high %v242_v46, %v250_v47  ;;  %v135_v53 = vld [vmem:[%s12990_s0 + $0x8] sm:$0xff]  ;;  %v10177_v54 = vcombine.high %v243_v48, %v251_v49  ;;  %v258_v55 = vld [vmem:[#allocation2 + $0x380] sm:$0xff]  ;;  %v10174_v60 = vcombine.low %v242_v46, %v250_v47 }
  0xa0   :  { %v266_v56 = vld [vmem:[#allocation2 + $0x3c0] sm:$0xff]  ;;  %v12800_v57 = vpack.c.bf16 %v135_v53, %v135_v53  ;;  %v259_v58 = vld [vmem:[#allocation2 + $0x388] sm:$0xff]  ;;  %v10176_v61 = vcombine.low %v243_v48, %v251_v49 }
  0xa1   :  { %v267_v59 = vld [vmem:[#allocation2 + $0x3c8] sm:$0xff]  ;;  %v10191_v62 = vcombine.high %v258_v55, %v266_v56  ;;  %v274_v0 = vld [vmem:[#allocation2 + $0x400] sm:$0xff]  ;;  %v10190_v4 = vcombine.low %v258_v55, %v266_v56 }
  0xa2   :  { %4845 = vmatpush1.bf16.msra.mxu0 %v10126_v34  ;;  %4968 = vmatpush1.bf16.msra.mxu1 %v10128_v35  ;;  %v10193_v63 = vcombine.high %v259_v58, %v267_v59  ;;  %v282_v1 = vld [vmem:[#allocation2 + $0x440] sm:$0xff]  ;;  %v275_v2 = vld [vmem:[#allocation2 + $0x408] sm:$0xff]  ;;  %v10192_v5 = vcombine.low %v259_v58, %v267_v59 }
  0xa3   :  { %4846 = vmatprep.subr.bf16.mxu0 %v10143_v36  ;;  %4969 = vmatprep.subr.bf16.mxu1 %v10145_v37  ;;  %v283_v3 = vld [vmem:[#allocation2 + $0x448] sm:$0xff]  ;;  %v10207_v6 = vcombine.high %v274_v0, %v282_v1  ;;  %v290_v8 = vld [vmem:[#allocation2 + $0x480] sm:$0xff]  ;;  %v10206_v12 = vcombine.low %v274_v0, %v282_v1 }
  0xa4   :  { %4870 = vmatprep.mubr.bf16.mxu0 %v12800_v57  ;;  %4993 = vmatprep.mubr.bf16.mxu1 %v12800_v57  ;;  %v10209_v7 = vcombine.high %v275_v2, %v283_v3  ;;  %v298_v9 = vld [vmem:[#allocation2 + $0x4c0] sm:$0xff]  ;;  %v291_v10 = vld [vmem:[#allocation2 + $0x488] sm:$0xff]  ;;  %v10208_v13 = vcombine.low %v275_v2, %v283_v3 }
  0xa5   :  { %v299_v11 = vld [vmem:[#allocation2 + $0x4c8] sm:$0xff]  ;;  %v10223_v14 = vcombine.high %v290_v8, %v298_v9  ;;  %v306_v16 = vld [vmem:[#allocation2 + $0x500] sm:$0xff]  ;;  %v10222_v20 = vcombine.low %v290_v8, %v298_v9 }
  0xa6   :  { %4847 = vmatpush1.bf16.msra.mxu0 %v10142_v42  ;;  %4970 = vmatpush1.bf16.msra.mxu1 %v10144_v43  ;;  %v10225_v15 = vcombine.high %v291_v10, %v299_v11  ;;  %v314_v17 = vld [vmem:[#allocation2 + $0x540] sm:$0xff]  ;;  %v307_v18 = vld [vmem:[#allocation2 + $0x508] sm:$0xff]  ;;  %v10224_v21 = vcombine.low %v291_v10, %v299_v11 }
  0xa7   :  { %4848 = vmatprep.subr.bf16.mxu0 %v10159_v44  ;;  %4971 = vmatprep.subr.bf16.mxu1 %v10161_v45  ;;  %v315_v19 = vld [vmem:[#allocation2 + $0x548] sm:$0xff]  ;;  %v10239_v22 = vcombine.high %v306_v16, %v314_v17  ;;  %v322_v24 = vld [vmem:[#allocation2 + $0x580] sm:$0xff]  ;;  %v10238_v28 = vcombine.low %v306_v16, %v314_v17 }
  0xa8   :  { %v10241_v23 = vcombine.high %v307_v18, %v315_v19  ;;  %v330_v25 = vld [vmem:[#allocation2 + $0x5c0] sm:$0xff]  ;;  %v323_v26 = vld [vmem:[#allocation2 + $0x588] sm:$0xff]  ;;  %v10240_v29 = vcombine.low %v307_v18, %v315_v19 }
  0xa9   :  { %v331_v27 = vld [vmem:[#allocation2 + $0x5c8] sm:$0xff]  ;;  %v10255_v30 = vcombine.high %v322_v24, %v330_v25  ;;  %v338_v32 = vld [vmem:[#allocation2 + $0x600] sm:$0xff]  ;;  %v10254_v36 = vcombine.low %v322_v24, %v330_v25 }
  0xaa   :  { %4849 = vmatpush1.bf16.msra.mxu0 %v10158_v50  ;;  %4972 = vmatpush1.bf16.msra.mxu1 %v10160_v51  ;;  %v10257_v31 = vcombine.high %v323_v26, %v331_v27  ;;  %v346_v33 = vld [vmem:[#allocation2 + $0x640] sm:$0xff]  ;;  %v339_v34 = vld [vmem:[#allocation2 + $0x608] sm:$0xff]  ;;  %v10256_v37 = vcombine.low %v323_v26, %v331_v27 }
  0xab   :  { %4850 = vmatprep.subr.bf16.mxu0 %v10175_v52  ;;  %4973 = vmatprep.subr.bf16.mxu1 %v10177_v54  ;;  %v347_v35 = vld [vmem:[#allocation2 + $0x648] sm:$0xff]  ;;  %v10271_v38 = vcombine.high %v338_v32, %v346_v33  ;;  %v354_v40 = vld [vmem:[#allocation2 + $0x680] sm:$0xff]  ;;  %v10270_v44 = vcombine.low %v338_v32, %v346_v33 }
  0xac   :  { %v10273_v39 = vcombine.high %v339_v34, %v347_v35  ;;  %v362_v41 = vld [vmem:[#allocation2 + $0x6c0] sm:$0xff]  ;;  %v355_v42 = vld [vmem:[#allocation2 + $0x688] sm:$0xff]  ;;  %v10272_v45 = vcombine.low %v339_v34, %v347_v35 }
  0xad   :  { %v363_v43 = vld [vmem:[#allocation2 + $0x6c8] sm:$0xff]  ;;  %v10287_v46 = vcombine.high %v354_v40, %v362_v41  ;;  %v370_v48 = vld [vmem:[#allocation2 + $0x700] sm:$0xff]  ;;  %v10286_v52 = vcombine.low %v354_v40, %v362_v41 }
  0xae   :  { %4851 = vmatpush1.bf16.msra.mxu0 %v10174_v60  ;;  %4974 = vmatpush1.bf16.msra.mxu1 %v10176_v61  ;;  %v10289_v47 = vcombine.high %v355_v42, %v363_v43  ;;  %v378_v49 = vld [vmem:[#allocation2 + $0x740] sm:$0xff]  ;;  %v371_v50 = vld [vmem:[#allocation2 + $0x708] sm:$0xff]  ;;  %v10288_v53 = vcombine.low %v355_v42, %v363_v43 }
  0xaf   :  { %4852 = vmatprep.subr.bf16.mxu0 %v10191_v62  ;;  %4975 = vmatprep.subr.bf16.mxu1 %v10193_v63  ;;  %v379_v51 = vld [vmem:[#allocation2 + $0x748] sm:$0xff]  ;;  %v10303_v54 = vcombine.high %v370_v48, %v378_v49  ;;  %v386_v56 = vld [vmem:[#allocation2 + $0x780] sm:$0xff]  ;;  %v10302_v61 = vcombine.low %v370_v48, %v378_v49 }
  0xb0   :  { %v10305_v55 = vcombine.high %v371_v50, %v379_v51  ;;  %v394_v58 = vld [vmem:[#allocation2 + $0x7c0] sm:$0xff]  ;;  %v387_v59 = vld [vmem:[#allocation2 + $0x788] sm:$0xff]  ;;  %v10304_v62 = vcombine.low %v371_v50, %v379_v51 }
  0xb1   :  { %v395_v60 = vld [vmem:[#allocation2 + $0x7c8] sm:$0xff]  ;;  %v10319_v63 = vcombine.high %v386_v56, %v394_v58  ;;  %v402_v1 = vld [vmem:[#allocation2 + $0x800] sm:$0xff] }
  0xb2   :  { %4853 = vmatpush1.bf16.msra.mxu0 %v10190_v4  ;;  %4976 = vmatpush1.bf16.msra.mxu1 %v10192_v5  ;;  %v10321_v0 = vcombine.high %v387_v59, %v395_v60  ;;  %v410_v2 = vld [vmem:[#allocation2 + $0x840] sm:$0xff]  ;;  %v403_v3 = vld [vmem:[#allocation2 + $0x808] sm:$0xff]  ;;  %v10318_v5 = vcombine.low %v386_v56, %v394_v58 }
  0xb3   :  { %4854 = vmatprep.subr.bf16.mxu0 %v10207_v6  ;;  %4977 = vmatprep.subr.bf16.mxu1 %v10209_v7  ;;  %v411_v4 = vld [vmem:[#allocation2 + $0x848] sm:$0xff]  ;;  %v134_v6 = vld [vmem:[%s12990_s0] sm:$0xff]  ;;  %v10320_v7 = vcombine.low %v387_v59, %v395_v60  ;;  %v10335_v8 = vcombine.high %v402_v1, %v410_v2  ;;  %v10334_v16 = vcombine.low %v402_v1, %v410_v2 }
  0xb4   :  { %v10337_v9 = vcombine.high %v403_v3, %v411_v4  ;;  %v418_v10 = vld [vmem:[#allocation2 + $0x880] sm:$0xff]  ;;  %v10336_v17 = vcombine.low %v403_v3, %v411_v4  ;;  %v443_v24 = vld [vmem:[#allocation2 + $0x948] sm:$0xff] }
  0xb5   :  { %v426_v11 = vld [vmem:[#allocation2 + $0x8c0] sm:$0xff]  ;;  %v459_v32 = vld [vmem:[#allocation2 + $0x9c8] sm:$0xff] }
  0xb6   :  { %4855 = vmatpush1.bf16.msra.mxu0 %v10206_v12  ;;  %4978 = vmatpush1.bf16.msra.mxu1 %v10208_v13  ;;  %v12807_v12 = vpack.c.bf16 %v134_v6, %v134_v6  ;;  %v419_v13 = vld [vmem:[#allocation2 + $0x888] sm:$0xff]  ;;  %v10351_v18 = vcombine.high %v418_v10, %v426_v11  ;;  %v10350_v25 = vcombine.low %v418_v10, %v426_v11  ;;  %v538_v6 = vld [vmem:[#allocation2 + $0xc40] sm:$0xff] }
  0xb7   :  { %4856 = vmatprep.subr.bf16.mxu0 %v10223_v14  ;;  %4979 = vmatprep.subr.bf16.mxu1 %v10225_v15  ;;  %v427_v14 = vld [vmem:[#allocation2 + $0x8c8] sm:$0xff]  ;;  %v137_v15 = vld [vmem:[%s12990_s0 + $0x18] sm:$0xff] }
  0xb8   :  { %v10353_v19 = vcombine.high %v419_v13, %v427_v14  ;;  %v10352_v26 = vcombine.low %v419_v13, %v427_v14  ;;  %v475_v40 = vld [vmem:[#allocation2 + $0xa48] sm:$0xff]  ;;  %v546_v14 = vld [vmem:[#allocation2 + $0xc80] sm:$0xff] }
  0xb9   :  { %v491_v48 = vld [vmem:[#allocation2 + $0xac8] sm:$0xff] }
  0xba   :  { %4857 = vmatpush1.bf16.msra.mxu0 %v10222_v20  ;;  %4980 = vmatpush1.bf16.msra.mxu1 %v10224_v21  ;;  %v434_v20 = vld [vmem:[#allocation2 + $0x900] sm:$0xff]  ;;  %v507_v56 = vld [vmem:[#allocation2 + $0xb48] sm:$0xff] }
  0xbb   :  { %4858 = vmatprep.subr.bf16.mxu0 %v10239_v22  ;;  %4981 = vmatprep.subr.bf16.mxu1 %v10241_v23  ;;  %v442_v21 = vld [vmem:[#allocation2 + $0x940] sm:$0xff]  ;;  %v435_v22 = vld [vmem:[#allocation2 + $0x908] sm:$0xff]  ;;  %v12812_v23 = vpack.c.bf16 %v137_v15, %v137_v15 }
  0xbc   :  { %v10367_v27 = vcombine.high %v434_v20, %v442_v21  ;;  %v10366_v33 = vcombine.low %v434_v20, %v442_v21  ;;  %v10368_v34 = vcombine.low %v435_v22, %v443_v24  ;;  %v523_v1 = vld [vmem:[#allocation2 + $0xbc8] sm:$0xff]  ;;  %v554_v15 = vld [vmem:[#allocation2 + $0xcc0] sm:$0xff] }
  0xbd   :  { %v10479_v21 = vcombine.high %v546_v14, %v554_v15 }
  0xbe   :  { %4859 = vmatpush1.bf16.msra.mxu0 %v10238_v28  ;;  %4982 = vmatpush1.bf16.msra.mxu1 %v10240_v29  ;;  %v450_v28 = vld [vmem:[#allocation2 + $0x980] sm:$0xff] }
  0xbf   :  { %4860 = vmatprep.subr.bf16.mxu0 %v10255_v30  ;;  %4983 = vmatprep.subr.bf16.mxu1 %v10257_v31  ;;  %v458_v29 = vld [vmem:[#allocation2 + $0x9c0] sm:$0xff]  ;;  %v451_v30 = vld [vmem:[#allocation2 + $0x988] sm:$0xff]  ;;  %v10369_v31 = vcombine.high %v435_v22, %v443_v24 }
  0xc0   :  { %v10383_v35 = vcombine.high %v450_v28, %v458_v29  ;;  %v10382_v41 = vcombine.low %v450_v28, %v458_v29  ;;  %v10384_v42 = vcombine.low %v451_v30, %v459_v32  ;;  %v562_v22 = vld [vmem:[#allocation2 + $0xd00] sm:$0xff]  ;;  %v10478_v28 = vcombine.low %v546_v14, %v554_v15  ;;  %v136_v14 = vld [vmem:[%s12990_s0 + $0x10] sm:$0xff] }
  0xc1   :  { %v570_v24 = vld [vmem:[#allocation2 + $0xd40] sm:$0xff] }
  0xc2   :  { %4861 = vmatpush1.bf16.msra.mxu0 %v10254_v36  ;;  %4984 = vmatpush1.bf16.msra.mxu1 %v10256_v37  ;;  %v466_v36 = vld [vmem:[#allocation2 + $0xa00] sm:$0xff] }
  0xc3   :  { %4862 = vmatprep.subr.bf16.mxu0 %v10271_v38  ;;  %4985 = vmatprep.subr.bf16.mxu1 %v10273_v39  ;;  %v474_v37 = vld [vmem:[#allocation2 + $0xa40] sm:$0xff]  ;;  %v467_v38 = vld [vmem:[#allocation2 + $0xa08] sm:$0xff]  ;;  %v10385_v39 = vcombine.high %v451_v30, %v459_v32  ;;  %v10495_v30 = vcombine.high %v562_v22, %v570_v24 }
  0xc4   :  { %v10399_v43 = vcombine.high %v466_v36, %v474_v37  ;;  %v10398_v49 = vcombine.low %v466_v36, %v474_v37  ;;  %v10400_v50 = vcombine.low %v467_v38, %v475_v40  ;;  %v586_v32 = vld [vmem:[#allocation2 + $0xdc0] sm:$0xff]  ;;  %v10494_v36 = vcombine.low %v562_v22, %v570_v24  ;;  %v139_v24 = vld [vmem:[%s12990_s0 + $0x28] sm:$0xff] }
  0xc6   :  { %4863 = vmatpush1.bf16.msra.mxu0 %v10270_v44  ;;  %4986 = vmatpush1.bf16.msra.mxu1 %v10272_v45  ;;  %v482_v44 = vld [vmem:[#allocation2 + $0xa80] sm:$0xff] }
  0xc7   :  { %4864 = vmatprep.subr.bf16.mxu0 %v10287_v46  ;;  %4987 = vmatprep.subr.bf16.mxu1 %v10289_v47  ;;  %v490_v45 = vld [vmem:[#allocation2 + $0xac0] sm:$0xff]  ;;  %v483_v46 = vld [vmem:[#allocation2 + $0xa88] sm:$0xff]  ;;  %v10401_v47 = vcombine.high %v467_v38, %v475_v40 }
  0xc8   :  { %v10415_v51 = vcombine.high %v482_v44, %v490_v45  ;;  %v10414_v58 = vcombine.low %v482_v44, %v490_v45  ;;  %v10416_v59 = vcombine.low %v483_v46, %v491_v48  ;;  %v602_v40 = vld [vmem:[#allocation2 + $0xe40] sm:$0xff] }
  0xca   :  { %4865 = vmatpush1.bf16.msra.mxu0 %v10286_v52  ;;  %4988 = vmatpush1.bf16.msra.mxu1 %v10288_v53  ;;  %v498_v52 = vld [vmem:[#allocation2 + $0xb00] sm:$0xff] }
  0xcb   :  { %4866 = vmatprep.subr.bf16.mxu0 %v10303_v54  ;;  %4989 = vmatprep.subr.bf16.mxu1 %v10305_v55  ;;  %v506_v53 = vld [vmem:[#allocation2 + $0xb40] sm:$0xff]  ;;  %v499_v54 = vld [vmem:[#allocation2 + $0xb08] sm:$0xff]  ;;  %v10417_v55 = vcombine.high %v483_v46, %v491_v48 }
  0xcc   :  { %v10431_v60 = vcombine.high %v498_v52, %v506_v53  ;;  %v10430_v2 = vcombine.low %v498_v52, %v506_v53  ;;  %v10432_v3 = vcombine.low %v499_v54, %v507_v56  ;;  %v618_v48 = vld [vmem:[#allocation2 + $0xec0] sm:$0xff] }
  0xce   :  { %4867 = vmatpush1.bf16.msra.mxu0 %v10302_v61  ;;  %4990 = vmatpush1.bf16.msra.mxu1 %v10304_v62  ;;  %v514_v61 = vld [vmem:[#allocation2 + $0xb80] sm:$0xff] }
  0xcf   :  { %4868 = vmatprep.subr.bf16.mxu0 %v10319_v63  ;;  %4991 = vmatprep.subr.bf16.mxu1 %v10321_v0  ;;  %v522_v62 = vld [vmem:[#allocation2 + $0xbc0] sm:$0xff]  ;;  %v515_v63 = vld [vmem:[#allocation2 + $0xb88] sm:$0xff]  ;;  %v10433_v0 = vcombine.high %v499_v54, %v507_v56 }
  0xd0   :  { %v10447_v4 = vcombine.high %v514_v61, %v522_v62  ;;  %v10446_v10 = vcombine.low %v514_v61, %v522_v62  ;;  %v10448_v11 = vcombine.low %v515_v63, %v523_v1  ;;  %v634_v56 = vld [vmem:[#allocation2 + $0xf40] sm:$0xff] }
  0xd2   :  { %4869 = vmatpush1.bf16.msra.mxu0 %v10318_v5  ;;  %4992 = vmatpush1.bf16.msra.mxu1 %v10320_v7  ;;  %v530_v5 = vld [vmem:[#allocation2 + $0xc00] sm:$0xff]  ;;  %v531_v7 = vld [vmem:[#allocation2 + $0xc08] sm:$0xff] }
  0xd3   :  { %4879 = vmatprep.subr.bf16.mxu0 %v10335_v8  ;;  %5002 = vmatprep.subr.bf16.mxu1 %v10337_v9  ;;  %v10449_v8 = vcombine.high %v515_v63, %v523_v1  ;;  %v539_v9 = vld [vmem:[#allocation2 + $0xc48] sm:$0xff]  ;;  %v10463_v13 = vcombine.high %v530_v5, %v538_v6  ;;  %v650_v1 = vld [vmem:[#allocation2 + $0xfc0] sm:$0xff] }
  0xd4   :  { %v10464_v20 = vcombine.low %v531_v7, %v539_v9 }
  0xd5   :  { %4871 = vmatmul.mubr.bf16.vlgmr.msra.gmra.mrb[0].mxu0 %v12807_v12  ;;  %4994 = vmatmul.mubr.bf16.vlgmr.msra.gmra.mrb[0].mxu1 %v12807_v12 }
  0xd6   :  { %4880 = vmatpush1.bf16.msra.mxu0 %v10334_v16  ;;  %5003 = vmatpush1.bf16.msra.mxu1 %v10336_v17  ;;  %v547_v16 = vld [vmem:[#allocation2 + $0xc88] sm:$0xff]  ;;  %v10465_v17 = vcombine.high %v531_v7, %v539_v9  ;;  %v666_v9 = vld [vmem:[#allocation2 + $0x1040] sm:$0xff] }
  0xd7   :  { %4881 = vmatprep.subr.bf16.mxu0 %v10351_v18  ;;  %5004 = vmatprep.subr.bf16.mxu1 %v10353_v19  ;;  %v555_v18 = vld [vmem:[#allocation2 + $0xcc8] sm:$0xff]  ;;  %v10462_v19 = vcombine.low %v530_v5, %v538_v6  ;;  %v658_v6 = vld [vmem:[#allocation2 + $0x1000] sm:$0xff] }
  0xd8   :  { %4911 = vmatprep.mubr.bf16.mxu0 %v12812_v23  ;;  %5034 = vmatprep.mubr.bf16.mxu1 %v12812_v23  ;;  %v10480_v29 = vcombine.low %v547_v16, %v555_v18 }
  0xda   :  { %4882 = vmatpush1.bf16.msra.mxu0 %v10350_v25  ;;  %5005 = vmatpush1.bf16.msra.mxu1 %v10352_v26  ;;  %v563_v25 = vld [vmem:[#allocation2 + $0xd08] sm:$0xff]  ;;  %v10481_v26 = vcombine.high %v547_v16, %v555_v18  ;;  %v674_v16 = vld [vmem:[#allocation2 + $0x1080] sm:$0xff]  ;;  %v10591_v18 = vcombine.high %v658_v6, %v666_v9 }
  0xdb   :  { %4883 = vmatprep.subr.bf16.mxu0 %v10367_v27  ;;  %5006 = vmatprep.subr.bf16.mxu1 %v10369_v31  ;;  %v571_v27 = vld [vmem:[#allocation2 + $0xd48] sm:$0xff]  ;;  %v578_v31 = vld [vmem:[#allocation2 + $0xd80] sm:$0xff] }
  0xdc   :  { %v10496_v37 = vcombine.low %v563_v25, %v571_v27  ;;  %v10511_v38 = vcombine.high %v578_v31, %v586_v32  ;;  %v10510_v44 = vcombine.low %v578_v31, %v586_v32  ;;  %v691_v31 = vld [vmem:[#allocation2 + $0x1108] sm:$0xff] }
  0xde   :  { %4884 = vmatpush1.bf16.msra.mxu0 %v10366_v33  ;;  %5007 = vmatpush1.bf16.msra.mxu1 %v10368_v34  ;;  %v579_v33 = vld [vmem:[#allocation2 + $0xd88] sm:$0xff]  ;;  %v10497_v34 = vcombine.high %v563_v25, %v571_v27  ;;  %v12824_v25 = vpack.c.bf16 %v136_v14, %v136_v14 }
  0xdf   :  { %4885 = vmatprep.subr.bf16.mxu0 %v10383_v35  ;;  %5008 = vmatprep.subr.bf16.mxu1 %v10385_v39  ;;  %v587_v35 = vld [vmem:[#allocation2 + $0xdc8] sm:$0xff]  ;;  %v594_v39 = vld [vmem:[#allocation2 + $0xe00] sm:$0xff] }
  0xe0   :  { %v10512_v45 = vcombine.low %v579_v33, %v587_v35  ;;  %v10527_v46 = vcombine.high %v594_v39, %v602_v40  ;;  %v10526_v52 = vcombine.low %v594_v39, %v602_v40  ;;  %v714_v39 = vld [vmem:[#allocation2 + $0x11c0] sm:$0xff]  ;;  %v707_v40 = vld [vmem:[#allocation2 + $0x1188] sm:$0xff] }
  0xe2   :  { %4886 = vmatpush1.bf16.msra.mxu0 %v10382_v41  ;;  %5009 = vmatpush1.bf16.msra.mxu1 %v10384_v42  ;;  %v595_v41 = vld [vmem:[#allocation2 + $0xe08] sm:$0xff]  ;;  %v10513_v42 = vcombine.high %v579_v33, %v587_v35 }
  0xe3   :  { %4887 = vmatprep.subr.bf16.mxu0 %v10399_v43  ;;  %5010 = vmatprep.subr.bf16.mxu1 %v10401_v47  ;;  %v603_v43 = vld [vmem:[#allocation2 + $0xe48] sm:$0xff]  ;;  %v610_v47 = vld [vmem:[#allocation2 + $0xe80] sm:$0xff] }
  0xe4   :  { %v10528_v53 = vcombine.low %v595_v41, %v603_v43  ;;  %v10543_v54 = vcombine.high %v610_v47, %v618_v48  ;;  %v10542_v61 = vcombine.low %v610_v47, %v618_v48  ;;  %v699_v33 = vld [vmem:[#allocation2 + $0x1148] sm:$0xff]  ;;  %v730_v47 = vld [vmem:[#allocation2 + $0x1240] sm:$0xff] }
  0xe5   :  { %v723_v48 = vld [vmem:[#allocation2 + $0x1208] sm:$0xff] }
  0xe6   :  { %4888 = vmatpush1.bf16.msra.mxu0 %v10398_v49  ;;  %5011 = vmatpush1.bf16.msra.mxu1 %v10400_v50  ;;  %v611_v49 = vld [vmem:[#allocation2 + $0xe88] sm:$0xff]  ;;  %v10529_v50 = vcombine.high %v595_v41, %v603_v43  ;;  %v10625_v41 = vcombine.high %v691_v31, %v699_v33 }
  0xe7   :  { %4889 = vmatprep.subr.bf16.mxu0 %v10415_v51  ;;  %5012 = vmatprep.subr.bf16.mxu1 %v10417_v55  ;;  %v619_v51 = vld [vmem:[#allocation2 + $0xec8] sm:$0xff]  ;;  %v626_v55 = vld [vmem:[#allocation2 + $0xf00] sm:$0xff] }
  0xe8   :  { %v10544_v62 = vcombine.low %v611_v49, %v619_v51  ;;  %v10559_v63 = vcombine.high %v626_v55, %v634_v56  ;;  %v10558_v5 = vcombine.low %v626_v55, %v634_v56  ;;  %v746_v55 = vld [vmem:[#allocation2 + $0x12c0] sm:$0xff]  ;;  %v739_v56 = vld [vmem:[#allocation2 + $0x1288] sm:$0xff] }
  0xea   :  { %4890 = vmatpush1.bf16.msra.mxu0 %v10414_v58  ;;  %5013 = vmatpush1.bf16.msra.mxu1 %v10416_v59  ;;  %v627_v58 = vld [vmem:[#allocation2 + $0xf08] sm:$0xff]  ;;  %v10545_v59 = vcombine.high %v611_v49, %v619_v51 }
  0xeb   :  { %4891 = vmatprep.subr.bf16.mxu0 %v10431_v60  ;;  %5014 = vmatprep.subr.bf16.mxu1 %v10433_v0  ;;  %v635_v60 = vld [vmem:[#allocation2 + $0xf48] sm:$0xff]  ;;  %v642_v0 = vld [vmem:[#allocation2 + $0xf80] sm:$0xff] }
  0xec   :  { %v10560_v7 = vcombine.low %v627_v58, %v635_v60  ;;  %v10574_v15 = vcombine.low %v642_v0, %v650_v1 }
  0xee   :  { %4892 = vmatpush1.bf16.msra.mxu0 %v10430_v2  ;;  %5015 = vmatpush1.bf16.msra.mxu1 %v10432_v3  ;;  %v643_v2 = vld [vmem:[#allocation2 + $0xf88] sm:$0xff]  ;;  %v10561_v3 = vcombine.high %v627_v58, %v635_v60 }
  0xef   :  { %4893 = vmatprep.subr.bf16.mxu0 %v10447_v4  ;;  %5016 = vmatprep.subr.bf16.mxu1 %v10449_v8  ;;  %v651_v4 = vld [vmem:[#allocation2 + $0xfc8] sm:$0xff]  ;;  %v10575_v8 = vcombine.high %v642_v0, %v650_v1  ;;  %v762_v0 = vld [vmem:[#allocation2 + $0x1340] sm:$0xff] }
  0xf0   :  { %v755_v1 = vld [vmem:[#allocation2 + $0x1308] sm:$0xff] }
  0xf2   :  { %4894 = vmatpush1.bf16.msra.mxu0 %v10446_v10  ;;  %5017 = vmatpush1.bf16.msra.mxu1 %v10448_v11  ;;  %v659_v10 = vld [vmem:[#allocation2 + $0x1008] sm:$0xff] }
  0xf3   :  { %4895 = vmatprep.subr.bf16.mxu0 %v10463_v13  ;;  %5018 = vmatprep.subr.bf16.mxu1 %v10465_v17  ;;  %v667_v11 = vld [vmem:[#allocation2 + $0x1048] sm:$0xff]  ;;  %v10577_v13 = vcombine.high %v643_v2, %v651_v4  ;;  %v10576_v17 = vcombine.low %v643_v2, %v651_v4 }
  0xf4   :  { %v10593_v22 = vcombine.high %v659_v10, %v667_v11  ;;  %v10592_v27 = vcombine.low %v659_v10, %v667_v11  ;;  %v779_v11 = vld [vmem:[#allocation2 + $0x13c8] sm:$0xff] }
  0xf6   :  { %4896 = vmatpush1.bf16.msra.mxu0 %v10462_v19  ;;  %5019 = vmatpush1.bf16.msra.mxu1 %v10464_v20  ;;  %v682_v19 = vld [vmem:[#allocation2 + $0x10c0] sm:$0xff]  ;;  %v675_v20 = vld [vmem:[#allocation2 + $0x1088] sm:$0xff] }
  0xf7   :  { %4897 = vmatprep.subr.bf16.mxu0 %v10479_v21  ;;  %5020 = vmatprep.subr.bf16.mxu1 %v10481_v26  ;;  %v683_v21 = vld [vmem:[#allocation2 + $0x10c8] sm:$0xff]  ;;  %v10590_v26 = vcombine.low %v658_v6, %v666_v9  ;;  %v10606_v35 = vcombine.low %v674_v16, %v682_v19 }
  0xf8   :  { %v10609_v32 = vcombine.high %v675_v20, %v683_v21  ;;  %v771_v9 = vld [vmem:[#allocation2 + $0x1388] sm:$0xff] }
  0xfa   :  { %4898 = vmatpush1.bf16.msra.mxu0 %v10478_v28  ;;  %5021 = vmatpush1.bf16.msra.mxu1 %v10480_v29  ;;  %v10607_v28 = vcombine.high %v674_v16, %v682_v19  ;;  %v690_v29 = vld [vmem:[#allocation2 + $0x1100] sm:$0xff]  ;;  %v10705_v19 = vcombine.high %v771_v9, %v779_v11 }
  0xfb   :  { %4899 = vmatprep.subr.bf16.mxu0 %v10495_v30  ;;  %5022 = vmatprep.subr.bf16.mxu1 %v10497_v34  ;;  %v698_v30 = vld [vmem:[#allocation2 + $0x1140] sm:$0xff]  ;;  %v12826_v34 = vpack.c.bf16 %v139_v24, %v139_v24 }
  0xfc   :  { %v10622_v43 = vcombine.low %v690_v29, %v698_v30  ;;  %v786_v16 = vld [vmem:[#allocation2 + $0x1400] sm:$0xff] }
  0xfe   :  { %4900 = vmatpush1.bf16.msra.mxu0 %v10494_v36  ;;  %5023 = vmatpush1.bf16.msra.mxu1 %v10496_v37  ;;  %v10608_v36 = vcombine.low %v675_v20, %v683_v21  ;;  %v10623_v37 = vcombine.high %v690_v29, %v698_v30  ;;  %v795_v20 = vld [vmem:[#allocation2 + $0x1448] sm:$0xff] }
  0xff   :  { %4901 = vmatprep.subr.bf16.mxu0 %v10511_v38  ;;  %5024 = vmatprep.subr.bf16.mxu1 %v10513_v42  ;;  %v706_v38 = vld [vmem:[#allocation2 + $0x1180] sm:$0xff]  ;;  %v715_v42 = vld [vmem:[#allocation2 + $0x11c8] sm:$0xff] }
 0x100   :  { %v10641_v49 = vcombine.high %v707_v40, %v715_v42  ;;  %v10638_v51 = vcombine.low %v706_v38, %v714_v39  ;;  %v811_v30 = vld [vmem:[#allocation2 + $0x14c8] sm:$0xff] }
 0x102   :  { %4902 = vmatpush1.bf16.msra.mxu0 %v10510_v44  ;;  %5025 = vmatpush1.bf16.msra.mxu1 %v10512_v45  ;;  %v10624_v44 = vcombine.low %v691_v31, %v699_v33  ;;  %v10639_v45 = vcombine.high %v706_v38, %v714_v39  ;;  %v827_v39 = vld [vmem:[#allocation2 + $0x1548] sm:$0xff] }
 0x103   :  { %4903 = vmatprep.subr.bf16.mxu0 %v10527_v46  ;;  %5026 = vmatprep.subr.bf16.mxu1 %v10529_v50  ;;  %v722_v46 = vld [vmem:[#allocation2 + $0x1200] sm:$0xff]  ;;  %v731_v50 = vld [vmem:[#allocation2 + $0x1248] sm:$0xff] }
 0x104   :  { %v10657_v58 = vcombine.high %v723_v48, %v731_v50  ;;  %v10654_v60 = vcombine.low %v722_v46, %v730_v47 }
 0x106   :  { %4904 = vmatpush1.bf16.msra.mxu0 %v10526_v52  ;;  %5027 = vmatpush1.bf16.msra.mxu1 %v10528_v53  ;;  %v10640_v52 = vcombine.low %v707_v40, %v715_v42  ;;  %v10655_v53 = vcombine.high %v722_v46, %v730_v47  ;;  %v843_v47 = vld [vmem:[#allocation2 + $0x15c8] sm:$0xff] }
 0x107   :  { %4905 = vmatprep.subr.bf16.mxu0 %v10543_v54  ;;  %5028 = vmatprep.subr.bf16.mxu1 %v10545_v59  ;;  %v738_v54 = vld [vmem:[#allocation2 + $0x1280] sm:$0xff]  ;;  %v747_v59 = vld [vmem:[#allocation2 + $0x12c8] sm:$0xff] }
 0x108   :  { %v10673_v2 = vcombine.high %v739_v56, %v747_v59  ;;  %v10670_v4 = vcombine.low %v738_v54, %v746_v55 }
 0x10a   :  { %4906 = vmatpush1.bf16.msra.mxu0 %v10542_v61  ;;  %5029 = vmatpush1.bf16.msra.mxu1 %v10544_v62  ;;  %v10656_v61 = vcombine.low %v723_v48, %v731_v50  ;;  %v10671_v62 = vcombine.high %v738_v54, %v746_v55  ;;  %v859_v55 = vld [vmem:[#allocation2 + $0x1648] sm:$0xff] }
 0x10b   :  { %4907 = vmatprep.subr.bf16.mxu0 %v10559_v63  ;;  %5030 = vmatprep.subr.bf16.mxu1 %v10561_v3  ;;  %v754_v63 = vld [vmem:[#allocation2 + $0x1300] sm:$0xff]  ;;  %v763_v3 = vld [vmem:[#allocation2 + $0x1348] sm:$0xff] }
 0x10c   :  { %v10687_v6 = vcombine.high %v754_v63, %v762_v0  ;;  %v10689_v10 = vcombine.high %v755_v1, %v763_v3  ;;  %v10688_v14 = vcombine.low %v755_v1, %v763_v3 }
 0x10e   :  { %4908 = vmatpush1.bf16.msra.mxu0 %v10558_v5  ;;  %5031 = vmatpush1.bf16.msra.mxu1 %v10560_v7  ;;  %v10672_v5 = vcombine.low %v739_v56, %v747_v59  ;;  %v770_v7 = vld [vmem:[#allocation2 + $0x1380] sm:$0xff] }
 0x10f   :  { %4909 = vmatprep.subr.bf16.mxu0 %v10575_v8  ;;  %5032 = vmatprep.subr.bf16.mxu1 %v10577_v13  ;;  %v778_v8 = vld [vmem:[#allocation2 + $0x13c0] sm:$0xff]  ;;  %v10686_v13 = vcombine.low %v754_v63, %v762_v0  ;;  %v875_v0 = vld [vmem:[#allocation2 + $0x16c8] sm:$0xff] }
 0x110   :  { %v10702_v21 = vcombine.low %v770_v7, %v778_v8 }
 0x112   :  { %4910 = vmatpush1.bf16.msra.mxu0 %v10574_v15  ;;  %5033 = vmatpush1.bf16.msra.mxu1 %v10576_v17  ;;  %v10703_v15 = vcombine.high %v770_v7, %v778_v8  ;;  %v794_v17 = vld [vmem:[#allocation2 + $0x1440] sm:$0xff]  ;;  %v891_v8 = vld [vmem:[#allocation2 + $0x1748] sm:$0xff] }
 0x113   :  { %4920 = vmatprep.subr.bf16.mxu0 %v10591_v18  ;;  %5043 = vmatprep.subr.bf16.mxu1 %v10593_v22  ;;  %v787_v18 = vld [vmem:[#allocation2 + $0x1408] sm:$0xff]  ;;  %v10704_v22 = vcombine.low %v771_v9, %v779_v11  ;;  %v10719_v24 = vcombine.high %v786_v16, %v794_v17  ;;  %v10718_v31 = vcombine.low %v786_v16, %v794_v17 }
 0x114   :  { %v10721_v29 = vcombine.high %v787_v18, %v795_v20  ;;  %v907_v17 = vld [vmem:[#allocation2 + $0x17c8] sm:$0xff] }
 0x115   :  { %4912 = vmatmul.mubr.bf16.vlgmr.msra.gmra.mrb[0].mxu0 %v12824_v25  ;;  %5035 = vmatmul.mubr.bf16.vlgmr.msra.gmra.mrb[0].mxu1 %v12824_v25 }
 0x116   :  { %4921 = vmatpush1.bf16.msra.mxu0 %v10590_v26  ;;  %5044 = vmatpush1.bf16.msra.mxu1 %v10592_v27  ;;  %v802_v26 = vld [vmem:[#allocation2 + $0x1480] sm:$0xff] }
 0x117   :  { %4922 = vmatprep.subr.bf16.mxu0 %v10607_v28  ;;  %5045 = vmatprep.subr.bf16.mxu1 %v10609_v32  ;;  %v810_v27 = vld [vmem:[#allocation2 + $0x14c0] sm:$0xff]  ;;  %v803_v28 = vld [vmem:[#allocation2 + $0x1488] sm:$0xff]  ;;  %v10720_v32 = vcombine.low %v787_v18, %v795_v20 }
 0x118   :  { %4952 = vmatprep.mubr.bf16.mxu0 %v12826_v34  ;;  %5075 = vmatprep.mubr.bf16.mxu1 %v12826_v34  ;;  %v10735_v33 = vcombine.high %v802_v26, %v810_v27  ;;  %v10737_v38 = vcombine.high %v803_v28, %v811_v30  ;;  %v10734_v40 = vcombine.low %v802_v26, %v810_v27  ;;  %v138_v27 = vld [vmem:[%s12990_s0 + $0x20] sm:$0xff] }
 0x11a   :  { %4923 = vmatpush1.bf16.msra.mxu0 %v10606_v35  ;;  %5046 = vmatpush1.bf16.msra.mxu1 %v10608_v36  ;;  %v818_v35 = vld [vmem:[#allocation2 + $0x1500] sm:$0xff] }
 0x11b   :  { %4924 = vmatprep.subr.bf16.mxu0 %v10623_v37  ;;  %5047 = vmatprep.subr.bf16.mxu1 %v10625_v41  ;;  %v826_v36 = vld [vmem:[#allocation2 + $0x1540] sm:$0xff]  ;;  %v819_v37 = vld [vmem:[#allocation2 + $0x1508] sm:$0xff]  ;;  %v10736_v41 = vcombine.low %v803_v28, %v811_v30  ;;  %v157_v28 = vld [vmem:[#allocation2 + $0x58] sm:$0xff] }
 0x11c   :  { %v10751_v42 = vcombine.high %v818_v35, %v826_v36  ;;  %v10753_v46 = vcombine.high %v819_v37, %v827_v39  ;;  %v10750_v48 = vcombine.low %v818_v35, %v826_v36  ;;  %v165_v35 = vld [vmem:[#allocation2 + $0x98] sm:$0xff] }
 0x11e   :  { %4925 = vmatpush1.bf16.msra.mxu0 %v10622_v43  ;;  %5048 = vmatpush1.bf16.msra.mxu1 %v10624_v44  ;;  %v834_v43 = vld [vmem:[#allocation2 + $0x1580] sm:$0xff] }
 0x11f   :  { %4926 = vmatprep.subr.bf16.mxu0 %v10639_v45  ;;  %5049 = vmatprep.subr.bf16.mxu1 %v10641_v49  ;;  %v842_v44 = vld [vmem:[#allocation2 + $0x15c0] sm:$0xff]  ;;  %v835_v45 = vld [vmem:[#allocation2 + $0x1588] sm:$0xff]  ;;  %v10752_v49 = vcombine.low %v819_v37, %v827_v39  ;;  %v173_v37 = vld [vmem:[#allocation2 + $0xd8] sm:$0xff] }
 0x120   :  { %v10767_v50 = vcombine.high %v834_v43, %v842_v44  ;;  %v10769_v54 = vcombine.high %v835_v45, %v843_v47  ;;  %v10766_v56 = vcombine.low %v834_v43, %v842_v44  ;;  %v188_v43 = vld [vmem:[#allocation2 + $0x150] sm:$0xff]  ;;  %v181_v44 = vld [vmem:[#allocation2 + $0x118] sm:$0xff] }
 0x122   :  { %4927 = vmatpush1.bf16.msra.mxu0 %v10638_v51  ;;  %5050 = vmatpush1.bf16.msra.mxu1 %v10640_v52  ;;  %v850_v51 = vld [vmem:[#allocation2 + $0x1600] sm:$0xff] }
 0x123   :  { %4928 = vmatprep.subr.bf16.mxu0 %v10655_v53  ;;  %5051 = vmatprep.subr.bf16.mxu1 %v10657_v58  ;;  %v858_v52 = vld [vmem:[#allocation2 + $0x1640] sm:$0xff]  ;;  %v851_v53 = vld [vmem:[#allocation2 + $0x1608] sm:$0xff]  ;;  %v10768_v58 = vcombine.low %v835_v45, %v843_v47  ;;  %v10101_v45 = vcombine.high %v165_v35, %v173_v37 }
 0x124   :  { %v10783_v59 = vcombine.high %v850_v51, %v858_v52  ;;  %v10785_v63 = vcombine.high %v851_v53, %v859_v55  ;;  %v10782_v1 = vcombine.low %v850_v51, %v858_v52  ;;  %v204_v51 = vld [vmem:[#allocation2 + $0x1d0] sm:$0xff]  ;;  %v197_v52 = vld [vmem:[#allocation2 + $0x198] sm:$0xff] }
 0x126   :  { %4929 = vmatpush1.bf16.msra.mxu0 %v10654_v60  ;;  %5052 = vmatpush1.bf16.msra.mxu1 %v10656_v61  ;;  %v866_v60 = vld [vmem:[#allocation2 + $0x1680] sm:$0xff] }
 0x127   :  { %4930 = vmatprep.subr.bf16.mxu0 %v10671_v62  ;;  %5053 = vmatprep.subr.bf16.mxu1 %v10673_v2  ;;  %v874_v61 = vld [vmem:[#allocation2 + $0x16c0] sm:$0xff]  ;;  %v867_v62 = vld [vmem:[#allocation2 + $0x1688] sm:$0xff]  ;;  %v10784_v2 = vcombine.low %v851_v53, %v859_v55 }
 0x128   :  { %v10799_v3 = vcombine.high %v866_v60, %v874_v61  ;;  %v10801_v7 = vcombine.high %v867_v62, %v875_v0  ;;  %v10798_v9 = vcombine.low %v866_v60, %v874_v61  ;;  %v220_v60 = vld [vmem:[#allocation2 + $0x250] sm:$0xff]  ;;  %v213_v61 = vld [vmem:[#allocation2 + $0x218] sm:$0xff] }
 0x12a   :  { %4931 = vmatpush1.bf16.msra.mxu0 %v10670_v4  ;;  %5054 = vmatpush1.bf16.msra.mxu1 %v10672_v5  ;;  %v882_v4 = vld [vmem:[#allocation2 + $0x1700] sm:$0xff] }
 0x12b   :  { %4932 = vmatprep.subr.bf16.mxu0 %v10687_v6  ;;  %5055 = vmatprep.subr.bf16.mxu1 %v10689_v10  ;;  %v890_v5 = vld [vmem:[#allocation2 + $0x1740] sm:$0xff]  ;;  %v883_v6 = vld [vmem:[#allocation2 + $0x1708] sm:$0xff]  ;;  %v10800_v10 = vcombine.low %v867_v62, %v875_v0 }
 0x12c   :  { %v10815_v11 = vcombine.high %v882_v4, %v890_v5  ;;  %v10817_v16 = vcombine.high %v883_v6, %v891_v8  ;;  %v10814_v18 = vcombine.low %v882_v4, %v890_v5  ;;  %v236_v4 = vld [vmem:[#allocation2 + $0x2d0] sm:$0xff]  ;;  %v229_v5 = vld [vmem:[#allocation2 + $0x298] sm:$0xff] }
 0x12e   :  { %4933 = vmatpush1.bf16.msra.mxu0 %v10686_v13  ;;  %5056 = vmatpush1.bf16.msra.mxu1 %v10688_v14  ;;  %v898_v13 = vld [vmem:[#allocation2 + $0x1780] sm:$0xff] }
 0x12f   :  { %4934 = vmatprep.subr.bf16.mxu0 %v10703_v15  ;;  %5057 = vmatprep.subr.bf16.mxu1 %v10705_v19  ;;  %v906_v14 = vld [vmem:[#allocation2 + $0x17c0] sm:$0xff]  ;;  %v899_v15 = vld [vmem:[#allocation2 + $0x1788] sm:$0xff]  ;;  %v10816_v19 = vcombine.low %v883_v6, %v891_v8 }
 0x130   :  { %v10831_v20 = vcombine.high %v898_v13, %v906_v14  ;;  %v10833_v26 = vcombine.high %v899_v15, %v907_v17  ;;  %v10832_v30 = vcombine.low %v899_v15, %v907_v17 }
 0x132   :  { %4935 = vmatpush1.bf16.msra.mxu0 %v10702_v21  ;;  %5058 = vmatpush1.bf16.msra.mxu1 %v10704_v22  ;;  %v148_v21 = vld [vmem:[#allocation2 + $0x10] sm:$0xff] }
 0x133   :  { %4936 = vmatprep.subr.bf16.mxu0 %v10719_v24  ;;  %5059 = vmatprep.subr.bf16.mxu1 %v10721_v29  ;;  %v156_v22 = vld [vmem:[#allocation2 + $0x50] sm:$0xff]  ;;  %v149_v24 = vld [vmem:[#allocation2 + $0x18] sm:$0xff]  ;;  %v10830_v29 = vcombine.low %v898_v13, %v906_v14 }
 0x134   :  { %v10085_v36 = vcombine.high %v149_v24, %v157_v28  ;;  %v10082_v39 = vcombine.low %v148_v21, %v156_v22  ;;  %v252_v13 = vld [vmem:[#allocation2 + $0x350] sm:$0xff]  ;;  %v245_v14 = vld [vmem:[#allocation2 + $0x318] sm:$0xff] }
 0x136   :  { %4937 = vmatpush1.bf16.msra.mxu0 %v10718_v31  ;;  %5060 = vmatpush1.bf16.msra.mxu1 %v10720_v32  ;;  %v10083_v31 = vcombine.high %v148_v21, %v156_v22  ;;  %v164_v32 = vld [vmem:[#allocation2 + $0x90] sm:$0xff]  ;;  %v261_v22 = vld [vmem:[#allocation2 + $0x398] sm:$0xff] }
 0x137   :  { %4938 = vmatprep.subr.bf16.mxu0 %v10735_v33  ;;  %5061 = vmatprep.subr.bf16.mxu1 %v10737_v38  ;;  %v172_v33 = vld [vmem:[#allocation2 + $0xd0] sm:$0xff]  ;;  %v12835_v38 = vpack.c.bf16 %v138_v27, %v138_v27 }
 0x138   :  { %v10098_v47 = vcombine.low %v164_v32, %v172_v33  ;;  %v268_v21 = vld [vmem:[#allocation2 + $0x3d0] sm:$0xff] }
 0x13a   :  { %4939 = vmatpush1.bf16.msra.mxu0 %v10734_v40  ;;  %5062 = vmatpush1.bf16.msra.mxu1 %v10736_v41  ;;  %v10084_v40 = vcombine.low %v149_v24, %v157_v28  ;;  %v10099_v41 = vcombine.high %v164_v32, %v172_v33  ;;  %v277_v32 = vld [vmem:[#allocation2 + $0x418] sm:$0xff] }
 0x13b   :  { %4940 = vmatprep.subr.bf16.mxu0 %v10751_v42  ;;  %5063 = vmatprep.subr.bf16.mxu1 %v10753_v46  ;;  %v180_v42 = vld [vmem:[#allocation2 + $0x110] sm:$0xff]  ;;  %v189_v46 = vld [vmem:[#allocation2 + $0x158] sm:$0xff] }
 0x13c   :  { %v10117_v53 = vcombine.high %v181_v44, %v189_v46  ;;  %v10114_v55 = vcombine.low %v180_v42, %v188_v43 }
 0x13e   :  { %4941 = vmatpush1.bf16.msra.mxu0 %v10750_v48  ;;  %5064 = vmatpush1.bf16.msra.mxu1 %v10752_v49  ;;  %v10100_v48 = vcombine.low %v165_v35, %v173_v37  ;;  %v10115_v49 = vcombine.high %v180_v42, %v188_v43  ;;  %v285_v35 = vld [vmem:[#allocation2 + $0x458] sm:$0xff] }
 0x13f   :  { %4942 = vmatprep.subr.bf16.mxu0 %v10767_v50  ;;  %5065 = vmatprep.subr.bf16.mxu1 %v10769_v54  ;;  %v196_v50 = vld [vmem:[#allocation2 + $0x190] sm:$0xff]  ;;  %v205_v54 = vld [vmem:[#allocation2 + $0x1d8] sm:$0xff]  ;;  %v10213_v43 = vcombine.high %v277_v32, %v285_v35 }
 0x140   :  { %v10133_v62 = vcombine.high %v197_v52, %v205_v54  ;;  %v10130_v0 = vcombine.low %v196_v50, %v204_v51  ;;  %v293_v42 = vld [vmem:[#allocation2 + $0x498] sm:$0xff] }
 0x142   :  { %4943 = vmatpush1.bf16.msra.mxu0 %v10766_v56  ;;  %5066 = vmatpush1.bf16.msra.mxu1 %v10768_v58  ;;  %v10116_v56 = vcombine.low %v181_v44, %v189_v46  ;;  %v10131_v58 = vcombine.high %v196_v50, %v204_v51  ;;  %v301_v44 = vld [vmem:[#allocation2 + $0x4d8] sm:$0xff]  ;;  %v10212_v46 = vcombine.low %v277_v32, %v285_v35 }
 0x143   :  { %4944 = vmatprep.subr.bf16.mxu0 %v10783_v59  ;;  %5067 = vmatprep.subr.bf16.mxu1 %v10785_v63  ;;  %v212_v59 = vld [vmem:[#allocation2 + $0x210] sm:$0xff]  ;;  %v221_v63 = vld [vmem:[#allocation2 + $0x258] sm:$0xff]  ;;  %v10229_v51 = vcombine.high %v293_v42, %v301_v44 }
 0x144   :  { %v10149_v6 = vcombine.high %v213_v61, %v221_v63  ;;  %v10146_v8 = vcombine.low %v212_v59, %v220_v60  ;;  %v309_v50 = vld [vmem:[#allocation2 + $0x518] sm:$0xff] }
 0x145   :  { %v397_v32 = vld [vmem:[#allocation2 + $0x7d8] sm:$0xff] }
 0x146   :  { %4945 = vmatpush1.bf16.msra.mxu0 %v10782_v1  ;;  %5068 = vmatpush1.bf16.msra.mxu1 %v10784_v2  ;;  %v10132_v1 = vcombine.low %v197_v52, %v205_v54  ;;  %v10147_v2 = vcombine.high %v212_v59, %v220_v60  ;;  %v317_v52 = vld [vmem:[#allocation2 + $0x558] sm:$0xff]  ;;  %v10228_v54 = vcombine.low %v293_v42, %v301_v44 }
 0x147   :  { %4946 = vmatprep.subr.bf16.mxu0 %v10799_v3  ;;  %5069 = vmatprep.subr.bf16.mxu1 %v10801_v7  ;;  %v228_v3 = vld [vmem:[#allocation2 + $0x290] sm:$0xff]  ;;  %v237_v7 = vld [vmem:[#allocation2 + $0x2d8] sm:$0xff]  ;;  %v10245_v60 = vcombine.high %v309_v50, %v317_v52 }
 0x148   :  { %v10165_v15 = vcombine.high %v229_v5, %v237_v7  ;;  %v10162_v17 = vcombine.low %v228_v3, %v236_v4  ;;  %v325_v59 = vld [vmem:[#allocation2 + $0x598] sm:$0xff] }
 0x149   :  { %v413_v42 = vld [vmem:[#allocation2 + $0x858] sm:$0xff] }
 0x14a   :  { %4947 = vmatpush1.bf16.msra.mxu0 %v10798_v9  ;;  %5070 = vmatpush1.bf16.msra.mxu1 %v10800_v10  ;;  %v10148_v9 = vcombine.low %v213_v61, %v221_v63  ;;  %v10163_v10 = vcombine.high %v228_v3, %v236_v4  ;;  %v333_v61 = vld [vmem:[#allocation2 + $0x5d8] sm:$0xff]  ;;  %v10244_v63 = vcombine.low %v309_v50, %v317_v52 }
 0x14b   :  { %4948 = vmatprep.subr.bf16.mxu0 %v10815_v11  ;;  %5071 = vmatprep.subr.bf16.mxu1 %v10817_v16  ;;  %v244_v11 = vld [vmem:[#allocation2 + $0x310] sm:$0xff]  ;;  %v253_v16 = vld [vmem:[#allocation2 + $0x358] sm:$0xff]  ;;  %v10261_v4 = vcombine.high %v325_v59, %v333_v61 }
 0x14c   :  { %v10181_v24 = vcombine.high %v245_v14, %v253_v16  ;;  %v10178_v27 = vcombine.low %v244_v11, %v252_v13  ;;  %v10180_v28 = vcombine.low %v245_v14, %v253_v16  ;;  %v341_v3 = vld [vmem:[#allocation2 + $0x618] sm:$0xff] }
 0x14d   :  { %v365_v14 = vld [vmem:[#allocation2 + $0x6d8] sm:$0xff] }
 0x14e   :  { %4949 = vmatpush1.bf16.msra.mxu0 %v10814_v18  ;;  %5072 = vmatpush1.bf16.msra.mxu1 %v10816_v19  ;;  %v10164_v18 = vcombine.low %v229_v5, %v237_v7  ;;  %v10179_v19 = vcombine.high %v244_v11, %v252_v13  ;;  %v349_v5 = vld [vmem:[#allocation2 + $0x658] sm:$0xff]  ;;  %v10260_v7 = vcombine.low %v325_v59, %v333_v61 }
 0x14f   :  { %4950 = vmatprep.subr.bf16.mxu0 %v10831_v20  ;;  %5073 = vmatprep.subr.bf16.mxu1 %v10833_v26  ;;  %v260_v20 = vld [vmem:[#allocation2 + $0x390] sm:$0xff]  ;;  %v269_v26 = vld [vmem:[#allocation2 + $0x3d8] sm:$0xff]  ;;  %v10277_v13 = vcombine.high %v341_v3, %v349_v5  ;;  %v10276_v16 = vcombine.low %v341_v3, %v349_v5 }
 0x150   :  { %v10197_v33 = vcombine.high %v261_v22, %v269_v26  ;;  %v10196_v37 = vcombine.low %v261_v22, %v269_v26  ;;  %v357_v11 = vld [vmem:[#allocation2 + $0x698] sm:$0xff] }
 0x151   :  { %v381_v22 = vld [vmem:[#allocation2 + $0x758] sm:$0xff]  ;;  %v10292_v26 = vcombine.low %v357_v11, %v365_v14 }
 0x152   :  { %4951 = vmatpush1.bf16.msra.mxu0 %v10830_v29  ;;  %5074 = vmatpush1.bf16.msra.mxu1 %v10832_v30  ;;  %v10195_v29 = vcombine.high %v260_v20, %v268_v21  ;;  %v276_v30 = vld [vmem:[#allocation2 + $0x410] sm:$0xff]  ;;  %v429_v50 = vld [vmem:[#allocation2 + $0x8d8] sm:$0xff] }
 0x153   :  { %5084 = vmatprep.subr.bf16.mxu0 %v10083_v31  ;;  %5207 = vmatprep.subr.bf16.mxu1 %v10085_v36  ;;  %v284_v31 = vld [vmem:[#allocation2 + $0x450] sm:$0xff]  ;;  %v10194_v36 = vcombine.low %v260_v20, %v268_v21  ;;  %v373_v20 = vld [vmem:[#allocation2 + $0x718] sm:$0xff]  ;;  %v10293_v21 = vcombine.high %v357_v11, %v365_v14 }
 0x154   :  { %v10308_v35 = vcombine.low %v373_v20, %v381_v22  ;;  %v445_v59 = vld [vmem:[#allocation2 + $0x958] sm:$0xff] }
 0x155   :  { %4953 = vmatmul.mubr.bf16.vlgmr.msra.gmra.mrb[0].mxu0 %v12835_v38  ;;  %5076 = vmatmul.mubr.bf16.vlgmr.msra.gmra.mrb[0].mxu1 %v12835_v38  ;;  %v461_v3 = vld [vmem:[#allocation2 + $0x9d8] sm:$0xff] }
 0x156   :  { %5085 = vmatpush1.bf16.msra.mxu0 %v10082_v39  ;;  %5208 = vmatpush1.bf16.msra.mxu1 %v10084_v40  ;;  %v10211_v39 = vcombine.high %v276_v30, %v284_v31  ;;  %v292_v40 = vld [vmem:[#allocation2 + $0x490] sm:$0xff]  ;;  %v477_v11 = vld [vmem:[#allocation2 + $0xa58] sm:$0xff] }
 0x157   :  { %5086 = vmatprep.subr.bf16.mxu0 %v10099_v41  ;;  %5209 = vmatprep.subr.bf16.mxu1 %v10101_v45  ;;  %v300_v41 = vld [vmem:[#allocation2 + $0x4d0] sm:$0xff]  ;;  %v10210_v45 = vcombine.low %v276_v30, %v284_v31  ;;  %v389_v30 = vld [vmem:[#allocation2 + $0x798] sm:$0xff]  ;;  %v10309_v31 = vcombine.high %v373_v20, %v381_v22 }
 0x158   :  { %5116 = vmatprep.mubr.bf16.mxu0 %v12800_v57  ;;  %5239 = vmatprep.mubr.bf16.mxu1 %v12800_v57  ;;  %v10324_v44 = vcombine.low %v389_v30, %v397_v32  ;;  %v493_v20 = vld [vmem:[#allocation2 + $0xad8] sm:$0xff] }
 0x15a   :  { %5087 = vmatpush1.bf16.msra.mxu0 %v10098_v47  ;;  %5210 = vmatpush1.bf16.msra.mxu1 %v10100_v48  ;;  %v10227_v47 = vcombine.high %v292_v40, %v300_v41  ;;  %v308_v48 = vld [vmem:[#allocation2 + $0x510] sm:$0xff] }
 0x15b   :  { %5088 = vmatprep.subr.bf16.mxu0 %v10115_v49  ;;  %5211 = vmatprep.subr.bf16.mxu1 %v10117_v53  ;;  %v316_v49 = vld [vmem:[#allocation2 + $0x550] sm:$0xff]  ;;  %v10226_v53 = vcombine.low %v292_v40, %v300_v41  ;;  %v405_v40 = vld [vmem:[#allocation2 + $0x818] sm:$0xff]  ;;  %v10325_v41 = vcombine.high %v389_v30, %v397_v32 }
 0x15c   :  { %v10340_v52 = vcombine.low %v405_v40, %v413_v42  ;;  %v509_v30 = vld [vmem:[#allocation2 + $0xb58] sm:$0xff] }
 0x15e   :  { %5089 = vmatpush1.bf16.msra.mxu0 %v10114_v55  ;;  %5212 = vmatpush1.bf16.msra.mxu1 %v10116_v56  ;;  %v10243_v55 = vcombine.high %v308_v48, %v316_v49  ;;  %v324_v56 = vld [vmem:[#allocation2 + $0x590] sm:$0xff] }
 0x15f   :  { %5090 = vmatprep.subr.bf16.mxu0 %v10131_v58  ;;  %5213 = vmatprep.subr.bf16.mxu1 %v10133_v62  ;;  %v332_v58 = vld [vmem:[#allocation2 + $0x5d0] sm:$0xff]  ;;  %v10242_v62 = vcombine.low %v308_v48, %v316_v49  ;;  %v421_v48 = vld [vmem:[#allocation2 + $0x898] sm:$0xff]  ;;  %v10341_v49 = vcombine.high %v405_v40, %v413_v42 }
 0x160   :  { %v10356_v61 = vcombine.low %v421_v48, %v429_v50  ;;  %v525_v40 = vld [vmem:[#allocation2 + $0xbd8] sm:$0xff] }
 0x162   :  { %5091 = vmatpush1.bf16.msra.mxu0 %v10130_v0  ;;  %5214 = vmatpush1.bf16.msra.mxu1 %v10132_v1  ;;  %v10259_v0 = vcombine.high %v324_v56, %v332_v58  ;;  %v340_v1 = vld [vmem:[#allocation2 + $0x610] sm:$0xff] }
 0x163   :  { %5092 = vmatprep.subr.bf16.mxu0 %v10147_v2  ;;  %5215 = vmatprep.subr.bf16.mxu1 %v10149_v6  ;;  %v348_v2 = vld [vmem:[#allocation2 + $0x650] sm:$0xff]  ;;  %v10258_v6 = vcombine.low %v324_v56, %v332_v58  ;;  %v437_v56 = vld [vmem:[#allocation2 + $0x918] sm:$0xff]  ;;  %v10357_v58 = vcombine.high %v421_v48, %v429_v50 }
 0x164   :  { %v10372_v5 = vcombine.low %v437_v56, %v445_v59  ;;  %v541_v48 = vld [vmem:[#allocation2 + $0xc58] sm:$0xff] }
 0x166   :  { %5093 = vmatpush1.bf16.msra.mxu0 %v10146_v8  ;;  %5216 = vmatpush1.bf16.msra.mxu1 %v10148_v9  ;;  %v10275_v8 = vcombine.high %v340_v1, %v348_v2  ;;  %v356_v9 = vld [vmem:[#allocation2 + $0x690] sm:$0xff] }
 0x167   :  { %5094 = vmatprep.subr.bf16.mxu0 %v10163_v10  ;;  %5217 = vmatprep.subr.bf16.mxu1 %v10165_v15  ;;  %v364_v10 = vld [vmem:[#allocation2 + $0x6d0] sm:$0xff]  ;;  %v10274_v15 = vcombine.low %v340_v1, %v348_v2  ;;  %v453_v1 = vld [vmem:[#allocation2 + $0x998] sm:$0xff]  ;;  %v10373_v2 = vcombine.high %v437_v56, %v445_v59 }
 0x168   :  { %v10388_v14 = vcombine.low %v453_v1, %v461_v3  ;;  %v557_v56 = vld [vmem:[#allocation2 + $0xcd8] sm:$0xff] }
 0x16a   :  { %5095 = vmatpush1.bf16.msra.mxu0 %v10162_v17  ;;  %5218 = vmatpush1.bf16.msra.mxu1 %v10164_v18  ;;  %v10291_v17 = vcombine.high %v356_v9, %v364_v10  ;;  %v372_v18 = vld [vmem:[#allocation2 + $0x710] sm:$0xff] }
 0x16b   :  { %5096 = vmatprep.subr.bf16.mxu0 %v10179_v19  ;;  %5219 = vmatprep.subr.bf16.mxu1 %v10181_v24  ;;  %v380_v19 = vld [vmem:[#allocation2 + $0x750] sm:$0xff]  ;;  %v10290_v24 = vcombine.low %v356_v9, %v364_v10  ;;  %v469_v9 = vld [vmem:[#allocation2 + $0xa18] sm:$0xff]  ;;  %v10389_v10 = vcombine.high %v453_v1, %v461_v3 }
 0x16c   :  { %v10404_v22 = vcombine.low %v469_v9, %v477_v11  ;;  %v573_v1 = vld [vmem:[#allocation2 + $0xd58] sm:$0xff] }
 0x16e   :  { %5097 = vmatpush1.bf16.msra.mxu0 %v10178_v27  ;;  %5220 = vmatpush1.bf16.msra.mxu1 %v10180_v28  ;;  %v10307_v27 = vcombine.high %v372_v18, %v380_v19  ;;  %v388_v28 = vld [vmem:[#allocation2 + $0x790] sm:$0xff] }
 0x16f   :  { %5098 = vmatprep.subr.bf16.mxu0 %v10195_v29  ;;  %5221 = vmatprep.subr.bf16.mxu1 %v10197_v33  ;;  %v396_v29 = vld [vmem:[#allocation2 + $0x7d0] sm:$0xff]  ;;  %v10306_v33 = vcombine.low %v372_v18, %v380_v19  ;;  %v485_v18 = vld [vmem:[#allocation2 + $0xa98] sm:$0xff]  ;;  %v10405_v19 = vcombine.high %v469_v9, %v477_v11 }
 0x170   :  { %v10420_v32 = vcombine.low %v485_v18, %v493_v20  ;;  %v589_v9 = vld [vmem:[#allocation2 + $0xdd8] sm:$0xff] }
 0x172   :  { %5099 = vmatpush1.bf16.msra.mxu0 %v10194_v36  ;;  %5222 = vmatpush1.bf16.msra.mxu1 %v10196_v37  ;;  %v10323_v36 = vcombine.high %v388_v28, %v396_v29  ;;  %v404_v37 = vld [vmem:[#allocation2 + $0x810] sm:$0xff] }
 0x173   :  { %5100 = vmatprep.subr.bf16.mxu0 %v10211_v39  ;;  %5223 = vmatprep.subr.bf16.mxu1 %v10213_v43  ;;  %v412_v39 = vld [vmem:[#allocation2 + $0x850] sm:$0xff]  ;;  %v10322_v43 = vcombine.low %v388_v28, %v396_v29  ;;  %v501_v28 = vld [vmem:[#allocation2 + $0xb18] sm:$0xff]  ;;  %v10421_v29 = vcombine.high %v485_v18, %v493_v20 }
 0x174   :  { %v10436_v42 = vcombine.low %v501_v28, %v509_v30  ;;  %v605_v18 = vld [vmem:[#allocation2 + $0xe58] sm:$0xff] }
 0x176   :  { %5101 = vmatpush1.bf16.msra.mxu0 %v10210_v45  ;;  %5224 = vmatpush1.bf16.msra.mxu1 %v10212_v46  ;;  %v10339_v45 = vcombine.high %v404_v37, %v412_v39  ;;  %v420_v46 = vld [vmem:[#allocation2 + $0x890] sm:$0xff] }
 0x177   :  { %5102 = vmatprep.subr.bf16.mxu0 %v10227_v47  ;;  %5225 = vmatprep.subr.bf16.mxu1 %v10229_v51  ;;  %v428_v47 = vld [vmem:[#allocation2 + $0x8d0] sm:$0xff]  ;;  %v10338_v51 = vcombine.low %v404_v37, %v412_v39  ;;  %v10437_v37 = vcombine.high %v501_v28, %v509_v30  ;;  %v517_v39 = vld [vmem:[#allocation2 + $0xb98] sm:$0xff] }
 0x178   :  { %v10452_v50 = vcombine.low %v517_v39, %v525_v40  ;;  %v621_v28 = vld [vmem:[#allocation2 + $0xed8] sm:$0xff] }
 0x17a   :  { %5103 = vmatpush1.bf16.msra.mxu0 %v10226_v53  ;;  %5226 = vmatpush1.bf16.msra.mxu1 %v10228_v54  ;;  %v10355_v53 = vcombine.high %v420_v46, %v428_v47  ;;  %v436_v54 = vld [vmem:[#allocation2 + $0x910] sm:$0xff] }
 0x17b   :  { %5104 = vmatprep.subr.bf16.mxu0 %v10243_v55  ;;  %5227 = vmatprep.subr.bf16.mxu1 %v10245_v60  ;;  %v444_v55 = vld [vmem:[#allocation2 + $0x950] sm:$0xff]  ;;  %v10354_v60 = vcombine.low %v420_v46, %v428_v47  ;;  %v533_v46 = vld [vmem:[#allocation2 + $0xc18] sm:$0xff]  ;;  %v10453_v47 = vcombine.high %v517_v39, %v525_v40 }
 0x17c   :  { %v10468_v59 = vcombine.low %v533_v46, %v541_v48 }
 0x17e   :  { %5105 = vmatpush1.bf16.msra.mxu0 %v10242_v62  ;;  %5228 = vmatpush1.bf16.msra.mxu1 %v10244_v63  ;;  %v10371_v62 = vcombine.high %v436_v54, %v444_v55  ;;  %v452_v63 = vld [vmem:[#allocation2 + $0x990] sm:$0xff] }
 0x17f   :  { %5106 = vmatprep.subr.bf16.mxu0 %v10259_v0  ;;  %5229 = vmatprep.subr.bf16.mxu1 %v10261_v4  ;;  %v460_v0 = vld [vmem:[#allocation2 + $0x9d0] sm:$0xff]  ;;  %v10370_v4 = vcombine.low %v436_v54, %v444_v55  ;;  %v549_v54 = vld [vmem:[#allocation2 + $0xc98] sm:$0xff]  ;;  %v10469_v55 = vcombine.high %v533_v46, %v541_v48 }
 0x180   :  { %v10484_v3 = vcombine.low %v549_v54, %v557_v56  ;;  %v653_v46 = vld [vmem:[#allocation2 + $0xfd8] sm:$0xff] }
 0x182   :  { %5107 = vmatpush1.bf16.msra.mxu0 %v10258_v6  ;;  %5230 = vmatpush1.bf16.msra.mxu1 %v10260_v7  ;;  %v10387_v6 = vcombine.high %v452_v63, %v460_v0  ;;  %v468_v7 = vld [vmem:[#allocation2 + $0xa10] sm:$0xff] }
 0x183   :  { %5108 = vmatprep.subr.bf16.mxu0 %v10275_v8  ;;  %5231 = vmatprep.subr.bf16.mxu1 %v10277_v13  ;;  %v476_v8 = vld [vmem:[#allocation2 + $0xa50] sm:$0xff]  ;;  %v10386_v13 = vcombine.low %v452_v63, %v460_v0  ;;  %v565_v63 = vld [vmem:[#allocation2 + $0xd18] sm:$0xff]  ;;  %v10485_v0 = vcombine.high %v549_v54, %v557_v56 }
 0x184   :  { %v10500_v11 = vcombine.low %v565_v63, %v573_v1  ;;  %v669_v54 = vld [vmem:[#allocation2 + $0x1058] sm:$0xff] }
 0x186   :  { %5109 = vmatpush1.bf16.msra.mxu0 %v10274_v15  ;;  %5232 = vmatpush1.bf16.msra.mxu1 %v10276_v16  ;;  %v10403_v15 = vcombine.high %v468_v7, %v476_v8  ;;  %v484_v16 = vld [vmem:[#allocation2 + $0xa90] sm:$0xff] }
 0x187   :  { %5110 = vmatprep.subr.bf16.mxu0 %v10291_v17  ;;  %5233 = vmatprep.subr.bf16.mxu1 %v10293_v21  ;;  %v492_v17 = vld [vmem:[#allocation2 + $0xad0] sm:$0xff]  ;;  %v10402_v21 = vcombine.low %v468_v7, %v476_v8  ;;  %v581_v7 = vld [vmem:[#allocation2 + $0xd98] sm:$0xff]  ;;  %v10501_v8 = vcombine.high %v565_v63, %v573_v1 }
 0x188   :  { %v10516_v20 = vcombine.low %v581_v7, %v589_v9  ;;  %v685_v63 = vld [vmem:[#allocation2 + $0x10d8] sm:$0xff] }
 0x18a   :  { %5111 = vmatpush1.bf16.msra.mxu0 %v10290_v24  ;;  %5234 = vmatpush1.bf16.msra.mxu1 %v10292_v26  ;;  %v10419_v24 = vcombine.high %v484_v16, %v492_v17  ;;  %v500_v26 = vld [vmem:[#allocation2 + $0xb10] sm:$0xff] }
 0x18b   :  { %5112 = vmatprep.subr.bf16.mxu0 %v10307_v27  ;;  %5235 = vmatprep.subr.bf16.mxu1 %v10309_v31  ;;  %v508_v27 = vld [vmem:[#allocation2 + $0xb50] sm:$0xff]  ;;  %v10418_v31 = vcombine.low %v484_v16, %v492_v17  ;;  %v597_v16 = vld [vmem:[#allocation2 + $0xe18] sm:$0xff]  ;;  %v10517_v17 = vcombine.high %v581_v7, %v589_v9 }
 0x18c   :  { %v10532_v30 = vcombine.low %v597_v16, %v605_v18  ;;  %v701_v7 = vld [vmem:[#allocation2 + $0x1158] sm:$0xff] }
 0x18e   :  { %5113 = vmatpush1.bf16.msra.mxu0 %v10306_v33  ;;  %5236 = vmatpush1.bf16.msra.mxu1 %v10308_v35  ;;  %v10435_v33 = vcombine.high %v500_v26, %v508_v27  ;;  %v516_v35 = vld [vmem:[#allocation2 + $0xb90] sm:$0xff] }
 0x18f   :  { %5114 = vmatprep.subr.bf16.mxu0 %v10323_v36  ;;  %5237 = vmatprep.subr.bf16.mxu1 %v10325_v41  ;;  %v524_v36 = vld [vmem:[#allocation2 + $0xbd0] sm:$0xff]  ;;  %v10434_v41 = vcombine.low %v500_v26, %v508_v27  ;;  %v613_v26 = vld [vmem:[#allocation2 + $0xe98] sm:$0xff]  ;;  %v10533_v27 = vcombine.high %v597_v16, %v605_v18 }
 0x190   :  { %v10548_v40 = vcombine.low %v613_v26, %v621_v28  ;;  %v717_v16 = vld [vmem:[#allocation2 + $0x11d8] sm:$0xff] }
 0x192   :  { %5115 = vmatpush1.bf16.msra.mxu0 %v10322_v43  ;;  %5238 = vmatpush1.bf16.msra.mxu1 %v10324_v44  ;;  %v10451_v43 = vcombine.high %v516_v35, %v524_v36  ;;  %v532_v44 = vld [vmem:[#allocation2 + $0xc10] sm:$0xff] }
 0x193   :  { %5125 = vmatprep.subr.bf16.mxu0 %v10339_v45  ;;  %5248 = vmatprep.subr.bf16.mxu1 %v10341_v49  ;;  %v540_v45 = vld [vmem:[#allocation2 + $0xc50] sm:$0xff]  ;;  %v10450_v49 = vcombine.low %v516_v35, %v524_v36  ;;  %v629_v35 = vld [vmem:[#allocation2 + $0xf18] sm:$0xff]  ;;  %v10549_v36 = vcombine.high %v613_v26, %v621_v28 }
 0x194   :  { %v733_v26 = vld [vmem:[#allocation2 + $0x1258] sm:$0xff] }
 0x195   :  { %5117 = vmatmul.mubr.bf16.vlgmr.msra.gmra.mrb[4].mxu0 %v12807_v12  ;;  %5240 = vmatmul.mubr.bf16.vlgmr.msra.gmra.mrb[4].mxu1 %v12807_v12 }
 0x196   :  { %5126 = vmatpush1.bf16.msra.mxu0 %v10338_v51  ;;  %5249 = vmatpush1.bf16.msra.mxu1 %v10340_v52  ;;  %v10467_v51 = vcombine.high %v532_v44, %v540_v45  ;;  %v548_v52 = vld [vmem:[#allocation2 + $0xc90] sm:$0xff] }
 0x197   :  { %5127 = vmatprep.subr.bf16.mxu0 %v10355_v53  ;;  %5250 = vmatprep.subr.bf16.mxu1 %v10357_v58  ;;  %v556_v53 = vld [vmem:[#allocation2 + $0xcd0] sm:$0xff]  ;;  %v10466_v58 = vcombine.low %v532_v44, %v540_v45  ;;  %v645_v44 = vld [vmem:[#allocation2 + $0xf98] sm:$0xff] }
 0x198   :  { %5157 = vmatprep.mubr.bf16.mxu0 %v12812_v23  ;;  %5280 = vmatprep.mubr.bf16.mxu1 %v12812_v23  ;;  %v10580_v56 = vcombine.low %v645_v44, %v653_v46 }
 0x19a   :  { %5128 = vmatpush1.bf16.msra.mxu0 %v10354_v60  ;;  %5251 = vmatpush1.bf16.msra.mxu1 %v10356_v61  ;;  %v10483_v60 = vcombine.high %v548_v52, %v556_v53  ;;  %v564_v61 = vld [vmem:[#allocation2 + $0xd10] sm:$0xff] }
 0x19b   :  { %5129 = vmatprep.subr.bf16.mxu0 %v10371_v62  ;;  %5252 = vmatprep.subr.bf16.mxu1 %v10373_v2  ;;  %v572_v62 = vld [vmem:[#allocation2 + $0xd50] sm:$0xff]  ;;  %v10482_v2 = vcombine.low %v548_v52, %v556_v53  ;;  %v661_v52 = vld [vmem:[#allocation2 + $0x1018] sm:$0xff]  ;;  %v10581_v53 = vcombine.high %v645_v44, %v653_v46 }
 0x19c   :  { %v10596_v1 = vcombine.low %v661_v52, %v669_v54  ;;  %v765_v44 = vld [vmem:[#allocation2 + $0x1358] sm:$0xff] }
 0x19e   :  { %5130 = vmatpush1.bf16.msra.mxu0 %v10370_v4  ;;  %5253 = vmatpush1.bf16.msra.mxu1 %v10372_v5  ;;  %v10499_v4 = vcombine.high %v564_v61, %v572_v62  ;;  %v580_v5 = vld [vmem:[#allocation2 + $0xd90] sm:$0xff] }
 0x19f   :  { %5131 = vmatprep.subr.bf16.mxu0 %v10387_v6  ;;  %5254 = vmatprep.subr.bf16.mxu1 %v10389_v10  ;;  %v588_v6 = vld [vmem:[#allocation2 + $0xdd0] sm:$0xff]  ;;  %v10498_v10 = vcombine.low %v564_v61, %v572_v62  ;;  %v677_v61 = vld [vmem:[#allocation2 + $0x1098] sm:$0xff]  ;;  %v10597_v62 = vcombine.high %v661_v52, %v669_v54 }
 0x1a0   :  { %v10612_v9 = vcombine.low %v677_v61, %v685_v63  ;;  %v781_v52 = vld [vmem:[#allocation2 + $0x13d8] sm:$0xff] }
 0x1a2   :  { %5132 = vmatpush1.bf16.msra.mxu0 %v10386_v13  ;;  %5255 = vmatpush1.bf16.msra.mxu1 %v10388_v14  ;;  %v10515_v13 = vcombine.high %v580_v5, %v588_v6  ;;  %v596_v14 = vld [vmem:[#allocation2 + $0xe10] sm:$0xff] }
 0x1a3   :  { %5133 = vmatprep.subr.bf16.mxu0 %v10403_v15  ;;  %5256 = vmatprep.subr.bf16.mxu1 %v10405_v19  ;;  %v604_v15 = vld [vmem:[#allocation2 + $0xe50] sm:$0xff]  ;;  %v10514_v19 = vcombine.low %v580_v5, %v588_v6  ;;  %v693_v5 = vld [vmem:[#allocation2 + $0x1118] sm:$0xff]  ;;  %v10613_v6 = vcombine.high %v677_v61, %v685_v63 }
 0x1a4   :  { %v10628_v18 = vcombine.low %v693_v5, %v701_v7  ;;  %v797_v61 = vld [vmem:[#allocation2 + $0x1458] sm:$0xff] }
 0x1a6   :  { %5134 = vmatpush1.bf16.msra.mxu0 %v10402_v21  ;;  %5257 = vmatpush1.bf16.msra.mxu1 %v10404_v22  ;;  %v10531_v21 = vcombine.high %v596_v14, %v604_v15  ;;  %v612_v22 = vld [vmem:[#allocation2 + $0xe90] sm:$0xff] }
 0x1a7   :  { %5135 = vmatprep.subr.bf16.mxu0 %v10419_v24  ;;  %5258 = vmatprep.subr.bf16.mxu1 %v10421_v29  ;;  %v620_v24 = vld [vmem:[#allocation2 + $0xed0] sm:$0xff]  ;;  %v10530_v29 = vcombine.low %v596_v14, %v604_v15  ;;  %v709_v14 = vld [vmem:[#allocation2 + $0x1198] sm:$0xff]  ;;  %v10629_v15 = vcombine.high %v693_v5, %v701_v7 }
 0x1a8   :  { %v10546_v39 = vcombine.low %v612_v22, %v620_v24  ;;  %v10644_v28 = vcombine.low %v709_v14, %v717_v16  ;;  %v813_v5 = vld [vmem:[#allocation2 + $0x14d8] sm:$0xff] }
 0x1aa   :  { %5136 = vmatpush1.bf16.msra.mxu0 %v10418_v31  ;;  %5259 = vmatpush1.bf16.msra.mxu1 %v10420_v32  ;;  %v10547_v31 = vcombine.high %v612_v22, %v620_v24  ;;  %v628_v32 = vld [vmem:[#allocation2 + $0xf10] sm:$0xff]  ;;  %v725_v22 = vld [vmem:[#allocation2 + $0x1218] sm:$0xff]  ;;  %v10645_v24 = vcombine.high %v709_v14, %v717_v16 }
 0x1ab   :  { %5137 = vmatprep.subr.bf16.mxu0 %v10435_v33  ;;  %5260 = vmatprep.subr.bf16.mxu1 %v10437_v37  ;;  %v636_v33 = vld [vmem:[#allocation2 + $0xf50] sm:$0xff]  ;;  %v637_v37 = vld [vmem:[#allocation2 + $0xf58] sm:$0xff] }
 0x1ac   :  { %v10565_v45 = vcombine.high %v629_v35, %v637_v37  ;;  %v10564_v48 = vcombine.low %v629_v35, %v637_v37  ;;  %v749_v35 = vld [vmem:[#allocation2 + $0x12d8] sm:$0xff]  ;;  %v10660_v37 = vcombine.low %v725_v22, %v733_v26 }
 0x1ad   :  { %v829_v14 = vld [vmem:[#allocation2 + $0x1558] sm:$0xff] }
 0x1ae   :  { %5138 = vmatpush1.bf16.msra.mxu0 %v10434_v41  ;;  %5261 = vmatpush1.bf16.msra.mxu1 %v10436_v42  ;;  %v10563_v41 = vcombine.high %v628_v32, %v636_v33  ;;  %v644_v42 = vld [vmem:[#allocation2 + $0xf90] sm:$0xff] }
 0x1af   :  { %5139 = vmatprep.subr.bf16.mxu0 %v10451_v43  ;;  %5262 = vmatprep.subr.bf16.mxu1 %v10453_v47  ;;  %v652_v43 = vld [vmem:[#allocation2 + $0xfd0] sm:$0xff]  ;;  %v10562_v47 = vcombine.low %v628_v32, %v636_v33  ;;  %v741_v32 = vld [vmem:[#allocation2 + $0x1298] sm:$0xff]  ;;  %v10661_v33 = vcombine.high %v725_v22, %v733_v26 }
 0x1b0   :  { %v10676_v46 = vcombine.low %v741_v32, %v749_v35  ;;  %v845_v22 = vld [vmem:[#allocation2 + $0x15d8] sm:$0xff] }
 0x1b2   :  { %5140 = vmatpush1.bf16.msra.mxu0 %v10450_v49  ;;  %5263 = vmatpush1.bf16.msra.mxu1 %v10452_v50  ;;  %v10579_v49 = vcombine.high %v644_v42, %v652_v43  ;;  %v660_v50 = vld [vmem:[#allocation2 + $0x1010] sm:$0xff] }
 0x1b3   :  { %5141 = vmatprep.subr.bf16.mxu0 %v10467_v51  ;;  %5264 = vmatprep.subr.bf16.mxu1 %v10469_v55  ;;  %v668_v51 = vld [vmem:[#allocation2 + $0x1050] sm:$0xff]  ;;  %v10578_v55 = vcombine.low %v644_v42, %v652_v43  ;;  %v757_v42 = vld [vmem:[#allocation2 + $0x1318] sm:$0xff]  ;;  %v10677_v43 = vcombine.high %v741_v32, %v749_v35 }
 0x1b4   :  { %v10692_v54 = vcombine.low %v757_v42, %v765_v44  ;;  %v861_v32 = vld [vmem:[#allocation2 + $0x1658] sm:$0xff] }
 0x1b6   :  { %5142 = vmatpush1.bf16.msra.mxu0 %v10466_v58  ;;  %5265 = vmatpush1.bf16.msra.mxu1 %v10468_v59  ;;  %v10595_v58 = vcombine.high %v660_v50, %v668_v51  ;;  %v676_v59 = vld [vmem:[#allocation2 + $0x1090] sm:$0xff] }
 0x1b7   :  { %5143 = vmatprep.subr.bf16.mxu0 %v10483_v60  ;;  %5266 = vmatprep.subr.bf16.mxu1 %v10485_v0  ;;  %v684_v60 = vld [vmem:[#allocation2 + $0x10d0] sm:$0xff]  ;;  %v10594_v0 = vcombine.low %v660_v50, %v668_v51  ;;  %v773_v50 = vld [vmem:[#allocation2 + $0x1398] sm:$0xff]  ;;  %v10693_v51 = vcombine.high %v757_v42, %v765_v44 }
 0x1b8   :  { %v10708_v63 = vcombine.low %v773_v50, %v781_v52  ;;  %v877_v42 = vld [vmem:[#allocation2 + $0x16d8] sm:$0xff] }
 0x1ba   :  { %5144 = vmatpush1.bf16.msra.mxu0 %v10482_v2  ;;  %5267 = vmatpush1.bf16.msra.mxu1 %v10484_v3  ;;  %v10611_v2 = vcombine.high %v676_v59, %v684_v60  ;;  %v692_v3 = vld [vmem:[#allocation2 + $0x1110] sm:$0xff] }
 0x1bb   :  { %5145 = vmatprep.subr.bf16.mxu0 %v10499_v4  ;;  %5268 = vmatprep.subr.bf16.mxu1 %v10501_v8  ;;  %v700_v4 = vld [vmem:[#allocation2 + $0x1150] sm:$0xff]  ;;  %v10610_v8 = vcombine.low %v676_v59, %v684_v60  ;;  %v789_v59 = vld [vmem:[#allocation2 + $0x1418] sm:$0xff]  ;;  %v10709_v60 = vcombine.high %v773_v50, %v781_v52 }
 0x1bc   :  { %v10724_v7 = vcombine.low %v789_v59, %v797_v61  ;;  %v893_v50 = vld [vmem:[#allocation2 + $0x1758] sm:$0xff] }
 0x1be   :  { %5146 = vmatpush1.bf16.msra.mxu0 %v10498_v10  ;;  %5269 = vmatpush1.bf16.msra.mxu1 %v10500_v11  ;;  %v10627_v10 = vcombine.high %v692_v3, %v700_v4  ;;  %v708_v11 = vld [vmem:[#allocation2 + $0x1190] sm:$0xff] }
 0x1bf   :  { %5147 = vmatprep.subr.bf16.mxu0 %v10515_v13  ;;  %5270 = vmatprep.subr.bf16.mxu1 %v10517_v17  ;;  %v716_v13 = vld [vmem:[#allocation2 + $0x11d0] sm:$0xff]  ;;  %v10626_v17 = vcombine.low %v692_v3, %v700_v4  ;;  %v805_v3 = vld [vmem:[#allocation2 + $0x1498] sm:$0xff]  ;;  %v10725_v4 = vcombine.high %v789_v59, %v797_v61 }
 0x1c0   :  { %v10740_v16 = vcombine.low %v805_v3, %v813_v5  ;;  %v909_v59 = vld [vmem:[#allocation2 + $0x17d8] sm:$0xff] }
 0x1c2   :  { %5148 = vmatpush1.bf16.msra.mxu0 %v10514_v19  ;;  %5271 = vmatpush1.bf16.msra.mxu1 %v10516_v20  ;;  %v10643_v19 = vcombine.high %v708_v11, %v716_v13  ;;  %v724_v20 = vld [vmem:[#allocation2 + $0x1210] sm:$0xff] }
 0x1c3   :  { %5149 = vmatprep.subr.bf16.mxu0 %v10531_v21  ;;  %5272 = vmatprep.subr.bf16.mxu1 %v10533_v27  ;;  %v732_v21 = vld [vmem:[#allocation2 + $0x1250] sm:$0xff]  ;;  %v10642_v27 = vcombine.low %v708_v11, %v716_v13  ;;  %v821_v11 = vld [vmem:[#allocation2 + $0x1518] sm:$0xff]  ;;  %v10741_v13 = vcombine.high %v805_v3, %v813_v5  ;;  %v159_v3 = vld [vmem:[#allocation2 + $0x68] sm:$0xff] }
 0x1c4   :  { %v10756_v26 = vcombine.low %v821_v11, %v829_v14 }
 0x1c6   :  { %5150 = vmatpush1.bf16.msra.mxu0 %v10530_v29  ;;  %5273 = vmatpush1.bf16.msra.mxu1 %v10532_v30  ;;  %v10659_v29 = vcombine.high %v724_v20, %v732_v21  ;;  %v740_v30 = vld [vmem:[#allocation2 + $0x1290] sm:$0xff] }
 0x1c7   :  { %5151 = vmatprep.subr.bf16.mxu0 %v10547_v31  ;;  %5274 = vmatprep.subr.bf16.mxu1 %v10549_v36  ;;  %v748_v31 = vld [vmem:[#allocation2 + $0x12d0] sm:$0xff]  ;;  %v10658_v36 = vcombine.low %v724_v20, %v732_v21  ;;  %v837_v20 = vld [vmem:[#allocation2 + $0x1598] sm:$0xff]  ;;  %v10757_v21 = vcombine.high %v821_v11, %v829_v14  ;;  %v175_v11 = vld [vmem:[#allocation2 + $0xe8] sm:$0xff] }
 0x1c8   :  { %v10772_v35 = vcombine.low %v837_v20, %v845_v22 }
 0x1ca   :  { %5152 = vmatpush1.bf16.msra.mxu0 %v10546_v39  ;;  %5275 = vmatpush1.bf16.msra.mxu1 %v10548_v40  ;;  %v10675_v39 = vcombine.high %v740_v30, %v748_v31  ;;  %v756_v40 = vld [vmem:[#allocation2 + $0x1310] sm:$0xff] }
 0x1cb   :  { %5153 = vmatprep.subr.bf16.mxu0 %v10563_v41  ;;  %5276 = vmatprep.subr.bf16.mxu1 %v10565_v45  ;;  %v764_v41 = vld [vmem:[#allocation2 + $0x1350] sm:$0xff]  ;;  %v10674_v45 = vcombine.low %v740_v30, %v748_v31  ;;  %v10773_v30 = vcombine.high %v837_v20, %v845_v22  ;;  %v853_v31 = vld [vmem:[#allocation2 + $0x1618] sm:$0xff]  ;;  %v191_v20 = vld [vmem:[#allocation2 + $0x168] sm:$0xff] }
 0x1cc   :  { %v10788_v44 = vcombine.low %v853_v31, %v861_v32 }
 0x1ce   :  { %5154 = vmatpush1.bf16.msra.mxu0 %v10562_v47  ;;  %5277 = vmatpush1.bf16.msra.mxu1 %v10564_v48  ;;  %v10691_v47 = vcombine.high %v756_v40, %v764_v41  ;;  %v772_v48 = vld [vmem:[#allocation2 + $0x1390] sm:$0xff] }
 0x1cf   :  { %5155 = vmatprep.subr.bf16.mxu0 %v10579_v49  ;;  %5278 = vmatprep.subr.bf16.mxu1 %v10581_v53  ;;  %v780_v49 = vld [vmem:[#allocation2 + $0x13d0] sm:$0xff]  ;;  %v10690_v53 = vcombine.low %v756_v40, %v764_v41  ;;  %v869_v41 = vld [vmem:[#allocation2 + $0x1698] sm:$0xff] }
 0x1d0   :  { %v876_v40 = vld [vmem:[#allocation2 + $0x16d0] sm:$0xff]  ;;  %v10804_v52 = vcombine.low %v869_v41, %v877_v42 }
 0x1d2   :  { %5156 = vmatpush1.bf16.msra.mxu0 %v10578_v55  ;;  %5279 = vmatpush1.bf16.msra.mxu1 %v10580_v56  ;;  %v10707_v55 = vcombine.high %v772_v48, %v780_v49  ;;  %v788_v56 = vld [vmem:[#allocation2 + $0x1410] sm:$0xff] }
 0x1d3   :  { %5166 = vmatprep.subr.bf16.mxu0 %v10595_v58  ;;  %5289 = vmatprep.subr.bf16.mxu1 %v10597_v62  ;;  %v796_v58 = vld [vmem:[#allocation2 + $0x1450] sm:$0xff]  ;;  %v10706_v62 = vcombine.low %v772_v48, %v780_v49  ;;  %v885_v49 = vld [vmem:[#allocation2 + $0x1718] sm:$0xff] }
 0x1d4   :  { %v892_v48 = vld [vmem:[#allocation2 + $0x1750] sm:$0xff]  ;;  %v10820_v61 = vcombine.low %v885_v49, %v893_v50 }
 0x1d5   :  { %5158 = vmatmul.mubr.bf16.vlgmr.msra.gmra.mrb[4].mxu0 %v12824_v25  ;;  %5281 = vmatmul.mubr.bf16.vlgmr.msra.gmra.mrb[4].mxu1 %v12824_v25 }
 0x1d6   :  { %5167 = vmatpush1.bf16.msra.mxu0 %v10594_v0  ;;  %5290 = vmatpush1.bf16.msra.mxu1 %v10596_v1  ;;  %v10723_v0 = vcombine.high %v788_v56, %v796_v58  ;;  %v804_v1 = vld [vmem:[#allocation2 + $0x1490] sm:$0xff] }
 0x1d7   :  { %5168 = vmatprep.subr.bf16.mxu0 %v10611_v2  ;;  %5291 = vmatprep.subr.bf16.mxu1 %v10613_v6  ;;  %v812_v2 = vld [vmem:[#allocation2 + $0x14d0] sm:$0xff]  ;;  %v10722_v6 = vcombine.low %v788_v56, %v796_v58  ;;  %v901_v58 = vld [vmem:[#allocation2 + $0x1798] sm:$0xff] }
 0x1d8   :  { %5198 = vmatprep.mubr.bf16.mxu0 %v12826_v34  ;;  %5321 = vmatprep.mubr.bf16.mxu1 %v12826_v34  ;;  %v908_v56 = vld [vmem:[#allocation2 + $0x17d0] sm:$0xff]  ;;  %v10836_v5 = vcombine.low %v901_v58, %v909_v59 }
 0x1da   :  { %5169 = vmatpush1.bf16.msra.mxu0 %v10610_v8  ;;  %5292 = vmatpush1.bf16.msra.mxu1 %v10612_v9  ;;  %v10739_v8 = vcombine.high %v804_v1, %v812_v2  ;;  %v820_v9 = vld [vmem:[#allocation2 + $0x1510] sm:$0xff] }
 0x1db   :  { %5170 = vmatprep.subr.bf16.mxu0 %v10627_v10  ;;  %5293 = vmatprep.subr.bf16.mxu1 %v10629_v15  ;;  %v828_v10 = vld [vmem:[#allocation2 + $0x1550] sm:$0xff]  ;;  %v10738_v15 = vcombine.low %v804_v1, %v812_v2  ;;  %v158_v1 = vld [vmem:[#allocation2 + $0x60] sm:$0xff]  ;;  %v151_v2 = vld [vmem:[#allocation2 + $0x28] sm:$0xff] }
 0x1dc   :  { %v10088_v14 = vcombine.low %v151_v2, %v159_v3 }
 0x1de   :  { %5171 = vmatpush1.bf16.msra.mxu0 %v10626_v17  ;;  %5294 = vmatpush1.bf16.msra.mxu1 %v10628_v18  ;;  %v10755_v17 = vcombine.high %v820_v9, %v828_v10  ;;  %v836_v18 = vld [vmem:[#allocation2 + $0x1590] sm:$0xff] }
 0x1df   :  { %5172 = vmatprep.subr.bf16.mxu0 %v10643_v19  ;;  %5295 = vmatprep.subr.bf16.mxu1 %v10645_v24  ;;  %v844_v19 = vld [vmem:[#allocation2 + $0x15d0] sm:$0xff]  ;;  %v10754_v24 = vcombine.low %v820_v9, %v828_v10  ;;  %v174_v9 = vld [vmem:[#allocation2 + $0xe0] sm:$0xff]  ;;  %v167_v10 = vld [vmem:[#allocation2 + $0xa8] sm:$0xff] }
 0x1e0   :  { %v10104_v22 = vcombine.low %v167_v10, %v175_v11 }
 0x1e2   :  { %5173 = vmatpush1.bf16.msra.mxu0 %v10642_v27  ;;  %5296 = vmatpush1.bf16.msra.mxu1 %v10644_v28  ;;  %v10771_v27 = vcombine.high %v836_v18, %v844_v19  ;;  %v852_v28 = vld [vmem:[#allocation2 + $0x1610] sm:$0xff] }
 0x1e3   :  { %5174 = vmatprep.subr.bf16.mxu0 %v10659_v29  ;;  %5297 = vmatprep.subr.bf16.mxu1 %v10661_v33  ;;  %v860_v29 = vld [vmem:[#allocation2 + $0x1650] sm:$0xff]  ;;  %v10770_v33 = vcombine.low %v836_v18, %v844_v19  ;;  %v190_v18 = vld [vmem:[#allocation2 + $0x160] sm:$0xff]  ;;  %v183_v19 = vld [vmem:[#allocation2 + $0x128] sm:$0xff] }
 0x1e6   :  { %5175 = vmatpush1.bf16.msra.mxu0 %v10658_v36  ;;  %5298 = vmatpush1.bf16.msra.mxu1 %v10660_v37  ;;  %v10787_v36 = vcombine.high %v852_v28, %v860_v29  ;;  %v10789_v37 = vcombine.high %v853_v31, %v861_v32  ;;  %v10120_v32 = vcombine.low %v183_v19, %v191_v20 }
 0x1e7   :  { %5176 = vmatprep.subr.bf16.mxu0 %v10675_v39  ;;  %5299 = vmatprep.subr.bf16.mxu1 %v10677_v43  ;;  %v868_v39 = vld [vmem:[#allocation2 + $0x1690] sm:$0xff]  ;;  %v10786_v43 = vcombine.low %v852_v28, %v860_v29  ;;  %v206_v28 = vld [vmem:[#allocation2 + $0x1e0] sm:$0xff]  ;;  %v199_v29 = vld [vmem:[#allocation2 + $0x1a8] sm:$0xff] }
 0x1ea   :  { %5177 = vmatpush1.bf16.msra.mxu0 %v10674_v45  ;;  %5300 = vmatpush1.bf16.msra.mxu1 %v10676_v46  ;;  %v10803_v45 = vcombine.high %v868_v39, %v876_v40  ;;  %v10805_v46 = vcombine.high %v869_v41, %v877_v42 }
 0x1eb   :  { %5178 = vmatprep.subr.bf16.mxu0 %v10691_v47  ;;  %5301 = vmatprep.subr.bf16.mxu1 %v10693_v51  ;;  %v884_v47 = vld [vmem:[#allocation2 + $0x1710] sm:$0xff]  ;;  %v10802_v51 = vcombine.low %v868_v39, %v876_v40  ;;  %v215_v39 = vld [vmem:[#allocation2 + $0x228] sm:$0xff] }
 0x1ec   :  { %v223_v40 = vld [vmem:[#allocation2 + $0x268] sm:$0xff] }
 0x1ee   :  { %5179 = vmatpush1.bf16.msra.mxu0 %v10690_v53  ;;  %5302 = vmatpush1.bf16.msra.mxu1 %v10692_v54  ;;  %v10819_v53 = vcombine.high %v884_v47, %v892_v48  ;;  %v10821_v54 = vcombine.high %v885_v49, %v893_v50  ;;  %v10152_v50 = vcombine.low %v215_v39, %v223_v40 }
 0x1ef   :  { %5180 = vmatprep.subr.bf16.mxu0 %v10707_v55  ;;  %5303 = vmatprep.subr.bf16.mxu1 %v10709_v60  ;;  %v900_v55 = vld [vmem:[#allocation2 + $0x1790] sm:$0xff]  ;;  %v10818_v60 = vcombine.low %v884_v47, %v892_v48  ;;  %v231_v47 = vld [vmem:[#allocation2 + $0x2a8] sm:$0xff] }
 0x1f0   :  { %v239_v48 = vld [vmem:[#allocation2 + $0x2e8] sm:$0xff] }
 0x1f2   :  { %5181 = vmatpush1.bf16.msra.mxu0 %v10706_v62  ;;  %5304 = vmatpush1.bf16.msra.mxu1 %v10708_v63  ;;  %v10835_v62 = vcombine.high %v900_v55, %v908_v56  ;;  %v10837_v63 = vcombine.high %v901_v58, %v909_v59  ;;  %v10168_v59 = vcombine.low %v231_v47, %v239_v48 }
 0x1f3   :  { %5182 = vmatprep.subr.bf16.mxu0 %v10723_v0  ;;  %5305 = vmatprep.subr.bf16.mxu1 %v10725_v4  ;;  %v150_v0 = vld [vmem:[#allocation2 + $0x20] sm:$0xff]  ;;  %v10834_v4 = vcombine.low %v900_v55, %v908_v56  ;;  %v247_v55 = vld [vmem:[#allocation2 + $0x328] sm:$0xff] }
 0x1f4   :  { %v255_v56 = vld [vmem:[#allocation2 + $0x368] sm:$0xff] }
 0x1f6   :  { %5183 = vmatpush1.bf16.msra.mxu0 %v10722_v6  ;;  %5306 = vmatpush1.bf16.msra.mxu1 %v10724_v7  ;;  %v10087_v6 = vcombine.high %v150_v0, %v158_v1  ;;  %v10089_v7 = vcombine.high %v151_v2, %v159_v3  ;;  %v263_v3 = vld [vmem:[#allocation2 + $0x3a8] sm:$0xff] }
 0x1f7   :  { %5184 = vmatprep.subr.bf16.mxu0 %v10739_v8  ;;  %5307 = vmatprep.subr.bf16.mxu1 %v10741_v13  ;;  %v166_v8 = vld [vmem:[#allocation2 + $0xa0] sm:$0xff]  ;;  %v10086_v13 = vcombine.low %v150_v0, %v158_v1 }
 0x1f8   :  { %v270_v0 = vld [vmem:[#allocation2 + $0x3e0] sm:$0xff] }
 0x1fa   :  { %5185 = vmatpush1.bf16.msra.mxu0 %v10738_v15  ;;  %5308 = vmatpush1.bf16.msra.mxu1 %v10740_v16  ;;  %v10103_v15 = vcombine.high %v166_v8, %v174_v9  ;;  %v10105_v16 = vcombine.high %v167_v10, %v175_v11  ;;  %v10184_v10 = vcombine.low %v247_v55, %v255_v56 }
 0x1fb   :  { %5186 = vmatprep.subr.bf16.mxu0 %v10755_v17  ;;  %5309 = vmatprep.subr.bf16.mxu1 %v10757_v21  ;;  %v182_v17 = vld [vmem:[#allocation2 + $0x120] sm:$0xff]  ;;  %v10102_v21 = vcombine.low %v166_v8, %v174_v9 }
 0x1fc   :  { %v10118_v31 = vcombine.low %v182_v17, %v190_v18 }
 0x1fe   :  { %5187 = vmatpush1.bf16.msra.mxu0 %v10754_v24  ;;  %5310 = vmatpush1.bf16.msra.mxu1 %v10756_v26  ;;  %v10119_v24 = vcombine.high %v182_v17, %v190_v18  ;;  %v10121_v26 = vcombine.high %v183_v19, %v191_v20  ;;  %v279_v17 = vld [vmem:[#allocation2 + $0x428] sm:$0xff] }
 0x1ff   :  { %5188 = vmatprep.subr.bf16.mxu0 %v10771_v27  ;;  %5311 = vmatprep.subr.bf16.mxu1 %v10773_v30  ;;  %v198_v27 = vld [vmem:[#allocation2 + $0x1a0] sm:$0xff]  ;;  %v207_v30 = vld [vmem:[#allocation2 + $0x1e8] sm:$0xff] }
 0x200   :  { %v10134_v41 = vcombine.low %v198_v27, %v206_v28  ;;  %v10136_v42 = vcombine.low %v199_v29, %v207_v30  ;;  %v287_v18 = vld [vmem:[#allocation2 + $0x468] sm:$0xff] }
 0x202   :  { %5189 = vmatpush1.bf16.msra.mxu0 %v10770_v33  ;;  %5312 = vmatpush1.bf16.msra.mxu1 %v10772_v35  ;;  %v10135_v33 = vcombine.high %v198_v27, %v206_v28  ;;  %v10137_v35 = vcombine.high %v199_v29, %v207_v30  ;;  %v295_v27 = vld [vmem:[#allocation2 + $0x4a8] sm:$0xff]  ;;  %v10216_v30 = vcombine.low %v279_v17, %v287_v18 }
 0x203   :  { %5190 = vmatprep.subr.bf16.mxu0 %v10787_v36  ;;  %5313 = vmatprep.subr.bf16.mxu1 %v10789_v37  ;;  %v214_v36 = vld [vmem:[#allocation2 + $0x220] sm:$0xff]  ;;  %v303_v28 = vld [vmem:[#allocation2 + $0x4e8] sm:$0xff] }
 0x204   :  { %v222_v37 = vld [vmem:[#allocation2 + $0x260] sm:$0xff] }
 0x205   :  { %v10150_v49 = vcombine.low %v214_v36, %v222_v37 }
 0x206   :  { %5191 = vmatpush1.bf16.msra.mxu0 %v10786_v43  ;;  %5314 = vmatpush1.bf16.msra.mxu1 %v10788_v44  ;;  %v10151_v43 = vcombine.high %v214_v36, %v222_v37  ;;  %v10153_v44 = vcombine.high %v215_v39, %v223_v40  ;;  %v311_v36 = vld [vmem:[#allocation2 + $0x528] sm:$0xff]  ;;  %v10232_v40 = vcombine.low %v295_v27, %v303_v28 }
 0x207   :  { %5192 = vmatprep.subr.bf16.mxu0 %v10803_v45  ;;  %5315 = vmatprep.subr.bf16.mxu1 %v10805_v46  ;;  %v230_v45 = vld [vmem:[#allocation2 + $0x2a0] sm:$0xff]  ;;  %v319_v37 = vld [vmem:[#allocation2 + $0x568] sm:$0xff] }
 0x208   :  { %v238_v46 = vld [vmem:[#allocation2 + $0x2e0] sm:$0xff] }
 0x209   :  { %v10166_v58 = vcombine.low %v230_v45, %v238_v46 }
 0x20a   :  { %5193 = vmatpush1.bf16.msra.mxu0 %v10802_v51  ;;  %5316 = vmatpush1.bf16.msra.mxu1 %v10804_v52  ;;  %v10167_v51 = vcombine.high %v230_v45, %v238_v46  ;;  %v10169_v52 = vcombine.high %v231_v47, %v239_v48  ;;  %v327_v45 = vld [vmem:[#allocation2 + $0x5a8] sm:$0xff]  ;;  %v10248_v48 = vcombine.low %v311_v36, %v319_v37 }
 0x20b   :  { %5194 = vmatprep.subr.bf16.mxu0 %v10819_v53  ;;  %5317 = vmatprep.subr.bf16.mxu1 %v10821_v54  ;;  %v246_v53 = vld [vmem:[#allocation2 + $0x320] sm:$0xff]  ;;  %v335_v46 = vld [vmem:[#allocation2 + $0x5e8] sm:$0xff] }
 0x20c   :  { %v254_v54 = vld [vmem:[#allocation2 + $0x360] sm:$0xff] }
 0x20e   :  { %5195 = vmatpush1.bf16.msra.mxu0 %v10818_v60  ;;  %5318 = vmatpush1.bf16.msra.mxu1 %v10820_v61  ;;  %v10183_v60 = vcombine.high %v246_v53, %v254_v54 }
 0x20f   :  { %5196 = vmatprep.subr.bf16.mxu0 %v10835_v62  ;;  %5319 = vmatprep.subr.bf16.mxu1 %v10837_v63  ;;  %v10185_v62 = vcombine.high %v247_v55, %v255_v56  ;;  %v262_v63 = vld [vmem:[#allocation2 + $0x3a0] sm:$0xff]  ;;  %v10264_v56 = vcombine.low %v327_v45, %v335_v46 }
 0x210   :  { %v10199_v11 = vcombine.high %v262_v63, %v270_v0  ;;  %v10198_v19 = vcombine.low %v262_v63, %v270_v0  ;;  %v359_v63 = vld [vmem:[#allocation2 + $0x6a8] sm:$0xff] }
 0x211   :  { %v367_v0 = vld [vmem:[#allocation2 + $0x6e8] sm:$0xff] }
 0x212   :  { %5197 = vmatpush1.bf16.msra.mxu0 %v10834_v4  ;;  %5320 = vmatpush1.bf16.msra.mxu1 %v10836_v5  ;;  %v271_v4 = vld [vmem:[#allocation2 + $0x3e8] sm:$0xff] }
 0x213   :  { %5330 = vmatprep.subr.bf16.mxu0 %v10087_v6  ;;  %5453 = vmatprep.subr.bf16.mxu1 %v10089_v7  ;;  %v10182_v7 = vcombine.low %v246_v53, %v254_v54  ;;  %v10200_v20 = vcombine.low %v263_v3, %v271_v4  ;;  %v343_v53 = vld [vmem:[#allocation2 + $0x628] sm:$0xff] }
 0x214   :  { %v351_v54 = vld [vmem:[#allocation2 + $0x668] sm:$0xff] }
 0x215   :  { %5199 = vmatmul.mubr.bf16.vlgmr.msra.gmra.mrb[4].mxu0 %v12835_v38  ;;  %5322 = vmatmul.mubr.bf16.vlgmr.msra.gmra.mrb[4].mxu1 %v12835_v38 }
 0x216   :  { %5331 = vmatpush1.bf16.msra.mxu0 %v10086_v13  ;;  %5454 = vmatpush1.bf16.msra.mxu1 %v10088_v14  ;;  %v10201_v14 = vcombine.high %v263_v3, %v271_v4  ;;  %v10280_v4 = vcombine.low %v343_v53, %v351_v54 }
 0x217   :  { %5332 = vmatprep.subr.bf16.mxu0 %v10103_v15  ;;  %5455 = vmatprep.subr.bf16.mxu1 %v10105_v16  ;;  %v278_v15 = vld [vmem:[#allocation2 + $0x420] sm:$0xff] }
 0x218   :  { %5362 = vmatprep.mubr.bf16.mxu0 %v12800_v57  ;;  %5485 = vmatprep.mubr.bf16.mxu1 %v12800_v57  ;;  %v286_v16 = vld [vmem:[#allocation2 + $0x460] sm:$0xff] }
 0x219   :  { %v10214_v29 = vcombine.low %v278_v15, %v286_v16 }
 0x21a   :  { %5333 = vmatpush1.bf16.msra.mxu0 %v10102_v21  ;;  %5456 = vmatpush1.bf16.msra.mxu1 %v10104_v22  ;;  %v10215_v21 = vcombine.high %v278_v15, %v286_v16  ;;  %v10217_v22 = vcombine.high %v279_v17, %v287_v18  ;;  %v390_v17 = vld [vmem:[#allocation2 + $0x7a0] sm:$0xff] }
 0x21b   :  { %5334 = vmatprep.subr.bf16.mxu0 %v10119_v24  ;;  %5457 = vmatprep.subr.bf16.mxu1 %v10121_v26  ;;  %v294_v24 = vld [vmem:[#allocation2 + $0x4a0] sm:$0xff] }
 0x21c   :  { %v302_v26 = vld [vmem:[#allocation2 + $0x4e0] sm:$0xff] }
 0x21d   :  { %v10230_v39 = vcombine.low %v294_v24, %v302_v26  ;;  %v398_v18 = vld [vmem:[#allocation2 + $0x7e0] sm:$0xff] }
 0x21e   :  { %5335 = vmatpush1.bf16.msra.mxu0 %v10118_v31  ;;  %5458 = vmatpush1.bf16.msra.mxu1 %v10120_v32  ;;  %v10231_v31 = vcombine.high %v294_v24, %v302_v26  ;;  %v10233_v32 = vcombine.high %v295_v27, %v303_v28  ;;  %v10327_v24 = vcombine.high %v390_v17, %v398_v18  ;;  %v406_v27 = vld [vmem:[#allocation2 + $0x820] sm:$0xff] }
 0x21f   :  { %5336 = vmatprep.subr.bf16.mxu0 %v10135_v33  ;;  %5459 = vmatprep.subr.bf16.mxu1 %v10137_v35  ;;  %v310_v33 = vld [vmem:[#allocation2 + $0x520] sm:$0xff] }
 0x220   :  { %v318_v35 = vld [vmem:[#allocation2 + $0x560] sm:$0xff] }
 0x221   :  { %v10246_v47 = vcombine.low %v310_v33, %v318_v35  ;;  %v414_v28 = vld [vmem:[#allocation2 + $0x860] sm:$0xff] }
 0x222   :  { %5337 = vmatpush1.bf16.msra.mxu0 %v10134_v41  ;;  %5460 = vmatpush1.bf16.msra.mxu1 %v10136_v42  ;;  %v10247_v41 = vcombine.high %v310_v33, %v318_v35  ;;  %v10249_v42 = vcombine.high %v311_v36, %v319_v37  ;;  %v10343_v33 = vcombine.high %v406_v27, %v414_v28  ;;  %v422_v36 = vld [vmem:[#allocation2 + $0x8a0] sm:$0xff] }
 0x223   :  { %5338 = vmatprep.subr.bf16.mxu0 %v10151_v43  ;;  %5461 = vmatprep.subr.bf16.mxu1 %v10153_v44  ;;  %v326_v43 = vld [vmem:[#allocation2 + $0x5a0] sm:$0xff] }
 0x224   :  { %v334_v44 = vld [vmem:[#allocation2 + $0x5e0] sm:$0xff] }
 0x225   :  { %v10262_v55 = vcombine.low %v326_v43, %v334_v44  ;;  %v430_v37 = vld [vmem:[#allocation2 + $0x8e0] sm:$0xff] }
 0x226   :  { %5339 = vmatpush1.bf16.msra.mxu0 %v10150_v49  ;;  %5462 = vmatpush1.bf16.msra.mxu1 %v10152_v50  ;;  %v10263_v49 = vcombine.high %v326_v43, %v334_v44  ;;  %v10265_v50 = vcombine.high %v327_v45, %v335_v46  ;;  %v10359_v43 = vcombine.high %v422_v36, %v430_v37  ;;  %v438_v45 = vld [vmem:[#allocation2 + $0x920] sm:$0xff] }
 0x227   :  { %5340 = vmatprep.subr.bf16.mxu0 %v10167_v51  ;;  %5463 = vmatprep.subr.bf16.mxu1 %v10169_v52  ;;  %v342_v51 = vld [vmem:[#allocation2 + $0x620] sm:$0xff] }
 0x228   :  { %v12853_v61 = vpop.f32.mrb[0].mxu0  ;;  %v12855_v1 = vpop.f32.mrb[0].mxu1  ;;  %v350_v52 = vld [vmem:[#allocation2 + $0x660] sm:$0xff] }
 0x229   :  { %v12857_v2 = vpop.f32.mrb[1].mxu0  ;;  %v12859_v5 = vpop.f32.mrb[1].mxu1  ;;  %v10278_v3 = vcombine.low %v342_v51, %v350_v52  ;;  %v446_v46 = vld [vmem:[#allocation2 + $0x960] sm:$0xff] }
 0x22a   :  { %v4958_v6 = vpop.f32.mrb[2].mxu0  ;;  %5341 = vmatpush1.bf16.msra.mxu0 %v10166_v58  ;;  %v5081_v8 = vpop.f32.mrb[2].mxu1  ;;  %5464 = vmatpush1.bf16.msra.mxu1 %v10168_v59  ;;  %v10279_v58 = vcombine.high %v342_v51, %v350_v52  ;;  %v10281_v59 = vcombine.high %v343_v53, %v351_v54  ;;  %v10375_v51 = vcombine.high %v438_v45, %v446_v46  ;;  %v454_v53 = vld [vmem:[#allocation2 + $0x9a0] sm:$0xff] }
 0x22b   :  { %v4959_v9 = vpop.f32.mrb[3].mxu0  ;;  %5342 = vmatprep.subr.bf16.mxu0 %v10183_v60  ;;  %v5082_v13 = vpop.f32.mrb[3].mxu1  ;;  %5465 = vmatprep.subr.bf16.mxu1 %v10185_v62  ;;  %v358_v60 = vld [vmem:[#allocation2 + $0x6a0] sm:$0xff] }
 0x22c   :  { %v366_v62 = vld [vmem:[#allocation2 + $0x6e0] sm:$0xff] }
 0x22d   :  { %v10295_v6 = vcombine.high %v358_v60, %v366_v62  ;;  %v374_v8 = vld [vmem:[#allocation2 + $0x720] sm:$0xff]  ;;  %v10294_v13 = vcombine.low %v358_v60, %v366_v62 }
 0x22e   :  { %5343 = vmatpush1.bf16.msra.mxu0 %v10182_v7  ;;  %5466 = vmatpush1.bf16.msra.mxu1 %v10184_v10  ;;  %v10297_v7 = vcombine.high %v359_v63, %v367_v0  ;;  %v382_v9 = vld [vmem:[#allocation2 + $0x760] sm:$0xff]  ;;  %v375_v10 = vld [vmem:[#allocation2 + $0x728] sm:$0xff] }
 0x22f   :  { %5344 = vmatprep.subr.bf16.mxu0 %v10199_v11  ;;  %5467 = vmatprep.subr.bf16.mxu1 %v10201_v14  ;;  %v383_v11 = vld [vmem:[#allocation2 + $0x768] sm:$0xff]  ;;  %v10296_v14 = vcombine.low %v359_v63, %v367_v0  ;;  %v10311_v15 = vcombine.high %v374_v8, %v382_v9  ;;  %v462_v54 = vld [vmem:[#allocation2 + $0x9e0] sm:$0xff] }
 0x230   :  { %v10313_v16 = vcombine.high %v375_v10, %v383_v11  ;;  %v10391_v60 = vcombine.high %v454_v53, %v462_v54  ;;  %v470_v63 = vld [vmem:[#allocation2 + $0xa20] sm:$0xff] }
 0x231   :  { %v478_v0 = vld [vmem:[#allocation2 + $0xa60] sm:$0xff] }
 0x232   :  { %5345 = vmatpush1.bf16.msra.mxu0 %v10198_v19  ;;  %5468 = vmatpush1.bf16.msra.mxu1 %v10200_v20  ;;  %v391_v19 = vld [vmem:[#allocation2 + $0x7a8] sm:$0xff] }
 0x233   :  { %5346 = vmatprep.subr.bf16.mxu0 %v10215_v21  ;;  %5469 = vmatprep.subr.bf16.mxu1 %v10217_v22  ;;  %v399_v20 = vld [vmem:[#allocation2 + $0x7e8] sm:$0xff]  ;;  %v10310_v21 = vcombine.low %v374_v8, %v382_v9  ;;  %v10312_v22 = vcombine.low %v375_v10, %v383_v11  ;;  %v10407_v8 = vcombine.high %v470_v63, %v478_v0  ;;  %v486_v10 = vld [vmem:[#allocation2 + $0xaa0] sm:$0xff] }
 0x234   :  { %v10329_v26 = vcombine.high %v391_v19, %v399_v20  ;;  %v494_v11 = vld [vmem:[#allocation2 + $0xae0] sm:$0xff] }
 0x236   :  { %5347 = vmatpush1.bf16.msra.mxu0 %v10214_v29  ;;  %5470 = vmatpush1.bf16.msra.mxu1 %v10216_v30  ;;  %v407_v29 = vld [vmem:[#allocation2 + $0x828] sm:$0xff] }
 0x237   :  { %5348 = vmatprep.subr.bf16.mxu0 %v10231_v31  ;;  %5471 = vmatprep.subr.bf16.mxu1 %v10233_v32  ;;  %v415_v30 = vld [vmem:[#allocation2 + $0x868] sm:$0xff]  ;;  %v10326_v31 = vcombine.low %v390_v17, %v398_v18  ;;  %v10328_v32 = vcombine.low %v391_v19, %v399_v20  ;;  %v10423_v17 = vcombine.high %v486_v10, %v494_v11  ;;  %v502_v19 = vld [vmem:[#allocation2 + $0xb20] sm:$0xff] }
 0x238   :  { %v10345_v35 = vcombine.high %v407_v29, %v415_v30  ;;  %v510_v20 = vld [vmem:[#allocation2 + $0xb60] sm:$0xff] }
 0x23a   :  { %5349 = vmatpush1.bf16.msra.mxu0 %v10230_v39  ;;  %5472 = vmatpush1.bf16.msra.mxu1 %v10232_v40  ;;  %v423_v39 = vld [vmem:[#allocation2 + $0x8a8] sm:$0xff] }
 0x23b   :  { %5350 = vmatprep.subr.bf16.mxu0 %v10247_v41  ;;  %5473 = vmatprep.subr.bf16.mxu1 %v10249_v42  ;;  %v431_v40 = vld [vmem:[#allocation2 + $0x8e8] sm:$0xff]  ;;  %v10342_v41 = vcombine.low %v406_v27, %v414_v28  ;;  %v10344_v42 = vcombine.low %v407_v29, %v415_v30  ;;  %v10439_v27 = vcombine.high %v502_v19, %v510_v20  ;;  %v518_v29 = vld [vmem:[#allocation2 + $0xba0] sm:$0xff] }
 0x23c   :  { %v10361_v44 = vcombine.high %v423_v39, %v431_v40  ;;  %v526_v30 = vld [vmem:[#allocation2 + $0xbe0] sm:$0xff] }
 0x23e   :  { %5351 = vmatpush1.bf16.msra.mxu0 %v10246_v47  ;;  %5474 = vmatpush1.bf16.msra.mxu1 %v10248_v48  ;;  %v439_v47 = vld [vmem:[#allocation2 + $0x928] sm:$0xff] }
 0x23f   :  { %5352 = vmatprep.subr.bf16.mxu0 %v10263_v49  ;;  %5475 = vmatprep.subr.bf16.mxu1 %v10265_v50  ;;  %v447_v48 = vld [vmem:[#allocation2 + $0x968] sm:$0xff]  ;;  %v10358_v49 = vcombine.low %v422_v36, %v430_v37  ;;  %v10360_v50 = vcombine.low %v423_v39, %v431_v40  ;;  %v10455_v36 = vcombine.high %v518_v29, %v526_v30  ;;  %v534_v39 = vld [vmem:[#allocation2 + $0xc20] sm:$0xff] }
 0x240   :  { %v10377_v52 = vcombine.high %v439_v47, %v447_v48  ;;  %v542_v40 = vld [vmem:[#allocation2 + $0xc60] sm:$0xff] }
 0x242   :  { %5353 = vmatpush1.bf16.msra.mxu0 %v10262_v55  ;;  %5476 = vmatpush1.bf16.msra.mxu1 %v10264_v56  ;;  %v455_v55 = vld [vmem:[#allocation2 + $0x9a8] sm:$0xff] }
 0x243   :  { %5354 = vmatprep.subr.bf16.mxu0 %v10279_v58  ;;  %5477 = vmatprep.subr.bf16.mxu1 %v10281_v59  ;;  %v463_v56 = vld [vmem:[#allocation2 + $0x9e8] sm:$0xff]  ;;  %v10374_v58 = vcombine.low %v438_v45, %v446_v46  ;;  %v10376_v59 = vcombine.low %v439_v47, %v447_v48  ;;  %v10471_v45 = vcombine.high %v534_v39, %v542_v40  ;;  %v550_v47 = vld [vmem:[#allocation2 + $0xca0] sm:$0xff] }
 0x244   :  { %v10393_v62 = vcombine.high %v455_v55, %v463_v56  ;;  %v558_v48 = vld [vmem:[#allocation2 + $0xce0] sm:$0xff] }
 0x246   :  { %5355 = vmatpush1.bf16.msra.mxu0 %v10278_v3  ;;  %5478 = vmatpush1.bf16.msra.mxu1 %v10280_v4  ;;  %v471_v3 = vld [vmem:[#allocation2 + $0xa28] sm:$0xff] }
 0x247   :  { %5356 = vmatprep.subr.bf16.mxu0 %v10295_v6  ;;  %5479 = vmatprep.subr.bf16.mxu1 %v10297_v7  ;;  %v479_v4 = vld [vmem:[#allocation2 + $0xa68] sm:$0xff]  ;;  %v10390_v6 = vcombine.low %v454_v53, %v462_v54  ;;  %v10392_v7 = vcombine.low %v455_v55, %v463_v56  ;;  %v10487_v53 = vcombine.high %v550_v47, %v558_v48  ;;  %v566_v55 = vld [vmem:[#allocation2 + $0xd20] sm:$0xff] }
 0x248   :  { %v10409_v9 = vcombine.high %v471_v3, %v479_v4  ;;  %v574_v56 = vld [vmem:[#allocation2 + $0xd60] sm:$0xff] }
 0x24a   :  { %5357 = vmatpush1.bf16.msra.mxu0 %v10294_v13  ;;  %5480 = vmatpush1.bf16.msra.mxu1 %v10296_v14  ;;  %v487_v13 = vld [vmem:[#allocation2 + $0xaa8] sm:$0xff] }
 0x24b   :  { %5358 = vmatprep.subr.bf16.mxu0 %v10311_v15  ;;  %5481 = vmatprep.subr.bf16.mxu1 %v10313_v16  ;;  %v495_v14 = vld [vmem:[#allocation2 + $0xae8] sm:$0xff]  ;;  %v10406_v15 = vcombine.low %v470_v63, %v478_v0  ;;  %v10408_v16 = vcombine.low %v471_v3, %v479_v4  ;;  %v10503_v63 = vcombine.high %v566_v55, %v574_v56  ;;  %v582_v3 = vld [vmem:[#allocation2 + $0xda0] sm:$0xff] }
 0x24c   :  { %v10425_v18 = vcombine.high %v487_v13, %v495_v14  ;;  %v590_v4 = vld [vmem:[#allocation2 + $0xde0] sm:$0xff] }
 0x24e   :  { %5359 = vmatpush1.bf16.msra.mxu0 %v10310_v21  ;;  %5482 = vmatpush1.bf16.msra.mxu1 %v10312_v22  ;;  %v503_v21 = vld [vmem:[#allocation2 + $0xb28] sm:$0xff] }
 0x24f   :  { %5360 = vmatprep.subr.bf16.mxu0 %v10327_v24  ;;  %5483 = vmatprep.subr.bf16.mxu1 %v10329_v26  ;;  %v511_v22 = vld [vmem:[#allocation2 + $0xb68] sm:$0xff]  ;;  %v10422_v24 = vcombine.low %v486_v10, %v494_v11  ;;  %v10424_v26 = vcombine.low %v487_v13, %v495_v14  ;;  %v10519_v10 = vcombine.high %v582_v3, %v590_v4  ;;  %v598_v13 = vld [vmem:[#allocation2 + $0xe20] sm:$0xff] }
 0x250   :  { %v10441_v28 = vcombine.high %v503_v21, %v511_v22  ;;  %v606_v14 = vld [vmem:[#allocation2 + $0xe60] sm:$0xff] }
 0x252   :  { %5361 = vmatpush1.bf16.msra.mxu0 %v10326_v31  ;;  %5484 = vmatpush1.bf16.msra.mxu1 %v10328_v32  ;;  %v519_v31 = vld [vmem:[#allocation2 + $0xba8] sm:$0xff] }
 0x253   :  { %5371 = vmatprep.subr.bf16.mxu0 %v10343_v33  ;;  %5494 = vmatprep.subr.bf16.mxu1 %v10345_v35  ;;  %v527_v32 = vld [vmem:[#allocation2 + $0xbe8] sm:$0xff]  ;;  %v10438_v33 = vcombine.low %v502_v19, %v510_v20  ;;  %v10440_v35 = vcombine.low %v503_v21, %v511_v22  ;;  %v10535_v19 = vcombine.high %v598_v13, %v606_v14  ;;  %v614_v21 = vld [vmem:[#allocation2 + $0xea0] sm:$0xff] }
 0x254   :  { %v10457_v37 = vcombine.high %v519_v31, %v527_v32  ;;  %v622_v22 = vld [vmem:[#allocation2 + $0xee0] sm:$0xff] }
 0x255   :  { %5363 = vmatmul.mubr.bf16.vlgmr.msra.gmra.mrb[8].mxu0 %v12807_v12  ;;  %5486 = vmatmul.mubr.bf16.vlgmr.msra.gmra.mrb[8].mxu1 %v12807_v12 }
 0x256   :  { %5372 = vmatpush1.bf16.msra.mxu0 %v10342_v41  ;;  %5495 = vmatpush1.bf16.msra.mxu1 %v10344_v42  ;;  %v535_v41 = vld [vmem:[#allocation2 + $0xc28] sm:$0xff] }
 0x257   :  { %5373 = vmatprep.subr.bf16.mxu0 %v10359_v43  ;;  %5496 = vmatprep.subr.bf16.mxu1 %v10361_v44  ;;  %v543_v42 = vld [vmem:[#allocation2 + $0xc68] sm:$0xff]  ;;  %v10454_v43 = vcombine.low %v518_v29, %v526_v30  ;;  %v10456_v44 = vcombine.low %v519_v31, %v527_v32  ;;  %v10551_v29 = vcombine.high %v614_v21, %v622_v22  ;;  %v630_v31 = vld [vmem:[#allocation2 + $0xf20] sm:$0xff] }
 0x258   :  { %5403 = vmatprep.mubr.bf16.mxu0 %v12812_v23  ;;  %5526 = vmatprep.mubr.bf16.mxu1 %v12812_v23  ;;  %v10473_v46 = vcombine.high %v535_v41, %v543_v42  ;;  %v638_v32 = vld [vmem:[#allocation2 + $0xf60] sm:$0xff] }
 0x25a   :  { %5374 = vmatpush1.bf16.msra.mxu0 %v10358_v49  ;;  %5497 = vmatpush1.bf16.msra.mxu1 %v10360_v50  ;;  %v551_v49 = vld [vmem:[#allocation2 + $0xca8] sm:$0xff] }
 0x25b   :  { %5375 = vmatprep.subr.bf16.mxu0 %v10375_v51  ;;  %5498 = vmatprep.subr.bf16.mxu1 %v10377_v52  ;;  %v559_v50 = vld [vmem:[#allocation2 + $0xce8] sm:$0xff]  ;;  %v10470_v51 = vcombine.low %v534_v39, %v542_v40  ;;  %v10472_v52 = vcombine.low %v535_v41, %v543_v42  ;;  %v10567_v39 = vcombine.high %v630_v31, %v638_v32  ;;  %v646_v41 = vld [vmem:[#allocation2 + $0xfa0] sm:$0xff] }
 0x25c   :  { %v10489_v54 = vcombine.high %v551_v49, %v559_v50  ;;  %v654_v42 = vld [vmem:[#allocation2 + $0xfe0] sm:$0xff] }
 0x25e   :  { %5376 = vmatpush1.bf16.msra.mxu0 %v10374_v58  ;;  %5499 = vmatpush1.bf16.msra.mxu1 %v10376_v59  ;;  %v567_v58 = vld [vmem:[#allocation2 + $0xd28] sm:$0xff] }
 0x25f   :  { %5377 = vmatprep.subr.bf16.mxu0 %v10391_v60  ;;  %5500 = vmatprep.subr.bf16.mxu1 %v10393_v62  ;;  %v575_v59 = vld [vmem:[#allocation2 + $0xd68] sm:$0xff]  ;;  %v10486_v60 = vcombine.low %v550_v47, %v558_v48  ;;  %v10488_v62 = vcombine.low %v551_v49, %v559_v50  ;;  %v10583_v47 = vcombine.high %v646_v41, %v654_v42  ;;  %v662_v49 = vld [vmem:[#allocation2 + $0x1020] sm:$0xff] }
 0x260   :  { %v10505_v0 = vcombine.high %v567_v58, %v575_v59  ;;  %v670_v50 = vld [vmem:[#allocation2 + $0x1060] sm:$0xff] }
 0x262   :  { %5378 = vmatpush1.bf16.msra.mxu0 %v10390_v6  ;;  %5501 = vmatpush1.bf16.msra.mxu1 %v10392_v7  ;;  %v583_v6 = vld [vmem:[#allocation2 + $0xda8] sm:$0xff] }
 0x263   :  { %5379 = vmatprep.subr.bf16.mxu0 %v10407_v8  ;;  %5502 = vmatprep.subr.bf16.mxu1 %v10409_v9  ;;  %v591_v7 = vld [vmem:[#allocation2 + $0xde8] sm:$0xff]  ;;  %v10502_v8 = vcombine.low %v566_v55, %v574_v56  ;;  %v10504_v9 = vcombine.low %v567_v58, %v575_v59  ;;  %v10599_v55 = vcombine.high %v662_v49, %v670_v50  ;;  %v678_v58 = vld [vmem:[#allocation2 + $0x10a0] sm:$0xff] }
 0x264   :  { %v10521_v11 = vcombine.high %v583_v6, %v591_v7  ;;  %v686_v59 = vld [vmem:[#allocation2 + $0x10e0] sm:$0xff] }
 0x266   :  { %5380 = vmatpush1.bf16.msra.mxu0 %v10406_v15  ;;  %5503 = vmatpush1.bf16.msra.mxu1 %v10408_v16  ;;  %v599_v15 = vld [vmem:[#allocation2 + $0xe28] sm:$0xff] }
 0x267   :  { %5381 = vmatprep.subr.bf16.mxu0 %v10423_v17  ;;  %5504 = vmatprep.subr.bf16.mxu1 %v10425_v18  ;;  %v607_v16 = vld [vmem:[#allocation2 + $0xe68] sm:$0xff]  ;;  %v10518_v17 = vcombine.low %v582_v3, %v590_v4  ;;  %v10520_v18 = vcombine.low %v583_v6, %v591_v7  ;;  %v10615_v3 = vcombine.high %v678_v58, %v686_v59  ;;  %v694_v6 = vld [vmem:[#allocation2 + $0x1120] sm:$0xff] }
 0x268   :  { %v10537_v20 = vcombine.high %v599_v15, %v607_v16  ;;  %v702_v7 = vld [vmem:[#allocation2 + $0x1160] sm:$0xff] }
 0x26a   :  { %5382 = vmatpush1.bf16.msra.mxu0 %v10422_v24  ;;  %5505 = vmatpush1.bf16.msra.mxu1 %v10424_v26  ;;  %v615_v24 = vld [vmem:[#allocation2 + $0xea8] sm:$0xff] }
 0x26b   :  { %5383 = vmatprep.subr.bf16.mxu0 %v10439_v27  ;;  %5506 = vmatprep.subr.bf16.mxu1 %v10441_v28  ;;  %v623_v26 = vld [vmem:[#allocation2 + $0xee8] sm:$0xff]  ;;  %v10534_v27 = vcombine.low %v598_v13, %v606_v14  ;;  %v10536_v28 = vcombine.low %v599_v15, %v607_v16  ;;  %v10631_v13 = vcombine.high %v694_v6, %v702_v7  ;;  %v710_v15 = vld [vmem:[#allocation2 + $0x11a0] sm:$0xff] }
 0x26c   :  { %v10553_v30 = vcombine.high %v615_v24, %v623_v26  ;;  %v718_v16 = vld [vmem:[#allocation2 + $0x11e0] sm:$0xff] }
 0x26e   :  { %5384 = vmatpush1.bf16.msra.mxu0 %v10438_v33  ;;  %5507 = vmatpush1.bf16.msra.mxu1 %v10440_v35  ;;  %v631_v33 = vld [vmem:[#allocation2 + $0xf28] sm:$0xff] }
 0x26f   :  { %5385 = vmatprep.subr.bf16.mxu0 %v10455_v36  ;;  %5508 = vmatprep.subr.bf16.mxu1 %v10457_v37  ;;  %v639_v35 = vld [vmem:[#allocation2 + $0xf68] sm:$0xff]  ;;  %v10550_v36 = vcombine.low %v614_v21, %v622_v22  ;;  %v10552_v37 = vcombine.low %v615_v24, %v623_v26  ;;  %v10647_v21 = vcombine.high %v710_v15, %v718_v16  ;;  %v726_v24 = vld [vmem:[#allocation2 + $0x1220] sm:$0xff] }
 0x270   :  { %v10569_v40 = vcombine.high %v631_v33, %v639_v35  ;;  %v734_v26 = vld [vmem:[#allocation2 + $0x1260] sm:$0xff] }
 0x272   :  { %5386 = vmatpush1.bf16.msra.mxu0 %v10454_v43  ;;  %5509 = vmatpush1.bf16.msra.mxu1 %v10456_v44  ;;  %v647_v43 = vld [vmem:[#allocation2 + $0xfa8] sm:$0xff] }
 0x273   :  { %5387 = vmatprep.subr.bf16.mxu0 %v10471_v45  ;;  %5510 = vmatprep.subr.bf16.mxu1 %v10473_v46  ;;  %v655_v44 = vld [vmem:[#allocation2 + $0xfe8] sm:$0xff]  ;;  %v10566_v45 = vcombine.low %v630_v31, %v638_v32  ;;  %v10568_v46 = vcombine.low %v631_v33, %v639_v35  ;;  %v10663_v31 = vcombine.high %v726_v24, %v734_v26  ;;  %v742_v33 = vld [vmem:[#allocation2 + $0x12a0] sm:$0xff] }
 0x274   :  { %v10585_v48 = vcombine.high %v647_v43, %v655_v44  ;;  %v750_v35 = vld [vmem:[#allocation2 + $0x12e0] sm:$0xff] }
 0x276   :  { %5388 = vmatpush1.bf16.msra.mxu0 %v10470_v51  ;;  %5511 = vmatpush1.bf16.msra.mxu1 %v10472_v52  ;;  %v663_v51 = vld [vmem:[#allocation2 + $0x1028] sm:$0xff] }
 0x277   :  { %5389 = vmatprep.subr.bf16.mxu0 %v10487_v53  ;;  %5512 = vmatprep.subr.bf16.mxu1 %v10489_v54  ;;  %v671_v52 = vld [vmem:[#allocation2 + $0x1068] sm:$0xff]  ;;  %v10582_v53 = vcombine.low %v646_v41, %v654_v42  ;;  %v10584_v54 = vcombine.low %v647_v43, %v655_v44  ;;  %v10679_v41 = vcombine.high %v742_v33, %v750_v35  ;;  %v758_v43 = vld [vmem:[#allocation2 + $0x1320] sm:$0xff] }
 0x278   :  { %v10601_v56 = vcombine.high %v663_v51, %v671_v52  ;;  %v766_v44 = vld [vmem:[#allocation2 + $0x1360] sm:$0xff] }
 0x27a   :  { %5390 = vmatpush1.bf16.msra.mxu0 %v10486_v60  ;;  %5513 = vmatpush1.bf16.msra.mxu1 %v10488_v62  ;;  %v679_v60 = vld [vmem:[#allocation2 + $0x10a8] sm:$0xff] }
 0x27b   :  { %5391 = vmatprep.subr.bf16.mxu0 %v10503_v63  ;;  %5514 = vmatprep.subr.bf16.mxu1 %v10505_v0  ;;  %v687_v62 = vld [vmem:[#allocation2 + $0x10e8] sm:$0xff]  ;;  %v10598_v63 = vcombine.low %v662_v49, %v670_v50  ;;  %v10600_v0 = vcombine.low %v663_v51, %v671_v52  ;;  %v10695_v49 = vcombine.high %v758_v43, %v766_v44  ;;  %v774_v51 = vld [vmem:[#allocation2 + $0x13a0] sm:$0xff] }
 0x27c   :  { %v10617_v4 = vcombine.high %v679_v60, %v687_v62  ;;  %v782_v52 = vld [vmem:[#allocation2 + $0x13e0] sm:$0xff] }
 0x27e   :  { %5392 = vmatpush1.bf16.msra.mxu0 %v10502_v8  ;;  %5515 = vmatpush1.bf16.msra.mxu1 %v10504_v9  ;;  %v695_v8 = vld [vmem:[#allocation2 + $0x1128] sm:$0xff] }
 0x27f   :  { %5393 = vmatprep.subr.bf16.mxu0 %v10519_v10  ;;  %5516 = vmatprep.subr.bf16.mxu1 %v10521_v11  ;;  %v703_v9 = vld [vmem:[#allocation2 + $0x1168] sm:$0xff]  ;;  %v10614_v10 = vcombine.low %v678_v58, %v686_v59  ;;  %v10616_v11 = vcombine.low %v679_v60, %v687_v62  ;;  %v10711_v58 = vcombine.high %v774_v51, %v782_v52  ;;  %v790_v60 = vld [vmem:[#allocation2 + $0x1420] sm:$0xff] }
 0x280   :  { %v10633_v14 = vcombine.high %v695_v8, %v703_v9  ;;  %v798_v62 = vld [vmem:[#allocation2 + $0x1460] sm:$0xff] }
 0x282   :  { %5394 = vmatpush1.bf16.msra.mxu0 %v10518_v17  ;;  %5517 = vmatpush1.bf16.msra.mxu1 %v10520_v18  ;;  %v711_v17 = vld [vmem:[#allocation2 + $0x11a8] sm:$0xff] }
 0x283   :  { %5395 = vmatprep.subr.bf16.mxu0 %v10535_v19  ;;  %5518 = vmatprep.subr.bf16.mxu1 %v10537_v20  ;;  %v719_v18 = vld [vmem:[#allocation2 + $0x11e8] sm:$0xff]  ;;  %v10630_v19 = vcombine.low %v694_v6, %v702_v7  ;;  %v10632_v20 = vcombine.low %v695_v8, %v703_v9  ;;  %v10727_v6 = vcombine.high %v790_v60, %v798_v62  ;;  %v806_v8 = vld [vmem:[#allocation2 + $0x14a0] sm:$0xff] }
 0x284   :  { %v10649_v22 = vcombine.high %v711_v17, %v719_v18  ;;  %v814_v9 = vld [vmem:[#allocation2 + $0x14e0] sm:$0xff] }
 0x286   :  { %5396 = vmatpush1.bf16.msra.mxu0 %v10534_v27  ;;  %5519 = vmatpush1.bf16.msra.mxu1 %v10536_v28  ;;  %v727_v27 = vld [vmem:[#allocation2 + $0x1228] sm:$0xff] }
 0x287   :  { %5397 = vmatprep.subr.bf16.mxu0 %v10551_v29  ;;  %5520 = vmatprep.subr.bf16.mxu1 %v10553_v30  ;;  %v735_v28 = vld [vmem:[#allocation2 + $0x1268] sm:$0xff]  ;;  %v10646_v29 = vcombine.low %v710_v15, %v718_v16  ;;  %v10648_v30 = vcombine.low %v711_v17, %v719_v18  ;;  %v10743_v15 = vcombine.high %v806_v8, %v814_v9  ;;  %v822_v17 = vld [vmem:[#allocation2 + $0x1520] sm:$0xff] }
 0x288   :  { %v10665_v32 = vcombine.high %v727_v27, %v735_v28  ;;  %v830_v18 = vld [vmem:[#allocation2 + $0x1560] sm:$0xff] }
 0x28a   :  { %5398 = vmatpush1.bf16.msra.mxu0 %v10550_v36  ;;  %5521 = vmatpush1.bf16.msra.mxu1 %v10552_v37  ;;  %v743_v36 = vld [vmem:[#allocation2 + $0x12a8] sm:$0xff] }
 0x28b   :  { %5399 = vmatprep.subr.bf16.mxu0 %v10567_v39  ;;  %5522 = vmatprep.subr.bf16.mxu1 %v10569_v40  ;;  %v751_v37 = vld [vmem:[#allocation2 + $0x12e8] sm:$0xff]  ;;  %v10662_v39 = vcombine.low %v726_v24, %v734_v26  ;;  %v10664_v40 = vcombine.low %v727_v27, %v735_v28  ;;  %v10759_v24 = vcombine.high %v822_v17, %v830_v18  ;;  %v838_v27 = vld [vmem:[#allocation2 + $0x15a0] sm:$0xff] }
 0x28c   :  { %v10681_v42 = vcombine.high %v743_v36, %v751_v37  ;;  %v846_v28 = vld [vmem:[#allocation2 + $0x15e0] sm:$0xff] }
 0x28e   :  { %5400 = vmatpush1.bf16.msra.mxu0 %v10566_v45  ;;  %5523 = vmatpush1.bf16.msra.mxu1 %v10568_v46  ;;  %v759_v45 = vld [vmem:[#allocation2 + $0x1328] sm:$0xff] }
 0x28f   :  { %5401 = vmatprep.subr.bf16.mxu0 %v10583_v47  ;;  %5524 = vmatprep.subr.bf16.mxu1 %v10585_v48  ;;  %v767_v46 = vld [vmem:[#allocation2 + $0x1368] sm:$0xff]  ;;  %v10678_v47 = vcombine.low %v742_v33, %v750_v35  ;;  %v10680_v48 = vcombine.low %v743_v36, %v751_v37  ;;  %v10775_v33 = vcombine.high %v838_v27, %v846_v28  ;;  %v854_v36 = vld [vmem:[#allocation2 + $0x1620] sm:$0xff] }
 0x290   :  { %v10697_v50 = vcombine.high %v759_v45, %v767_v46  ;;  %v862_v37 = vld [vmem:[#allocation2 + $0x1660] sm:$0xff] }
 0x292   :  { %5402 = vmatpush1.bf16.msra.mxu0 %v10582_v53  ;;  %5525 = vmatpush1.bf16.msra.mxu1 %v10584_v54  ;;  %v775_v53 = vld [vmem:[#allocation2 + $0x13a8] sm:$0xff] }
 0x293   :  { %5412 = vmatprep.subr.bf16.mxu0 %v10599_v55  ;;  %5535 = vmatprep.subr.bf16.mxu1 %v10601_v56  ;;  %v783_v54 = vld [vmem:[#allocation2 + $0x13e8] sm:$0xff]  ;;  %v10694_v55 = vcombine.low %v758_v43, %v766_v44  ;;  %v10696_v56 = vcombine.low %v759_v45, %v767_v46  ;;  %v10791_v43 = vcombine.high %v854_v36, %v862_v37  ;;  %v870_v45 = vld [vmem:[#allocation2 + $0x16a0] sm:$0xff] }
 0x294   :  { %v10713_v59 = vcombine.high %v775_v53, %v783_v54  ;;  %v878_v46 = vld [vmem:[#allocation2 + $0x16e0] sm:$0xff] }
 0x295   :  { %5404 = vmatmul.mubr.bf16.vlgmr.msra.gmra.mrb[8].mxu0 %v12824_v25  ;;  %5527 = vmatmul.mubr.bf16.vlgmr.msra.gmra.mrb[8].mxu1 %v12824_v25 }
 0x296   :  { %5413 = vmatpush1.bf16.msra.mxu0 %v10598_v63  ;;  %5536 = vmatpush1.bf16.msra.mxu1 %v10600_v0  ;;  %v791_v63 = vld [vmem:[#allocation2 + $0x1428] sm:$0xff] }
 0x297   :  { %5414 = vmatprep.subr.bf16.mxu0 %v10615_v3  ;;  %5537 = vmatprep.subr.bf16.mxu1 %v10617_v4  ;;  %v799_v0 = vld [vmem:[#allocation2 + $0x1468] sm:$0xff]  ;;  %v10710_v3 = vcombine.low %v774_v51, %v782_v52  ;;  %v10712_v4 = vcombine.low %v775_v53, %v783_v54  ;;  %v10807_v51 = vcombine.high %v870_v45, %v878_v46  ;;  %v886_v53 = vld [vmem:[#allocation2 + $0x1720] sm:$0xff] }
 0x298   :  { %5444 = vmatprep.mubr.bf16.mxu0 %v12826_v34  ;;  %5567 = vmatprep.mubr.bf16.mxu1 %v12826_v34  ;;  %v10729_v7 = vcombine.high %v791_v63, %v799_v0  ;;  %v894_v54 = vld [vmem:[#allocation2 + $0x1760] sm:$0xff] }
 0x29a   :  { %5415 = vmatpush1.bf16.msra.mxu0 %v10614_v10  ;;  %5538 = vmatpush1.bf16.msra.mxu1 %v10616_v11  ;;  %v807_v10 = vld [vmem:[#allocation2 + $0x14a8] sm:$0xff] }
 0x29b   :  { %5416 = vmatprep.subr.bf16.mxu0 %v10631_v13  ;;  %5539 = vmatprep.subr.bf16.mxu1 %v10633_v14  ;;  %v815_v11 = vld [vmem:[#allocation2 + $0x14e8] sm:$0xff]  ;;  %v10726_v13 = vcombine.low %v790_v60, %v798_v62  ;;  %v10728_v14 = vcombine.low %v791_v63, %v799_v0  ;;  %v10823_v60 = vcombine.high %v886_v53, %v894_v54  ;;  %v902_v63 = vld [vmem:[#allocation2 + $0x17a0] sm:$0xff] }
 0x29c   :  { %v10745_v16 = vcombine.high %v807_v10, %v815_v11  ;;  %v910_v0 = vld [vmem:[#allocation2 + $0x17e0] sm:$0xff] }
 0x29e   :  { %5417 = vmatpush1.bf16.msra.mxu0 %v10630_v19  ;;  %5540 = vmatpush1.bf16.msra.mxu1 %v10632_v20  ;;  %v823_v19 = vld [vmem:[#allocation2 + $0x1528] sm:$0xff] }
 0x29f   :  { %5418 = vmatprep.subr.bf16.mxu0 %v10647_v21  ;;  %5541 = vmatprep.subr.bf16.mxu1 %v10649_v22  ;;  %v831_v20 = vld [vmem:[#allocation2 + $0x1568] sm:$0xff]  ;;  %v10742_v21 = vcombine.low %v806_v8, %v814_v9  ;;  %v10744_v22 = vcombine.low %v807_v10, %v815_v11  ;;  %v10839_v8 = vcombine.high %v902_v63, %v910_v0  ;;  %v152_v10 = vld [vmem:[#allocation2 + $0x30] sm:$0xff] }
 0x2a0   :  { %v10761_v26 = vcombine.high %v823_v19, %v831_v20  ;;  %v160_v11 = vld [vmem:[#allocation2 + $0x70] sm:$0xff] }
 0x2a2   :  { %5419 = vmatpush1.bf16.msra.mxu0 %v10646_v29  ;;  %5542 = vmatpush1.bf16.msra.mxu1 %v10648_v30  ;;  %v839_v29 = vld [vmem:[#allocation2 + $0x15a8] sm:$0xff] }
 0x2a3   :  { %5420 = vmatprep.subr.bf16.mxu0 %v10663_v31  ;;  %5543 = vmatprep.subr.bf16.mxu1 %v10665_v32  ;;  %v847_v30 = vld [vmem:[#allocation2 + $0x15e8] sm:$0xff]  ;;  %v10758_v31 = vcombine.low %v822_v17, %v830_v18  ;;  %v10760_v32 = vcombine.low %v823_v19, %v831_v20  ;;  %v10091_v17 = vcombine.high %v152_v10, %v160_v11  ;;  %v168_v19 = vld [vmem:[#allocation2 + $0xb0] sm:$0xff] }
 0x2a4   :  { %v10777_v35 = vcombine.high %v839_v29, %v847_v30  ;;  %v176_v20 = vld [vmem:[#allocation2 + $0xf0] sm:$0xff] }
 0x2a6   :  { %5421 = vmatpush1.bf16.msra.mxu0 %v10662_v39  ;;  %5544 = vmatpush1.bf16.msra.mxu1 %v10664_v40  ;;  %v855_v39 = vld [vmem:[#allocation2 + $0x1628] sm:$0xff] }
 0x2a7   :  { %5422 = vmatprep.subr.bf16.mxu0 %v10679_v41  ;;  %5545 = vmatprep.subr.bf16.mxu1 %v10681_v42  ;;  %v863_v40 = vld [vmem:[#allocation2 + $0x1668] sm:$0xff]  ;;  %v10774_v41 = vcombine.low %v838_v27, %v846_v28  ;;  %v10776_v42 = vcombine.low %v839_v29, %v847_v30  ;;  %v10107_v27 = vcombine.high %v168_v19, %v176_v20  ;;  %v184_v29 = vld [vmem:[#allocation2 + $0x130] sm:$0xff] }
 0x2a8   :  { %v10793_v44 = vcombine.high %v855_v39, %v863_v40  ;;  %v192_v30 = vld [vmem:[#allocation2 + $0x170] sm:$0xff] }
 0x2aa   :  { %5423 = vmatpush1.bf16.msra.mxu0 %v10678_v47  ;;  %5546 = vmatpush1.bf16.msra.mxu1 %v10680_v48  ;;  %v871_v47 = vld [vmem:[#allocation2 + $0x16a8] sm:$0xff] }
 0x2ab   :  { %5424 = vmatprep.subr.bf16.mxu0 %v10695_v49  ;;  %5547 = vmatprep.subr.bf16.mxu1 %v10697_v50  ;;  %v879_v48 = vld [vmem:[#allocation2 + $0x16e8] sm:$0xff]  ;;  %v10790_v49 = vcombine.low %v854_v36, %v862_v37  ;;  %v10792_v50 = vcombine.low %v855_v39, %v863_v40  ;;  %v10123_v36 = vcombine.high %v184_v29, %v192_v30  ;;  %v200_v39 = vld [vmem:[#allocation2 + $0x1b0] sm:$0xff] }
 0x2ac   :  { %v10809_v52 = vcombine.high %v871_v47, %v879_v48  ;;  %v208_v40 = vld [vmem:[#allocation2 + $0x1f0] sm:$0xff] }
 0x2ae   :  { %5425 = vmatpush1.bf16.msra.mxu0 %v10694_v55  ;;  %5548 = vmatpush1.bf16.msra.mxu1 %v10696_v56  ;;  %v887_v55 = vld [vmem:[#allocation2 + $0x1728] sm:$0xff] }
 0x2af   :  { %5426 = vmatprep.subr.bf16.mxu0 %v10711_v58  ;;  %5549 = vmatprep.subr.bf16.mxu1 %v10713_v59  ;;  %v895_v56 = vld [vmem:[#allocation2 + $0x1768] sm:$0xff]  ;;  %v10806_v58 = vcombine.low %v870_v45, %v878_v46  ;;  %v10808_v59 = vcombine.low %v871_v47, %v879_v48  ;;  %v10139_v45 = vcombine.high %v200_v39, %v208_v40  ;;  %v216_v47 = vld [vmem:[#allocation2 + $0x230] sm:$0xff] }
 0x2b0   :  { %v10825_v62 = vcombine.high %v887_v55, %v895_v56  ;;  %v224_v48 = vld [vmem:[#allocation2 + $0x270] sm:$0xff] }
 0x2b2   :  { %5427 = vmatpush1.bf16.msra.mxu0 %v10710_v3  ;;  %5550 = vmatpush1.bf16.msra.mxu1 %v10712_v4  ;;  %v903_v3 = vld [vmem:[#allocation2 + $0x17a8] sm:$0xff] }
 0x2b3   :  { %5428 = vmatprep.subr.bf16.mxu0 %v10727_v6  ;;  %5551 = vmatprep.subr.bf16.mxu1 %v10729_v7  ;;  %v911_v4 = vld [vmem:[#allocation2 + $0x17e8] sm:$0xff]  ;;  %v10822_v6 = vcombine.low %v886_v53, %v894_v54  ;;  %v10824_v7 = vcombine.low %v887_v55, %v895_v56  ;;  %v10155_v53 = vcombine.high %v216_v47, %v224_v48  ;;  %v232_v54 = vld [vmem:[#allocation2 + $0x2b0] sm:$0xff]  ;;  %v233_v56 = vld [vmem:[#allocation2 + $0x2b8] sm:$0xff] }
 0x2b4   :  { %v10841_v9 = vcombine.high %v903_v3, %v911_v4  ;;  %v240_v55 = vld [vmem:[#allocation2 + $0x2f0] sm:$0xff] }
 0x2b6   :  { %5429 = vmatpush1.bf16.msra.mxu0 %v10726_v13  ;;  %5552 = vmatpush1.bf16.msra.mxu1 %v10728_v14  ;;  %v153_v13 = vld [vmem:[#allocation2 + $0x38] sm:$0xff] }
 0x2b7   :  { %5430 = vmatprep.subr.bf16.mxu0 %v10743_v15  ;;  %5553 = vmatprep.subr.bf16.mxu1 %v10745_v16  ;;  %v161_v14 = vld [vmem:[#allocation2 + $0x78] sm:$0xff]  ;;  %v10838_v15 = vcombine.low %v902_v63, %v910_v0  ;;  %v10840_v16 = vcombine.low %v903_v3, %v911_v4  ;;  %v248_v0 = vld [vmem:[#allocation2 + $0x330] sm:$0xff] }
 0x2b8   :  { %v10093_v18 = vcombine.high %v153_v13, %v161_v14  ;;  %v256_v3 = vld [vmem:[#allocation2 + $0x370] sm:$0xff]  ;;  %v249_v4 = vld [vmem:[#allocation2 + $0x338] sm:$0xff] }
 0x2ba   :  { %5431 = vmatpush1.bf16.msra.mxu0 %v10742_v21  ;;  %5554 = vmatpush1.bf16.msra.mxu1 %v10744_v22  ;;  %v169_v21 = vld [vmem:[#allocation2 + $0xb8] sm:$0xff] }
 0x2bb   :  { %5432 = vmatprep.subr.bf16.mxu0 %v10759_v24  ;;  %5555 = vmatprep.subr.bf16.mxu1 %v10761_v26  ;;  %v177_v22 = vld [vmem:[#allocation2 + $0xf8] sm:$0xff]  ;;  %v10090_v24 = vcombine.low %v152_v10, %v160_v11  ;;  %v10092_v26 = vcombine.low %v153_v13, %v161_v14  ;;  %v264_v13 = vld [vmem:[#allocation2 + $0x3b0] sm:$0xff] }
 0x2bc   :  { %v10109_v28 = vcombine.high %v169_v21, %v177_v22  ;;  %v272_v14 = vld [vmem:[#allocation2 + $0x3f0] sm:$0xff] }
 0x2be   :  { %5433 = vmatpush1.bf16.msra.mxu0 %v10758_v31  ;;  %5556 = vmatpush1.bf16.msra.mxu1 %v10760_v32  ;;  %v185_v31 = vld [vmem:[#allocation2 + $0x138] sm:$0xff] }
 0x2bf   :  { %5434 = vmatprep.subr.bf16.mxu0 %v10775_v33  ;;  %5557 = vmatprep.subr.bf16.mxu1 %v10777_v35  ;;  %v193_v32 = vld [vmem:[#allocation2 + $0x178] sm:$0xff]  ;;  %v10106_v33 = vcombine.low %v168_v19, %v176_v20  ;;  %v10108_v35 = vcombine.low %v169_v21, %v177_v22  ;;  %v10186_v21 = vcombine.low %v248_v0, %v256_v3 }
 0x2c0   :  { %v10125_v37 = vcombine.high %v185_v31, %v193_v32 }
 0x2c2   :  { %5435 = vmatpush1.bf16.msra.mxu0 %v10774_v41  ;;  %5558 = vmatpush1.bf16.msra.mxu1 %v10776_v42  ;;  %v201_v41 = vld [vmem:[#allocation2 + $0x1b8] sm:$0xff] }
 0x2c3   :  { %5436 = vmatprep.subr.bf16.mxu0 %v10791_v43  ;;  %5559 = vmatprep.subr.bf16.mxu1 %v10793_v44  ;;  %v209_v42 = vld [vmem:[#allocation2 + $0x1f8] sm:$0xff]  ;;  %v10122_v43 = vcombine.low %v184_v29, %v192_v30  ;;  %v10124_v44 = vcombine.low %v185_v31, %v193_v32  ;;  %v280_v30 = vld [vmem:[#allocation2 + $0x430] sm:$0xff] }
 0x2c4   :  { %v10141_v46 = vcombine.high %v201_v41, %v209_v42  ;;  %v288_v31 = vld [vmem:[#allocation2 + $0x470] sm:$0xff]  ;;  %v281_v32 = vld [vmem:[#allocation2 + $0x438] sm:$0xff] }
 0x2c6   :  { %5437 = vmatpush1.bf16.msra.mxu0 %v10790_v49  ;;  %5560 = vmatpush1.bf16.msra.mxu1 %v10792_v50  ;;  %v217_v49 = vld [vmem:[#allocation2 + $0x238] sm:$0xff] }
 0x2c7   :  { %5438 = vmatprep.subr.bf16.mxu0 %v10807_v51  ;;  %5561 = vmatprep.subr.bf16.mxu1 %v10809_v52  ;;  %v225_v50 = vld [vmem:[#allocation2 + $0x278] sm:$0xff]  ;;  %v10138_v51 = vcombine.low %v200_v39, %v208_v40  ;;  %v10140_v52 = vcombine.low %v201_v41, %v209_v42  ;;  %v296_v40 = vld [vmem:[#allocation2 + $0x4b0] sm:$0xff] }
 0x2c8   :  { %v304_v41 = vld [vmem:[#allocation2 + $0x4f0] sm:$0xff]  ;;  %v297_v42 = vld [vmem:[#allocation2 + $0x4b8] sm:$0xff] }
 0x2ca   :  { %5439 = vmatpush1.bf16.msra.mxu0 %v10806_v58  ;;  %5562 = vmatpush1.bf16.msra.mxu1 %v10808_v59  ;;  %v241_v58 = vld [vmem:[#allocation2 + $0x2f8] sm:$0xff]  ;;  %v10154_v59 = vcombine.low %v216_v47, %v224_v48  ;;  %v312_v48 = vld [vmem:[#allocation2 + $0x530] sm:$0xff] }
 0x2cb   :  { %5440 = vmatprep.subr.bf16.mxu0 %v10823_v60  ;;  %5563 = vmatprep.subr.bf16.mxu1 %v10825_v62  ;;  %v10156_v60 = vcombine.low %v217_v49, %v225_v50  ;;  %v10171_v62 = vcombine.high %v232_v54, %v240_v55  ;;  %v10173_v63 = vcombine.high %v233_v56, %v241_v58 }
 0x2ce   :  { %5441 = vmatpush1.bf16.msra.mxu0 %v10822_v6  ;;  %5564 = vmatpush1.bf16.msra.mxu1 %v10824_v7  ;;  %v257_v6 = vld [vmem:[#allocation2 + $0x378] sm:$0xff]  ;;  %v10170_v7 = vcombine.low %v232_v54, %v240_v55  ;;  %v328_v55 = vld [vmem:[#allocation2 + $0x5b0] sm:$0xff] }
 0x2cf   :  { %5442 = vmatprep.subr.bf16.mxu0 %v10839_v8  ;;  %5565 = vmatprep.subr.bf16.mxu1 %v10841_v9  ;;  %v10172_v8 = vcombine.low %v233_v56, %v241_v58  ;;  %v10187_v9 = vcombine.high %v248_v0, %v256_v3  ;;  %v10189_v11 = vcombine.high %v249_v4, %v257_v6  ;;  %v336_v56 = vld [vmem:[#allocation2 + $0x5f0] sm:$0xff]  ;;  %v329_v58 = vld [vmem:[#allocation2 + $0x5b8] sm:$0xff] }
 0x2d0   :  { %v344_v3 = vld [vmem:[#allocation2 + $0x630] sm:$0xff] }
 0x2d2   :  { %5443 = vmatpush1.bf16.msra.mxu0 %v10838_v15  ;;  %5566 = vmatpush1.bf16.msra.mxu1 %v10840_v16 }
 0x2d3   :  { %5576 = vmatprep.subr.bf16.mxu0 %v10091_v17  ;;  %5699 = vmatprep.subr.bf16.mxu1 %v10093_v18  ;;  %v265_v17 = vld [vmem:[#allocation2 + $0x3b8] sm:$0xff] }
 0x2d4   :  { %v273_v18 = vld [vmem:[#allocation2 + $0x3f8] sm:$0xff] }
 0x2d5   :  { %5445 = vmatmul.mubr.bf16.vlgmr.msra.gmra.mrb[8].mxu0 %v12835_v38  ;;  %5568 = vmatmul.mubr.bf16.vlgmr.msra.gmra.mrb[8].mxu1 %v12835_v38  ;;  %v10205_v29 = vcombine.high %v265_v17, %v273_v18 }
 0x2d6   :  { %5577 = vmatpush1.bf16.msra.mxu0 %v10090_v24  ;;  %5700 = vmatpush1.bf16.msra.mxu1 %v10092_v26  ;;  %v10188_v26 = vcombine.low %v249_v4, %v257_v6  ;;  %v352_v4 = vld [vmem:[#allocation2 + $0x670] sm:$0xff]  ;;  %v345_v6 = vld [vmem:[#allocation2 + $0x638] sm:$0xff] }
 0x2d7   :  { %5578 = vmatprep.subr.bf16.mxu0 %v10107_v27  ;;  %5701 = vmatprep.subr.bf16.mxu1 %v10109_v28  ;;  %v10203_v27 = vcombine.high %v264_v13, %v272_v14 }
 0x2d8   :  { %5608 = vmatprep.mubr.bf16.mxu0 %v12800_v57  ;;  %5731 = vmatprep.mubr.bf16.mxu1 %v12800_v57  ;;  %v10157_v57 = vcombine.high %v217_v49, %v225_v50  ;;  %v320_v49 = vld [vmem:[#allocation2 + $0x570] sm:$0xff]  ;;  %v313_v50 = vld [vmem:[#allocation2 + $0x538] sm:$0xff] }
 0x2da   :  { %5579 = vmatpush1.bf16.msra.mxu0 %v10106_v33  ;;  %5702 = vmatpush1.bf16.msra.mxu1 %v10108_v35  ;;  %v289_v33 = vld [vmem:[#allocation2 + $0x478] sm:$0xff]  ;;  %v10202_v35 = vcombine.low %v264_v13, %v272_v14  ;;  %v360_v14 = vld [vmem:[#allocation2 + $0x6b0] sm:$0xff] }
 0x2db   :  { %5580 = vmatprep.subr.bf16.mxu0 %v10123_v36  ;;  %5703 = vmatprep.subr.bf16.mxu1 %v10125_v37  ;;  %v10204_v36 = vcombine.low %v265_v17, %v273_v18  ;;  %v10219_v37 = vcombine.high %v280_v30, %v288_v31  ;;  %v10221_v39 = vcombine.high %v281_v32, %v289_v33  ;;  %v368_v17 = vld [vmem:[#allocation2 + $0x6f0] sm:$0xff]  ;;  %v361_v18 = vld [vmem:[#allocation2 + $0x6b8] sm:$0xff] }
 0x2de   :  { %5581 = vmatpush1.bf16.msra.mxu0 %v10122_v43  ;;  %5704 = vmatpush1.bf16.msra.mxu1 %v10124_v44  ;;  %v305_v43 = vld [vmem:[#allocation2 + $0x4f8] sm:$0xff]  ;;  %v10218_v44 = vcombine.low %v280_v30, %v288_v31  ;;  %v10298_v31 = vcombine.low %v360_v14, %v368_v17 }
 0x2df   :  { %5582 = vmatprep.subr.bf16.mxu0 %v10139_v45  ;;  %5705 = vmatprep.subr.bf16.mxu1 %v10141_v46  ;;  %v10220_v45 = vcombine.low %v281_v32, %v289_v33  ;;  %v10235_v46 = vcombine.high %v296_v40, %v304_v41  ;;  %v10237_v47 = vcombine.high %v297_v42, %v305_v43  ;;  %v385_v30 = vld [vmem:[#allocation2 + $0x778] sm:$0xff] }
 0x2e2   :  { %5583 = vmatpush1.bf16.msra.mxu0 %v10138_v51  ;;  %5706 = vmatpush1.bf16.msra.mxu1 %v10140_v52  ;;  %v321_v51 = vld [vmem:[#allocation2 + $0x578] sm:$0xff]  ;;  %v10234_v52 = vcombine.low %v296_v40, %v304_v41 }
 0x2e3   :  { %5584 = vmatprep.subr.bf16.mxu0 %v10155_v53  ;;  %5707 = vmatprep.subr.bf16.mxu1 %v10157_v57  ;;  %v10236_v53 = vcombine.low %v297_v42, %v305_v43  ;;  %v10251_v57 = vcombine.high %v312_v48, %v320_v49  ;;  %v10253_v54 = vcombine.high %v313_v50, %v321_v51  ;;  %v401_v40 = vld [vmem:[#allocation2 + $0x7f8] sm:$0xff] }
 0x2e6   :  { %5585 = vmatpush1.bf16.msra.mxu0 %v10154_v59  ;;  %5708 = vmatpush1.bf16.msra.mxu1 %v10156_v60  ;;  %v337_v59 = vld [vmem:[#allocation2 + $0x5f8] sm:$0xff]  ;;  %v10250_v60 = vcombine.low %v312_v48, %v320_v49 }
 0x2e7   :  { %5586 = vmatprep.subr.bf16.mxu0 %v10171_v62  ;;  %5709 = vmatprep.subr.bf16.mxu1 %v10173_v63  ;;  %v10252_v62 = vcombine.low %v313_v50, %v321_v51  ;;  %v10267_v63 = vcombine.high %v328_v55, %v336_v56  ;;  %v10269_v0 = vcombine.high %v329_v58, %v337_v59  ;;  %v417_v48 = vld [vmem:[#allocation2 + $0x878] sm:$0xff] }
 0x2e8   :  { %v12873_v10 = vpop.f32.mrb[4].mxu0  ;;  %v12875_v15 = vpop.f32.mrb[4].mxu1 }
 0x2e9   :  { %v12877_v16 = vpop.f32.mrb[5].mxu0  ;;  %v12879_v19 = vpop.f32.mrb[5].mxu1 }
 0x2ea   :  { %v5204_v20 = vpop.f32.mrb[6].mxu0  ;;  %5587 = vmatpush1.bf16.msra.mxu0 %v10170_v7  ;;  %v5327_v22 = vpop.f32.mrb[6].mxu1  ;;  %5710 = vmatpush1.bf16.msra.mxu1 %v10172_v8  ;;  %v353_v7 = vld [vmem:[#allocation2 + $0x678] sm:$0xff]  ;;  %v10266_v8 = vcombine.low %v328_v55, %v336_v56 }
 0x2eb   :  { %v5205_v24 = vpop.f32.mrb[7].mxu0  ;;  %5588 = vmatprep.subr.bf16.mxu0 %v10187_v9  ;;  %v5328_v28 = vpop.f32.mrb[7].mxu1  ;;  %5711 = vmatprep.subr.bf16.mxu1 %v10189_v11  ;;  %v10268_v9 = vcombine.low %v329_v58, %v337_v59  ;;  %v10283_v11 = vcombine.high %v344_v3, %v352_v4  ;;  %v10285_v13 = vcombine.high %v345_v6, %v353_v7  ;;  %v369_v20 = vld [vmem:[#allocation2 + $0x6f8] sm:$0xff] }
 0x2ec   :  { %v10284_v22 = vcombine.low %v345_v6, %v353_v7  ;;  %v10299_v24 = vcombine.high %v360_v14, %v368_v17  ;;  %v384_v28 = vld [vmem:[#allocation2 + $0x770] sm:$0xff]  ;;  %v10300_v32 = vcombine.low %v361_v18, %v369_v20  ;;  %v433_v55 = vld [vmem:[#allocation2 + $0x8f8] sm:$0xff] }
 0x2ed   :  { %v465_v14 = vld [vmem:[#allocation2 + $0x9f8] sm:$0xff] }
 0x2ee   :  { %5589 = vmatpush1.bf16.msra.mxu0 %v10186_v21  ;;  %5712 = vmatpush1.bf16.msra.mxu1 %v10188_v26  ;;  %v10282_v21 = vcombine.low %v344_v3, %v352_v4  ;;  %v10301_v26 = vcombine.high %v361_v18, %v369_v20  ;;  %v449_v3 = vld [vmem:[#allocation2 + $0x978] sm:$0xff] }
 0x2ef   :  { %5590 = vmatprep.subr.bf16.mxu0 %v10203_v27  ;;  %5713 = vmatprep.subr.bf16.mxu1 %v10205_v29  ;;  %v376_v27 = vld [vmem:[#allocation2 + $0x730] sm:$0xff]  ;;  %v377_v29 = vld [vmem:[#allocation2 + $0x738] sm:$0xff] }
 0x2f0   :  { %v10315_v33 = vcombine.high %v376_v27, %v384_v28  ;;  %v10314_v41 = vcombine.low %v376_v27, %v384_v28  ;;  %v10316_v42 = vcombine.low %v377_v29, %v385_v30 }
 0x2f2   :  { %5591 = vmatpush1.bf16.msra.mxu0 %v10202_v35  ;;  %5714 = vmatpush1.bf16.msra.mxu1 %v10204_v36  ;;  %v10317_v35 = vcombine.high %v377_v29, %v385_v30  ;;  %v392_v36 = vld [vmem:[#allocation2 + $0x7b0] sm:$0xff] }
 0x2f3   :  { %5592 = vmatprep.subr.bf16.mxu0 %v10219_v37  ;;  %5715 = vmatprep.subr.bf16.mxu1 %v10221_v39  ;;  %v400_v37 = vld [vmem:[#allocation2 + $0x7f0] sm:$0xff]  ;;  %v393_v39 = vld [vmem:[#allocation2 + $0x7b8] sm:$0xff] }
 0x2f4   :  { %v10331_v43 = vcombine.high %v392_v36, %v400_v37  ;;  %v10330_v49 = vcombine.low %v392_v36, %v400_v37  ;;  %v10332_v50 = vcombine.low %v393_v39, %v401_v40  ;;  %v488_v30 = vld [vmem:[#allocation2 + $0xab0] sm:$0xff] }
 0x2f6   :  { %5593 = vmatpush1.bf16.msra.mxu0 %v10218_v44  ;;  %5716 = vmatpush1.bf16.msra.mxu1 %v10220_v45  ;;  %v10333_v44 = vcombine.high %v393_v39, %v401_v40  ;;  %v408_v45 = vld [vmem:[#allocation2 + $0x830] sm:$0xff] }
 0x2f7   :  { %5594 = vmatprep.subr.bf16.mxu0 %v10235_v46  ;;  %5717 = vmatprep.subr.bf16.mxu1 %v10237_v47  ;;  %v416_v46 = vld [vmem:[#allocation2 + $0x870] sm:$0xff]  ;;  %v409_v47 = vld [vmem:[#allocation2 + $0x838] sm:$0xff] }
 0x2f8   :  { %v10347_v51 = vcombine.high %v408_v45, %v416_v46  ;;  %v10346_v56 = vcombine.low %v408_v45, %v416_v46  ;;  %v10348_v58 = vcombine.low %v409_v47, %v417_v48  ;;  %v504_v40 = vld [vmem:[#allocation2 + $0xb30] sm:$0xff] }
 0x2fa   :  { %5595 = vmatpush1.bf16.msra.mxu0 %v10234_v52  ;;  %5718 = vmatpush1.bf16.msra.mxu1 %v10236_v53  ;;  %v10349_v52 = vcombine.high %v409_v47, %v417_v48  ;;  %v424_v53 = vld [vmem:[#allocation2 + $0x8b0] sm:$0xff] }
 0x2fb   :  { %5596 = vmatprep.subr.bf16.mxu0 %v10251_v57  ;;  %5719 = vmatprep.subr.bf16.mxu1 %v10253_v54  ;;  %v432_v57 = vld [vmem:[#allocation2 + $0x8f0] sm:$0xff]  ;;  %v425_v54 = vld [vmem:[#allocation2 + $0x8b8] sm:$0xff] }
 0x2fc   :  { %v10363_v59 = vcombine.high %v424_v53, %v432_v57  ;;  %v10362_v4 = vcombine.low %v424_v53, %v432_v57  ;;  %v10364_v6 = vcombine.low %v425_v54, %v433_v55  ;;  %v520_v48 = vld [vmem:[#allocation2 + $0xbb0] sm:$0xff] }
 0x2fe   :  { %5597 = vmatpush1.bf16.msra.mxu0 %v10250_v60  ;;  %5720 = vmatpush1.bf16.msra.mxu1 %v10252_v62  ;;  %v10365_v60 = vcombine.high %v425_v54, %v433_v55  ;;  %v440_v62 = vld [vmem:[#allocation2 + $0x930] sm:$0xff] }
 0x2ff   :  { %5598 = vmatprep.subr.bf16.mxu0 %v10267_v63  ;;  %5721 = vmatprep.subr.bf16.mxu1 %v10269_v0  ;;  %v448_v63 = vld [vmem:[#allocation2 + $0x970] sm:$0xff]  ;;  %v441_v0 = vld [vmem:[#allocation2 + $0x938] sm:$0xff] }
 0x300   :  { %v10379_v7 = vcombine.high %v440_v62, %v448_v63  ;;  %v10378_v17 = vcombine.low %v440_v62, %v448_v63  ;;  %v536_v55 = vld [vmem:[#allocation2 + $0xc30] sm:$0xff] }
 0x302   :  { %5599 = vmatpush1.bf16.msra.mxu0 %v10266_v8  ;;  %5722 = vmatpush1.bf16.msra.mxu1 %v10268_v9  ;;  %v10381_v8 = vcombine.high %v441_v0, %v449_v3  ;;  %v456_v9 = vld [vmem:[#allocation2 + $0x9b0] sm:$0xff] }
 0x303   :  { %5600 = vmatprep.subr.bf16.mxu0 %v10283_v11  ;;  %5723 = vmatprep.subr.bf16.mxu1 %v10285_v13  ;;  %v464_v11 = vld [vmem:[#allocation2 + $0x9f0] sm:$0xff]  ;;  %v457_v13 = vld [vmem:[#allocation2 + $0x9b8] sm:$0xff] }
 0x304   :  { %v10395_v18 = vcombine.high %v456_v9, %v464_v11  ;;  %v10397_v20 = vcombine.high %v457_v13, %v465_v14  ;;  %v10394_v27 = vcombine.low %v456_v9, %v464_v11  ;;  %v10396_v28 = vcombine.low %v457_v13, %v465_v14  ;;  %v568_v14 = vld [vmem:[#allocation2 + $0xd30] sm:$0xff] }
 0x306   :  { %5601 = vmatpush1.bf16.msra.mxu0 %v10282_v21  ;;  %5724 = vmatpush1.bf16.msra.mxu1 %v10284_v22  ;;  %v472_v21 = vld [vmem:[#allocation2 + $0xa30] sm:$0xff] }
 0x307   :  { %5602 = vmatprep.subr.bf16.mxu0 %v10299_v24  ;;  %5725 = vmatprep.subr.bf16.mxu1 %v10301_v26  ;;  %v480_v22 = vld [vmem:[#allocation2 + $0xa70] sm:$0xff]  ;;  %v473_v24 = vld [vmem:[#allocation2 + $0xa38] sm:$0xff] }
 0x308   :  { %v481_v26 = vld [vmem:[#allocation2 + $0xa78] sm:$0xff]  ;;  %v10411_v29 = vcombine.high %v472_v21, %v480_v22 }
 0x309   :  { %v10412_v36 = vcombine.low %v473_v24, %v481_v26 }
 0x30a   :  { %5603 = vmatpush1.bf16.msra.mxu0 %v10298_v31  ;;  %5726 = vmatpush1.bf16.msra.mxu1 %v10300_v32  ;;  %v496_v31 = vld [vmem:[#allocation2 + $0xaf0] sm:$0xff]  ;;  %v489_v32 = vld [vmem:[#allocation2 + $0xab8] sm:$0xff] }
 0x30b   :  { %5604 = vmatprep.subr.bf16.mxu0 %v10315_v33  ;;  %5727 = vmatprep.subr.bf16.mxu1 %v10317_v35  ;;  %v497_v33 = vld [vmem:[#allocation2 + $0xaf8] sm:$0xff]  ;;  %v10410_v35 = vcombine.low %v472_v21, %v480_v22  ;;  %v10427_v37 = vcombine.high %v488_v30, %v496_v31 }
 0x30c   :  { %v10429_v39 = vcombine.high %v489_v32, %v497_v33  ;;  %v10428_v45 = vcombine.low %v489_v32, %v497_v33  ;;  %v600_v33 = vld [vmem:[#allocation2 + $0xe30] sm:$0xff] }
 0x30e   :  { %5605 = vmatpush1.bf16.msra.mxu0 %v10314_v41  ;;  %5728 = vmatpush1.bf16.msra.mxu1 %v10316_v42  ;;  %v512_v41 = vld [vmem:[#allocation2 + $0xb70] sm:$0xff]  ;;  %v505_v42 = vld [vmem:[#allocation2 + $0xb38] sm:$0xff] }
 0x30f   :  { %5606 = vmatprep.subr.bf16.mxu0 %v10331_v43  ;;  %5729 = vmatprep.subr.bf16.mxu1 %v10333_v44  ;;  %v513_v43 = vld [vmem:[#allocation2 + $0xb78] sm:$0xff]  ;;  %v10426_v44 = vcombine.low %v488_v30, %v496_v31  ;;  %v10443_v46 = vcombine.high %v504_v40, %v512_v41 }
 0x310   :  { %v10445_v47 = vcombine.high %v505_v42, %v513_v43  ;;  %v10444_v53 = vcombine.low %v505_v42, %v513_v43  ;;  %v616_v43 = vld [vmem:[#allocation2 + $0xeb0] sm:$0xff] }
 0x312   :  { %5607 = vmatpush1.bf16.msra.mxu0 %v10330_v49  ;;  %5730 = vmatpush1.bf16.msra.mxu1 %v10332_v50  ;;  %v528_v49 = vld [vmem:[#allocation2 + $0xbf0] sm:$0xff]  ;;  %v521_v50 = vld [vmem:[#allocation2 + $0xbb8] sm:$0xff] }
 0x313   :  { %5617 = vmatprep.subr.bf16.mxu0 %v10347_v51  ;;  %5740 = vmatprep.subr.bf16.mxu1 %v10349_v52  ;;  %v529_v51 = vld [vmem:[#allocation2 + $0xbf8] sm:$0xff]  ;;  %v10442_v52 = vcombine.low %v504_v40, %v512_v41  ;;  %v10459_v57 = vcombine.high %v520_v48, %v528_v49 }
 0x314   :  { %v10461_v54 = vcombine.high %v521_v50, %v529_v51  ;;  %v10460_v62 = vcombine.low %v521_v50, %v529_v51  ;;  %v632_v51 = vld [vmem:[#allocation2 + $0xf30] sm:$0xff] }
 0x315   :  { %5609 = vmatmul.mubr.bf16.vlgmr.msra.gmra.mrb[12].mxu0 %v12807_v12  ;;  %5732 = vmatmul.mubr.bf16.vlgmr.msra.gmra.mrb[12].mxu1 %v12807_v12  ;;  %v10380_v12 = vcombine.low %v441_v0, %v449_v3  ;;  %v552_v3 = vld [vmem:[#allocation2 + $0xcb0] sm:$0xff] }
 0x316   :  { %5618 = vmatpush1.bf16.msra.mxu0 %v10346_v56  ;;  %5741 = vmatpush1.bf16.msra.mxu1 %v10348_v58  ;;  %v544_v56 = vld [vmem:[#allocation2 + $0xc70] sm:$0xff]  ;;  %v537_v58 = vld [vmem:[#allocation2 + $0xc38] sm:$0xff] }
 0x317   :  { %5619 = vmatprep.subr.bf16.mxu0 %v10363_v59  ;;  %5742 = vmatprep.subr.bf16.mxu1 %v10365_v60  ;;  %v545_v59 = vld [vmem:[#allocation2 + $0xc78] sm:$0xff]  ;;  %v10458_v60 = vcombine.low %v520_v48, %v528_v49  ;;  %v10475_v63 = vcombine.high %v536_v55, %v544_v56 }
 0x318   :  { %5649 = vmatprep.mubr.bf16.mxu0 %v12812_v23  ;;  %5772 = vmatprep.mubr.bf16.mxu1 %v12812_v23  ;;  %v10413_v23 = vcombine.high %v473_v24, %v481_v26  ;;  %v10477_v0 = vcombine.high %v537_v58, %v545_v59  ;;  %v10476_v9 = vcombine.low %v537_v58, %v545_v59  ;;  %v584_v26 = vld [vmem:[#allocation2 + $0xdb0] sm:$0xff] }
 0x319   :  { %v648_v59 = vld [vmem:[#allocation2 + $0xfb0] sm:$0xff] }
 0x31a   :  { %5620 = vmatpush1.bf16.msra.mxu0 %v10362_v4  ;;  %5743 = vmatpush1.bf16.msra.mxu1 %v10364_v6  ;;  %v560_v4 = vld [vmem:[#allocation2 + $0xcf0] sm:$0xff]  ;;  %v553_v6 = vld [vmem:[#allocation2 + $0xcb8] sm:$0xff] }
 0x31b   :  { %5621 = vmatprep.subr.bf16.mxu0 %v10379_v7  ;;  %5744 = vmatprep.subr.bf16.mxu1 %v10381_v8  ;;  %v561_v7 = vld [vmem:[#allocation2 + $0xcf8] sm:$0xff]  ;;  %v10474_v8 = vcombine.low %v536_v55, %v544_v56  ;;  %v10491_v11 = vcombine.high %v552_v3, %v560_v4 }
 0x31c   :  { %v10493_v13 = vcombine.high %v553_v6, %v561_v7  ;;  %v10492_v21 = vcombine.low %v553_v6, %v561_v7  ;;  %v664_v7 = vld [vmem:[#allocation2 + $0x1030] sm:$0xff] }
 0x31e   :  { %5622 = vmatpush1.bf16.msra.mxu0 %v10378_v17  ;;  %5745 = vmatpush1.bf16.msra.mxu1 %v10380_v12  ;;  %v576_v17 = vld [vmem:[#allocation2 + $0xd70] sm:$0xff]  ;;  %v569_v12 = vld [vmem:[#allocation2 + $0xd38] sm:$0xff] }
 0x31f   :  { %5623 = vmatprep.subr.bf16.mxu0 %v10395_v18  ;;  %5746 = vmatprep.subr.bf16.mxu1 %v10397_v20  ;;  %v577_v18 = vld [vmem:[#allocation2 + $0xd78] sm:$0xff]  ;;  %v10490_v20 = vcombine.low %v552_v3, %v560_v4  ;;  %v10507_v22 = vcombine.high %v568_v14, %v576_v17 }
 0x320   :  { %v10509_v24 = vcombine.high %v569_v12, %v577_v18  ;;  %v10508_v30 = vcombine.low %v569_v12, %v577_v18  ;;  %v680_v18 = vld [vmem:[#allocation2 + $0x10b0] sm:$0xff] }
 0x322   :  { %5624 = vmatpush1.bf16.msra.mxu0 %v10394_v27  ;;  %5747 = vmatpush1.bf16.msra.mxu1 %v10396_v28  ;;  %v592_v27 = vld [vmem:[#allocation2 + $0xdf0] sm:$0xff]  ;;  %v585_v28 = vld [vmem:[#allocation2 + $0xdb8] sm:$0xff] }
 0x323   :  { %5625 = vmatprep.subr.bf16.mxu0 %v10411_v29  ;;  %5748 = vmatprep.subr.bf16.mxu1 %v10413_v23  ;;  %v593_v29 = vld [vmem:[#allocation2 + $0xdf8] sm:$0xff]  ;;  %v10506_v23 = vcombine.low %v568_v14, %v576_v17  ;;  %v10523_v31 = vcombine.high %v584_v26, %v592_v27 }
 0x324   :  { %v10525_v32 = vcombine.high %v585_v28, %v593_v29  ;;  %v10524_v40 = vcombine.low %v585_v28, %v593_v29  ;;  %v696_v29 = vld [vmem:[#allocation2 + $0x1130] sm:$0xff] }
 0x326   :  { %5626 = vmatpush1.bf16.msra.mxu0 %v10410_v35  ;;  %5749 = vmatpush1.bf16.msra.mxu1 %v10412_v36  ;;  %v608_v35 = vld [vmem:[#allocation2 + $0xe70] sm:$0xff]  ;;  %v601_v36 = vld [vmem:[#allocation2 + $0xe38] sm:$0xff] }
 0x327   :  { %5627 = vmatprep.subr.bf16.mxu0 %v10427_v37  ;;  %5750 = vmatprep.subr.bf16.mxu1 %v10429_v39  ;;  %v609_v37 = vld [vmem:[#allocation2 + $0xe78] sm:$0xff]  ;;  %v10522_v39 = vcombine.low %v584_v26, %v592_v27  ;;  %v10539_v41 = vcombine.high %v600_v33, %v608_v35 }
 0x328   :  { %v10541_v42 = vcombine.high %v601_v36, %v609_v37  ;;  %v10540_v48 = vcombine.low %v601_v36, %v609_v37  ;;  %v712_v37 = vld [vmem:[#allocation2 + $0x11b0] sm:$0xff] }
 0x32a   :  { %5628 = vmatpush1.bf16.msra.mxu0 %v10426_v44  ;;  %5751 = vmatpush1.bf16.msra.mxu1 %v10428_v45  ;;  %v624_v44 = vld [vmem:[#allocation2 + $0xef0] sm:$0xff]  ;;  %v617_v45 = vld [vmem:[#allocation2 + $0xeb8] sm:$0xff] }
 0x32b   :  { %5629 = vmatprep.subr.bf16.mxu0 %v10443_v46  ;;  %5752 = vmatprep.subr.bf16.mxu1 %v10445_v47  ;;  %v625_v46 = vld [vmem:[#allocation2 + $0xef8] sm:$0xff]  ;;  %v10538_v47 = vcombine.low %v600_v33, %v608_v35  ;;  %v10555_v49 = vcombine.high %v616_v43, %v624_v44 }
 0x32c   :  { %v10557_v50 = vcombine.high %v617_v45, %v625_v46  ;;  %v10556_v55 = vcombine.low %v617_v45, %v625_v46  ;;  %v728_v45 = vld [vmem:[#allocation2 + $0x1230] sm:$0xff] }
 0x32d   :  { %v736_v46 = vld [vmem:[#allocation2 + $0x1270] sm:$0xff] }
 0x32e   :  { %5630 = vmatpush1.bf16.msra.mxu0 %v10442_v52  ;;  %5753 = vmatpush1.bf16.msra.mxu1 %v10444_v53  ;;  %v640_v52 = vld [vmem:[#allocation2 + $0xf70] sm:$0xff]  ;;  %v633_v53 = vld [vmem:[#allocation2 + $0xf38] sm:$0xff] }
 0x32f   :  { %5631 = vmatprep.subr.bf16.mxu0 %v10459_v57  ;;  %5754 = vmatprep.subr.bf16.mxu1 %v10461_v54  ;;  %v641_v57 = vld [vmem:[#allocation2 + $0xf78] sm:$0xff]  ;;  %v10554_v54 = vcombine.low %v616_v43, %v624_v44  ;;  %v10571_v56 = vcombine.high %v632_v51, %v640_v52 }
 0x330   :  { %v10573_v58 = vcombine.high %v633_v53, %v641_v57  ;;  %v10572_v3 = vcombine.low %v633_v53, %v641_v57  ;;  %v752_v53 = vld [vmem:[#allocation2 + $0x12f0] sm:$0xff]  ;;  %v745_v57 = vld [vmem:[#allocation2 + $0x12b8] sm:$0xff] }
 0x332   :  { %5632 = vmatpush1.bf16.msra.mxu0 %v10458_v60  ;;  %5755 = vmatpush1.bf16.msra.mxu1 %v10460_v62  ;;  %v656_v60 = vld [vmem:[#allocation2 + $0xff0] sm:$0xff]  ;;  %v649_v62 = vld [vmem:[#allocation2 + $0xfb8] sm:$0xff] }
 0x333   :  { %5633 = vmatprep.subr.bf16.mxu0 %v10475_v63  ;;  %5756 = vmatprep.subr.bf16.mxu1 %v10477_v0  ;;  %v657_v63 = vld [vmem:[#allocation2 + $0xff8] sm:$0xff]  ;;  %v10570_v0 = vcombine.low %v632_v51, %v640_v52  ;;  %v10587_v4 = vcombine.high %v648_v59, %v656_v60  ;;  %v10667_v51 = vcombine.high %v728_v45, %v736_v46  ;;  %v744_v52 = vld [vmem:[#allocation2 + $0x12b0] sm:$0xff] }
 0x334   :  { %v10589_v6 = vcombine.high %v649_v62, %v657_v63  ;;  %v10588_v14 = vcombine.low %v649_v62, %v657_v63  ;;  %v768_v62 = vld [vmem:[#allocation2 + $0x1370] sm:$0xff]  ;;  %v761_v63 = vld [vmem:[#allocation2 + $0x1338] sm:$0xff] }
 0x336   :  { %5634 = vmatpush1.bf16.msra.mxu0 %v10474_v8  ;;  %5757 = vmatpush1.bf16.msra.mxu1 %v10476_v9  ;;  %v672_v8 = vld [vmem:[#allocation2 + $0x1070] sm:$0xff]  ;;  %v665_v9 = vld [vmem:[#allocation2 + $0x1038] sm:$0xff] }
 0x337   :  { %5635 = vmatprep.subr.bf16.mxu0 %v10491_v11  ;;  %5758 = vmatprep.subr.bf16.mxu1 %v10493_v13  ;;  %v673_v11 = vld [vmem:[#allocation2 + $0x1078] sm:$0xff]  ;;  %v10586_v13 = vcombine.low %v648_v59, %v656_v60  ;;  %v10603_v17 = vcombine.high %v664_v7, %v672_v8  ;;  %v760_v60 = vld [vmem:[#allocation2 + $0x1330] sm:$0xff] }
 0x338   :  { %v10605_v12 = vcombine.high %v665_v9, %v673_v11  ;;  %v10604_v26 = vcombine.low %v665_v9, %v673_v11  ;;  %v784_v9 = vld [vmem:[#allocation2 + $0x13f0] sm:$0xff]  ;;  %v777_v11 = vld [vmem:[#allocation2 + $0x13b8] sm:$0xff] }
 0x33a   :  { %5636 = vmatpush1.bf16.msra.mxu0 %v10490_v20  ;;  %5759 = vmatpush1.bf16.msra.mxu1 %v10492_v21  ;;  %v688_v20 = vld [vmem:[#allocation2 + $0x10f0] sm:$0xff]  ;;  %v681_v21 = vld [vmem:[#allocation2 + $0x10b8] sm:$0xff] }
 0x33b   :  { %5637 = vmatprep.subr.bf16.mxu0 %v10507_v22  ;;  %5760 = vmatprep.subr.bf16.mxu1 %v10509_v24  ;;  %v689_v22 = vld [vmem:[#allocation2 + $0x10f8] sm:$0xff]  ;;  %v10602_v24 = vcombine.low %v664_v7, %v672_v8  ;;  %v10619_v27 = vcombine.high %v680_v18, %v688_v20  ;;  %v776_v8 = vld [vmem:[#allocation2 + $0x13b0] sm:$0xff] }
 0x33c   :  { %v10621_v28 = vcombine.high %v681_v21, %v689_v22  ;;  %v10620_v33 = vcombine.low %v681_v21, %v689_v22  ;;  %v800_v21 = vld [vmem:[#allocation2 + $0x1470] sm:$0xff]  ;;  %v793_v22 = vld [vmem:[#allocation2 + $0x1438] sm:$0xff] }
 0x33e   :  { %5638 = vmatpush1.bf16.msra.mxu0 %v10506_v23  ;;  %5761 = vmatpush1.bf16.msra.mxu1 %v10508_v30  ;;  %v704_v23 = vld [vmem:[#allocation2 + $0x1170] sm:$0xff]  ;;  %v697_v30 = vld [vmem:[#allocation2 + $0x1138] sm:$0xff] }
 0x33f   :  { %5639 = vmatprep.subr.bf16.mxu0 %v10523_v31  ;;  %5762 = vmatprep.subr.bf16.mxu1 %v10525_v32  ;;  %v705_v31 = vld [vmem:[#allocation2 + $0x1178] sm:$0xff]  ;;  %v10618_v32 = vcombine.low %v680_v18, %v688_v20  ;;  %v10635_v35 = vcombine.high %v696_v29, %v704_v23  ;;  %v792_v20 = vld [vmem:[#allocation2 + $0x1430] sm:$0xff] }
 0x340   :  { %v10637_v36 = vcombine.high %v697_v30, %v705_v31 }
 0x342   :  { %5640 = vmatpush1.bf16.msra.mxu0 %v10522_v39  ;;  %5763 = vmatpush1.bf16.msra.mxu1 %v10524_v40  ;;  %v720_v39 = vld [vmem:[#allocation2 + $0x11f0] sm:$0xff]  ;;  %v713_v40 = vld [vmem:[#allocation2 + $0x11b8] sm:$0xff] }
 0x343   :  { %5641 = vmatprep.subr.bf16.mxu0 %v10539_v41  ;;  %5764 = vmatprep.subr.bf16.mxu1 %v10541_v42  ;;  %v721_v41 = vld [vmem:[#allocation2 + $0x11f8] sm:$0xff]  ;;  %v10634_v42 = vcombine.low %v696_v29, %v704_v23  ;;  %v10651_v43 = vcombine.high %v712_v37, %v720_v39  ;;  %v808_v23 = vld [vmem:[#allocation2 + $0x14b0] sm:$0xff] }
 0x344   :  { %v10653_v44 = vcombine.high %v713_v40, %v721_v41 }
 0x346   :  { %5642 = vmatpush1.bf16.msra.mxu0 %v10538_v47  ;;  %5765 = vmatpush1.bf16.msra.mxu1 %v10540_v48  ;;  %v729_v47 = vld [vmem:[#allocation2 + $0x1238] sm:$0xff] }
 0x347   :  { %5643 = vmatprep.subr.bf16.mxu0 %v10555_v49  ;;  %5766 = vmatprep.subr.bf16.mxu1 %v10557_v50  ;;  %v737_v48 = vld [vmem:[#allocation2 + $0x1278] sm:$0xff]  ;;  %v10650_v49 = vcombine.low %v712_v37, %v720_v39  ;;  %v10652_v50 = vcombine.low %v713_v40, %v721_v41  ;;  %v824_v39 = vld [vmem:[#allocation2 + $0x1530] sm:$0xff] }
 0x348   :  { %v832_v40 = vld [vmem:[#allocation2 + $0x1570] sm:$0xff]  ;;  %v825_v41 = vld [vmem:[#allocation2 + $0x1538] sm:$0xff] }
 0x34a   :  { %5644 = vmatpush1.bf16.msra.mxu0 %v10554_v54  ;;  %5767 = vmatpush1.bf16.msra.mxu1 %v10556_v55  ;;  %v753_v54 = vld [vmem:[#allocation2 + $0x12f8] sm:$0xff]  ;;  %v10666_v55 = vcombine.low %v728_v45, %v736_v46  ;;  %v840_v46 = vld [vmem:[#allocation2 + $0x15b0] sm:$0xff] }
 0x34b   :  { %5645 = vmatprep.subr.bf16.mxu0 %v10571_v56  ;;  %5768 = vmatprep.subr.bf16.mxu1 %v10573_v58  ;;  %v10668_v56 = vcombine.low %v729_v47, %v737_v48  ;;  %v10683_v58 = vcombine.high %v744_v52, %v752_v53  ;;  %v10685_v59 = vcombine.high %v745_v57, %v753_v54 }
 0x34e   :  { %5646 = vmatpush1.bf16.msra.mxu0 %v10570_v0  ;;  %5769 = vmatpush1.bf16.msra.mxu1 %v10572_v3  ;;  %v769_v0 = vld [vmem:[#allocation2 + $0x1378] sm:$0xff]  ;;  %v10682_v3 = vcombine.low %v744_v52, %v752_v53  ;;  %v856_v53 = vld [vmem:[#allocation2 + $0x1630] sm:$0xff] }
 0x34f   :  { %5647 = vmatprep.subr.bf16.mxu0 %v10587_v4  ;;  %5770 = vmatprep.subr.bf16.mxu1 %v10589_v6  ;;  %v10684_v4 = vcombine.low %v745_v57, %v753_v54  ;;  %v10699_v6 = vcombine.high %v760_v60, %v768_v62  ;;  %v10701_v7 = vcombine.high %v761_v63, %v769_v0  ;;  %v864_v57 = vld [vmem:[#allocation2 + $0x1670] sm:$0xff]  ;;  %v918_v54 = vlaneseq }
 0x352   :  { %5648 = vmatpush1.bf16.msra.mxu0 %v10586_v13  ;;  %5771 = vmatpush1.bf16.msra.mxu1 %v10588_v14  ;;  %v785_v13 = vld [vmem:[#allocation2 + $0x13f8] sm:$0xff]  ;;  %v10698_v14 = vcombine.low %v760_v60, %v768_v62  ;;  %v10795_v60 = vcombine.high %v856_v53, %v864_v57 }
 0x353   :  { %5658 = vmatprep.subr.bf16.mxu0 %v10603_v17  ;;  %5781 = vmatprep.subr.bf16.mxu1 %v10605_v12  ;;  %v10700_v17 = vcombine.low %v761_v63, %v769_v0  ;;  %v10715_v12 = vcombine.high %v776_v8, %v784_v9  ;;  %v10717_v18 = vcombine.high %v777_v11, %v785_v13  ;;  %v872_v63 = vld [vmem:[#allocation2 + $0x16b0] sm:$0xff] }
 0x354   :  { %v880_v0 = vld [vmem:[#allocation2 + $0x16f0] sm:$0xff] }
 0x355   :  { %5650 = vmatmul.mubr.bf16.vlgmr.msra.gmra.mrb[12].mxu0 %v12824_v25  ;;  %5773 = vmatmul.mubr.bf16.vlgmr.msra.gmra.mrb[12].mxu1 %v12824_v25  ;;  %v10636_v25 = vcombine.low %v697_v30, %v705_v31  ;;  %v816_v30 = vld [vmem:[#allocation2 + $0x14f0] sm:$0xff]  ;;  %v809_v31 = vld [vmem:[#allocation2 + $0x14b8] sm:$0xff] }
 0x356   :  { %5659 = vmatpush1.bf16.msra.mxu0 %v10602_v24  ;;  %5782 = vmatpush1.bf16.msra.mxu1 %v10604_v26  ;;  %v801_v24 = vld [vmem:[#allocation2 + $0x1478] sm:$0xff]  ;;  %v10714_v26 = vcombine.low %v776_v8, %v784_v9  ;;  %v10811_v9 = vcombine.high %v872_v63, %v880_v0 }
 0x357   :  { %5660 = vmatprep.subr.bf16.mxu0 %v10619_v27  ;;  %5783 = vmatprep.subr.bf16.mxu1 %v10621_v28  ;;  %v10716_v27 = vcombine.low %v777_v11, %v785_v13  ;;  %v10731_v28 = vcombine.high %v792_v20, %v800_v21  ;;  %v10733_v29 = vcombine.high %v793_v22, %v801_v24  ;;  %v888_v13 = vld [vmem:[#allocation2 + $0x1730] sm:$0xff] }
 0x358   :  { %5690 = vmatprep.mubr.bf16.mxu0 %v12826_v34  ;;  %5813 = vmatprep.mubr.bf16.mxu1 %v12826_v34  ;;  %v10669_v34 = vcombine.high %v729_v47, %v737_v48  ;;  %v848_v47 = vld [vmem:[#allocation2 + $0x15f0] sm:$0xff]  ;;  %v841_v48 = vld [vmem:[#allocation2 + $0x15b8] sm:$0xff] }
 0x35a   :  { %5661 = vmatpush1.bf16.msra.mxu0 %v10618_v32  ;;  %5784 = vmatpush1.bf16.msra.mxu1 %v10620_v33  ;;  %v817_v32 = vld [vmem:[#allocation2 + $0x14f8] sm:$0xff]  ;;  %v10730_v33 = vcombine.low %v792_v20, %v800_v21  ;;  %v12894_v20 = vld [vmem:[#allocation4] sm:$0xff]  ;;  %v10810_v21 = vcombine.low %v872_v63, %v880_v0 }
 0x35b   :  { %5662 = vmatprep.subr.bf16.mxu0 %v10635_v35  ;;  %5785 = vmatprep.subr.bf16.mxu1 %v10637_v36  ;;  %v10732_v35 = vcombine.low %v793_v22, %v801_v24  ;;  %v10747_v36 = vcombine.high %v808_v23, %v816_v30  ;;  %v10749_v37 = vcombine.high %v809_v31, %v817_v32  ;;  %v11666_v63 = vld [vmem:[#allocation6 + $0xc4] ss:$16 sps:$4 sm:$0xff]  }
 0x35e   :  { %5663 = vmatpush1.bf16.msra.mxu0 %v10634_v42  ;;  %5786 = vmatpush1.bf16.msra.mxu1 %v10636_v25  ;;  %v833_v42 = vld [vmem:[#allocation2 + $0x1578] sm:$0xff]  ;;  %v10746_v25 = vcombine.low %v808_v23, %v816_v30 }
 0x35f   :  { %5664 = vmatprep.subr.bf16.mxu0 %v10651_v43  ;;  %5787 = vmatprep.subr.bf16.mxu1 %v10653_v44  ;;  %v10748_v43 = vcombine.low %v809_v31, %v817_v32  ;;  %v10763_v44 = vcombine.high %v824_v39, %v832_v40  ;;  %v10765_v45 = vcombine.high %v825_v41, %v833_v42  ;;  %v905_v23 = vld [vmem:[#allocation2 + $0x17b8] sm:$0xff] }
 0x360   :  { %v913_v30 = vld [vmem:[#allocation2 + $0x17f8] sm:$0xff] }
 0x362   :  { %5665 = vmatpush1.bf16.msra.mxu0 %v10650_v49  ;;  %5788 = vmatpush1.bf16.msra.mxu1 %v10652_v50  ;;  %v849_v49 = vld [vmem:[#allocation2 + $0x15f8] sm:$0xff]  ;;  %v10762_v50 = vcombine.low %v824_v39, %v832_v40  ;;  %v10844_v39 = vcombine.low %v905_v23, %v913_v30  ;;  %v11630_v40 = vld [vmem:[#allocation6 + $0x4] ss:$16 sps:$4 sm:$0xff]  }
 0x363   :  { %5666 = vmatprep.subr.bf16.mxu0 %v10667_v51  ;;  %5789 = vmatprep.subr.bf16.mxu1 %v10669_v34  ;;  %v10764_v51 = vcombine.low %v825_v41, %v833_v42  ;;  %v10779_v34 = vcombine.high %v840_v46, %v848_v47  ;;  %v10781_v52 = vcombine.high %v841_v48, %v849_v49  ;;  %v11633_v41 = vld [vmem:[#allocation6 + $0xc] ss:$16 sps:$4 sm:$0xff]  }
 0x366   :  { %5667 = vmatpush1.bf16.msra.mxu0 %v10666_v55  ;;  %5790 = vmatpush1.bf16.msra.mxu1 %v10668_v56  ;;  %v857_v55 = vld [vmem:[#allocation2 + $0x1638] sm:$0xff] }
 0x367   :  { %5668 = vmatprep.subr.bf16.mxu0 %v10683_v58  ;;  %5791 = vmatprep.subr.bf16.mxu1 %v10685_v59  ;;  %v865_v56 = vld [vmem:[#allocation2 + $0x1678] sm:$0xff]  ;;  %v10778_v58 = vcombine.low %v840_v46, %v848_v47  ;;  %v10780_v59 = vcombine.low %v841_v48, %v849_v49  ;;  %v11634_v46 = vld [vmem:[#allocation6 + $0x20] ss:$16 sps:$4 sm:$0xff]   ;;  %v11642_v48 = vld [vmem:[#allocation6 + $0x44] ss:$16 sps:$4 sm:$0xff]  }
 0x368   :  { %v10797_v62 = vcombine.high %v857_v55, %v865_v56  ;;  %v10796_v8 = vcombine.low %v857_v55, %v865_v56  ;;  %v11637_v47 = vld [vmem:[#allocation6 + $0x28] ss:$16 sps:$4 sm:$0xff]   ;;  %v11645_v49 = vld [vmem:[#allocation6 + $0x4c] ss:$16 sps:$4 sm:$0xff]   ;;  %v11652_v55 = vld [vmem:[#allocation6 + $0x80] ss:$16 sps:$4 sm:$0xff]  }
 0x369   :  { %v11655_v56 = vld [vmem:[#allocation6 + $0x88] ss:$16 sps:$4 sm:$0xff]  }
 0x36a   :  { %5669 = vmatpush1.bf16.msra.mxu0 %v10682_v3  ;;  %5792 = vmatpush1.bf16.msra.mxu1 %v10684_v4  ;;  %v12889_v3 = vshrl.u32 %v918_v54, 7  ;;  %v873_v4 = vld [vmem:[#allocation2 + $0x16b8] sm:$0xff] }
 0x36b   :  { %5670 = vmatprep.subr.bf16.mxu0 %v10699_v6  ;;  %5793 = vmatprep.subr.bf16.mxu1 %v10701_v7  ;;  %v881_v6 = vld [vmem:[#allocation2 + $0x16f8] sm:$0xff]  ;;  %v10794_v7 = vcombine.low %v856_v53, %v864_v57  ;;  %v11654_v57 = vld [vmem:[#allocation6 + $0x84] ss:$16 sps:$4 sm:$0xff]  }
 0x36c   :  { %v10813_v11 = vcombine.high %v873_v4, %v881_v6  ;;  %v10812_v22 = vcombine.low %v873_v4, %v881_v6  ;;  %v11649_v53 = vld [vmem:[#allocation6 + $0x68] ss:$16 sps:$4 sm:$0xff]   ;;  %v11657_v54 = vld [vmem:[#allocation6 + $0x8c] ss:$16 sps:$4 sm:$0xff]  }
 0x36d   :  { %v11669_v4 = vld [vmem:[#allocation6 + $0xcc] ss:$16 sps:$4 sm:$0xff]  }
 0x36e   :  { %5671 = vmatpush1.bf16.msra.mxu0 %v10698_v14  ;;  %5794 = vmatpush1.bf16.msra.mxu1 %v10700_v17  ;;  %v896_v14 = vld [vmem:[#allocation2 + $0x1770] sm:$0xff]  ;;  %v12892_v17 = vsub.s32 1, %v12889_v3 }
 0x36f   :  { %5672 = vmatprep.subr.bf16.mxu0 %v10715_v12  ;;  %5795 = vmatprep.subr.bf16.mxu1 %v10717_v18  ;;  %v889_v12 = vld [vmem:[#allocation2 + $0x1738] sm:$0xff]  ;;  %v10827_v24 = vcombine.high %v888_v13, %v896_v14  ;;  %v10826_v31 = vcombine.low %v888_v13, %v896_v14 }
 0x370   :  { %v897_v18 = vld [vmem:[#allocation2 + $0x1778] sm:$0xff] }
 0x371   :  { %v10828_v32 = vcombine.low %v889_v12, %v897_v18 }
 0x372   :  { %5673 = vmatpush1.bf16.msra.mxu0 %v10714_v26  ;;  %5796 = vmatpush1.bf16.msra.mxu1 %v10716_v27  ;;  %v10829_v26 = vcombine.high %v889_v12, %v897_v18  ;;  %v904_v27 = vld [vmem:[#allocation2 + $0x17b0] sm:$0xff]  ;;  %v11667_v12 = vld [vmem:[#allocation6 + $0xc8] ss:$16 sps:$4 sm:$0xff]  }
 0x373   :  { %5674 = vmatprep.subr.bf16.mxu0 %v10731_v28  ;;  %5797 = vmatprep.subr.bf16.mxu1 %v10733_v29  ;;  %v912_v28 = vld [vmem:[#allocation2 + $0x17f0] sm:$0xff]  ;;  %v925_v29 = vrot.slane %v12894_v20, %v12892_v17 }
 0x374   :  { %v11672_v18 = vld [vmem:[#allocation6 + $0xe4] ss:$16 sps:$4 sm:$0xff]  }
 0x376   :  { %5675 = vmatpush1.bf16.msra.mxu0 %v10730_v33  ;;  %5798 = vmatpush1.bf16.msra.mxu1 %v10732_v35  ;;  %v10843_v33 = vcombine.high %v904_v27, %v912_v28  ;;  %v10845_v35 = vcombine.high %v905_v23, %v913_v30  ;;  %v11679_v23 = vld [vmem:[#allocation6 + $0x108] ss:$16 sps:$4 sm:$0xff]   ;;  %v11684_v30 = vld [vmem:[#allocation6 + $0x124] ss:$16 sps:$4 sm:$0xff]  }
 0x377   :  { %5676 = vmatprep.subr.bf16.mxu0 %v10747_v36  ;;  %5799 = vmatprep.subr.bf16.mxu1 %v10749_v37  ;;  %v11474_v36 = vadd.f32 %v12857_v2, %v925_v29  ;;  %v10842_v37 = vcombine.low %v904_v27, %v912_v28  ;;  %v11639_v2 = vld [vmem:[#allocation6 + $0x2c] ss:$16 sps:$4 sm:$0xff]   ;;  %v11678_v27 = vld [vmem:[#allocation6 + $0x104] ss:$16 sps:$4 sm:$0xff]   ;;  %v11676_v29 = vld [vmem:[#allocation6 + $0x100] ss:$16 sps:$4 sm:$0xff]  }
 0x378   :  { %v11681_v28 = vld [vmem:[#allocation6 + $0x10c] ss:$16 sps:$4 sm:$0xff]  }
 0x379   :  { %v5823_v42 = vmax.f32 %v11474_v36, 0.0  ;;  %v11693_v36 = vld [vmem:[#allocation6 + $0x14c] ss:$16 sps:$4 sm:$0xff]  }
 0x37a   :  { %5677 = vmatpush1.bf16.msra.mxu0 %v10746_v25  ;;  %5800 = vmatpush1.bf16.msra.mxu1 %v10748_v43  ;;  %v11628_v25 = vld [vmem:[#allocation6] ss:$16 sps:$4 sm:$0xff]   ;;  %v11631_v43 = vld [vmem:[#allocation6 + $0x8] ss:$16 sps:$4 sm:$0xff]  }
 0x37b   :  { %5678 = vmatprep.subr.bf16.mxu0 %v10763_v44  ;;  %5801 = vmatprep.subr.bf16.mxu1 %v10765_v45  ;;  %v11636_v44 = vld [vmem:[#allocation6 + $0x24] ss:$16 sps:$4 sm:$0xff]   ;;  %v5839_v45 = vpack.c.bf16 %v5823_v42, %v5823_v42  ;;  %v11694_v42 = vld [vmem:[#allocation6 + $0x160] ss:$16 sps:$4 sm:$0xff]  }
 0x37e   :  { %5679 = vmatpush1.bf16.msra.mxu0 %v10762_v50  ;;  %5802 = vmatpush1.bf16.msra.mxu1 %v10764_v51  ;;  %v11640_v50 = vld [vmem:[#allocation6 + $0x40] ss:$16 sps:$4 sm:$0xff]   ;;  %v11643_v51 = vld [vmem:[#allocation6 + $0x48] ss:$16 sps:$4 sm:$0xff]  }
 0x37f   :  { %5680 = vmatprep.subr.bf16.mxu0 %v10779_v34  ;;  %5803 = vmatprep.subr.bf16.mxu1 %v10781_v52  ;;  %v11648_v34 = vld [vmem:[#allocation6 + $0x64] ss:$16 sps:$4 sm:$0xff]   ;;  %v11651_v52 = vld [vmem:[#allocation6 + $0x6c] ss:$16 sps:$4 sm:$0xff]  }
 0x382   :  { %5681 = vmatpush1.bf16.msra.mxu0 %v10778_v58  ;;  %5804 = vmatpush1.bf16.msra.mxu1 %v10780_v59  ;;  %v11660_v58 = vld [vmem:[#allocation6 + $0xa4] ss:$16 sps:$4 sm:$0xff]   ;;  %v11663_v59 = vld [vmem:[#allocation6 + $0xac] ss:$16 sps:$4 sm:$0xff]  }
 0x383   :  { %5682 = vmatprep.subr.bf16.mxu0 %v10795_v60  ;;  %5805 = vmatprep.subr.bf16.mxu1 %v10797_v62  ;;  %v11658_v60 = vld [vmem:[#allocation6 + $0xa0] ss:$16 sps:$4 sm:$0xff]   ;;  %v11661_v62 = vld [vmem:[#allocation6 + $0xa8] ss:$16 sps:$4 sm:$0xff]  }
 0x386   :  { %5683 = vmatpush1.bf16.msra.mxu0 %v10794_v7  ;;  %5806 = vmatpush1.bf16.msra.mxu1 %v10796_v8 }
 0x387   :  { %5684 = vmatprep.subr.bf16.mxu0 %v10811_v9  ;;  %5807 = vmatprep.subr.bf16.mxu1 %v10813_v11  ;;  %v11664_v11 = vld [vmem:[#allocation6 + $0xc0] ss:$16 sps:$4 sm:$0xff]  }
 0x38a   :  { %5685 = vmatpush1.bf16.msra.mxu0 %v10810_v21  ;;  %5808 = vmatpush1.bf16.msra.mxu1 %v10812_v22  ;;  %v11675_v22 = vld [vmem:[#allocation6 + $0xec] ss:$16 sps:$4 sm:$0xff]  }
 0x38b   :  { %5686 = vmatprep.subr.bf16.mxu0 %v10827_v24  ;;  %5809 = vmatprep.subr.bf16.mxu1 %v10829_v26  ;;  %v11670_v24 = vld [vmem:[#allocation6 + $0xe0] ss:$16 sps:$4 sm:$0xff]   ;;  %v11673_v26 = vld [vmem:[#allocation6 + $0xe8] ss:$16 sps:$4 sm:$0xff]  }
 0x38e   :  { %5687 = vmatpush1.bf16.msra.mxu0 %v10826_v31  ;;  %5810 = vmatpush1.bf16.msra.mxu1 %v10828_v32  ;;  %v11687_v31 = vld [vmem:[#allocation6 + $0x12c] ss:$16 sps:$4 sm:$0xff]   ;;  %v11682_v32 = vld [vmem:[#allocation6 + $0x120] ss:$16 sps:$4 sm:$0xff]  }
 0x38f   :  { %5688 = vmatprep.subr.bf16.mxu0 %v10843_v33  ;;  %5811 = vmatprep.subr.bf16.mxu1 %v10845_v35  ;;  %v11685_v33 = vld [vmem:[#allocation6 + $0x128] ss:$16 sps:$4 sm:$0xff]   ;;  %v11690_v35 = vld [vmem:[#allocation6 + $0x144] ss:$16 sps:$4 sm:$0xff]  }
 0x392   :  { %5689 = vmatpush1.bf16.msra.mxu0 %v10842_v37  ;;  %5812 = vmatpush1.bf16.msra.mxu1 %v10844_v39  ;;  %v11688_v37 = vld [vmem:[#allocation6 + $0x140] ss:$16 sps:$4 sm:$0xff]   ;;  %v11691_v39 = vld [vmem:[#allocation6 + $0x148] ss:$16 sps:$4 sm:$0xff]  }
 0x393   :  { %8948 = vmatprep.subr.bf16.mxu0 %v11630_v40  ;;  %9276 = vmatprep.subr.bf16.mxu1 %v11633_v41  ;;  %v11696_v40 = vld [vmem:[#allocation6 + $0x164] ss:$16 sps:$4 sm:$0xff]   ;;  %v11699_v41 = vld [vmem:[#allocation6 + $0x16c] ss:$16 sps:$4 sm:$0xff]  }
 0x395   :  { %5691 = vmatmul.mubr.bf16.vlgmr.msra.gmra.mrb[12].mxu0 %v12835_v38  ;;  %5814 = vmatmul.mubr.bf16.vlgmr.msra.gmra.mrb[12].mxu1 %v12835_v38  ;;  %v11646_v38 = vld [vmem:[#allocation6 + $0x60] ss:$16 sps:$4 sm:$0xff]  }
 0x396   :  { %8949 = vmatpush1.bf16.msra.mxu0 %v11628_v25  ;;  %8980 = vmatprep.mubr.bf16.mxu0 %v5839_v45  ;;  %v11697_v25 = vld [vmem:[#allocation6 + $0x168] ss:$16 sps:$4 sm:$0xff]  }
 0x397   :  { %9277 = vmatpush1.bf16.msra.mxu1 %v11631_v43  ;;  %9308 = vmatprep.mubr.bf16.mxu1 %v5839_v45  ;;  %v11702_v43 = vld [vmem:[#allocation6 + $0x184] ss:$16 sps:$4 sm:$0xff]   ;;  %v11700_v45 = vld [vmem:[#allocation6 + $0x180] ss:$16 sps:$4 sm:$0xff]  }
 0x398   :  { %8950 = vmatprep.subr.bf16.mxu0 %v11636_v44  ;;  %9278 = vmatprep.subr.bf16.mxu1 %v11639_v2  ;;  %v11705_v44 = vld [vmem:[#allocation6 + $0x18c] ss:$16 sps:$4 sm:$0xff]   ;;  %v12910_v2 = vsub.s32 0, %v12889_v3 }
 0x39a   :  { %8951 = vmatpush1.bf16.msra.mxu0 %v11634_v46  ;;  %v11703_v46 = vld [vmem:[#allocation6 + $0x188] ss:$16 sps:$4 sm:$0xff]  }
 0x39b   :  { %9279 = vmatpush1.bf16.msra.mxu1 %v11637_v47  ;;  %8952 = vmatprep.subr.bf16.mxu0 %v11642_v48  ;;  %v11708_v47 = vld [vmem:[#allocation6 + $0x1a4] ss:$16 sps:$4 sm:$0xff]   ;;  %v11711_v48 = vld [vmem:[#allocation6 + $0x1ac] ss:$16 sps:$4 sm:$0xff]  }
 0x39c   :  { %9280 = vmatprep.subr.bf16.mxu1 %v11645_v49  ;;  %v12913_v49 = vsub.s32 3, %v12889_v3 }
 0x39e   :  { %8953 = vmatpush1.bf16.msra.mxu0 %v11640_v50  ;;  %v11706_v50 = vld [vmem:[#allocation6 + $0x1a0] ss:$16 sps:$4 sm:$0xff]  }
 0x39f   :  { %9281 = vmatpush1.bf16.msra.mxu1 %v11643_v51  ;;  %8954 = vmatprep.subr.bf16.mxu0 %v11648_v34  ;;  %v921_v51 = vrot.slane %v12894_v20, %v12910_v2  ;;  %v11709_v34 = vld [vmem:[#allocation6 + $0x1a8] ss:$16 sps:$4 sm:$0xff]  }
 0x3a0   :  { %9282 = vmatprep.subr.bf16.mxu1 %v11651_v52  ;;  %v11714_v52 = vld [vmem:[#allocation6 + $0x1c4] ss:$16 sps:$4 sm:$0xff]  }
 0x3a2   :  { %8955 = vmatpush1.bf16.msra.mxu0 %v11646_v38  ;;  %v11717_v38 = vld [vmem:[#allocation6 + $0x1cc] ss:$16 sps:$4 sm:$0xff]  }
 0x3a3   :  { %9283 = vmatpush1.bf16.msra.mxu1 %v11649_v53  ;;  %8956 = vmatprep.subr.bf16.mxu0 %v11654_v57  ;;  %v933_v53 = vrot.slane %v12894_v20, %v12913_v49  ;;  %v11712_v57 = vld [vmem:[#allocation6 + $0x1c0] ss:$16 sps:$4 sm:$0xff]  }
 0x3a4   :  { %9284 = vmatprep.subr.bf16.mxu1 %v11657_v54  ;;  %v11473_v54 = vadd.f32 %v12853_v61, %v921_v51  ;;  %v11724_v61 = vld [vmem:[#allocation6 + $0x200] ss:$16 sps:$4 sm:$0xff]   ;;  %v11777_v51 = vld [vmem:[#allocation6 + $0x30c] ss:$16 sps:$4 sm:$0xff]  }
 0x3a6   :  { %8957 = vmatpush1.bf16.msra.mxu0 %v11652_v55  ;;  %v11715_v55 = vld [vmem:[#allocation6 + $0x1c8] ss:$16 sps:$4 sm:$0xff]  }
 0x3a7   :  { %9285 = vmatpush1.bf16.msra.mxu1 %v11655_v56  ;;  %8958 = vmatprep.subr.bf16.mxu0 %v11660_v58  ;;  %v11720_v56 = vld [vmem:[#allocation6 + $0x1e4] ss:$16 sps:$4 sm:$0xff]   ;;  %v11723_v58 = vld [vmem:[#allocation6 + $0x1ec] ss:$16 sps:$4 sm:$0xff]  }
 0x3a8   :  { %v12901_v0 = vpop.f32.mrb[8].mxu0  ;;  %9286 = vmatprep.subr.bf16.mxu1 %v11663_v59  ;;  %v12903_v6 = vpop.f32.mrb[8].mxu1  ;;  %v11476_v59 = vadd.f32 %v12859_v5, %v933_v53  ;;  %v11735_v5 = vld [vmem:[#allocation6 + $0x22c] ss:$16 sps:$4 sm:$0xff]  }
 0x3a9   :  { %v12905_v7 = vpop.f32.mrb[9].mxu0  ;;  %v12907_v8 = vpop.f32.mrb[9].mxu1  ;;  %v11783_v53 = vld [vmem:[#allocation6 + $0x32c] ss:$16 sps:$4 sm:$0xff]  }
 0x3aa   :  { %v5450_v9 = vpop.f32.mrb[10].mxu0  ;;  %8959 = vmatpush1.bf16.msra.mxu0 %v11658_v60  ;;  %v5573_v13 = vpop.f32.mrb[10].mxu1  ;;  %v11718_v60 = vld [vmem:[#allocation6 + $0x1e0] ss:$16 sps:$4 sm:$0xff]  }
 0x3ab   :  { %9287 = vmatpush1.bf16.msra.mxu1 %v11661_v62  ;;  %v5451_v14 = vpop.f32.mrb[11].mxu0  ;;  %8960 = vmatprep.subr.bf16.mxu0 %v11666_v63  ;;  %v5574_v21 = vpop.f32.mrb[11].mxu1  ;;  %v5822_v62 = vmax.f32 %v11473_v54, 0.0  ;;  %v11721_v63 = vld [vmem:[#allocation6 + $0x1e8] ss:$16 sps:$4 sm:$0xff]  }
 0x3ac   :  { %9288 = vmatprep.subr.bf16.mxu1 %v11669_v4  ;;  %v11726_v4 = vld [vmem:[#allocation6 + $0x204] ss:$16 sps:$4 sm:$0xff]   ;;  %v11729_v9 = vld [vmem:[#allocation6 + $0x20c] ss:$16 sps:$4 sm:$0xff]   ;;  %v11727_v14 = vld [vmem:[#allocation6 + $0x208] ss:$16 sps:$4 sm:$0xff]  }
 0x3ad   :  { %v5838_v13 = vpack.c.bf16 %v5822_v62, %v5822_v62  ;;  %v11730_v21 = vld [vmem:[#allocation6 + $0x220] ss:$16 sps:$4 sm:$0xff]   ;;  %v11781_v54 = vld [vmem:[#allocation6 + $0x328] ss:$16 sps:$4 sm:$0xff]   ;;  %v11795_v62 = vld [vmem:[#allocation6 + $0x36c] ss:$16 sps:$4 sm:$0xff]  }
 0x3ae   :  { %8961 = vmatpush1.bf16.msra.mxu0 %v11664_v11  ;;  %v5825_v11 = vmax.f32 %v11476_v59, 0.0  ;;  %v11787_v59 = vld [vmem:[#allocation6 + $0x348] ss:$16 sps:$4 sm:$0xff]  }
 0x3af   :  { %9289 = vmatpush1.bf16.msra.mxu1 %v11667_v12  ;;  %8962 = vmatprep.subr.bf16.mxu0 %v11672_v18  ;;  %v11732_v12 = vld [vmem:[#allocation6 + $0x224] ss:$16 sps:$4 sm:$0xff]  }
 0x3b0   :  { %9290 = vmatprep.subr.bf16.mxu1 %v11675_v22  ;;  %v5841_v18 = vpack.c.bf16 %v5825_v11, %v5825_v11  ;;  %v11733_v22 = vld [vmem:[#allocation6 + $0x228] ss:$16 sps:$4 sm:$0xff]   ;;  %v11801_v11 = vld [vmem:[#allocation6 + $0x38c] ss:$16 sps:$4 sm:$0xff]  }
 0x3b2   :  { %8963 = vmatpush1.bf16.msra.mxu0 %v11670_v24  ;;  %v11738_v24 = vld [vmem:[#allocation6 + $0x244] ss:$16 sps:$4 sm:$0xff]  }
 0x3b3   :  { %9291 = vmatpush1.bf16.msra.mxu1 %v11673_v26  ;;  %8964 = vmatprep.subr.bf16.mxu0 %v11678_v27  ;;  %v11741_v26 = vld [vmem:[#allocation6 + $0x24c] ss:$16 sps:$4 sm:$0xff]   ;;  %v11736_v27 = vld [vmem:[#allocation6 + $0x240] ss:$16 sps:$4 sm:$0xff]  }
 0x3b4   :  { %9292 = vmatprep.subr.bf16.mxu1 %v11681_v28  ;;  %v11739_v28 = vld [vmem:[#allocation6 + $0x248] ss:$16 sps:$4 sm:$0xff]  }
 0x3b6   :  { %8965 = vmatpush1.bf16.msra.mxu0 %v11676_v29  ;;  %v11744_v29 = vld [vmem:[#allocation6 + $0x264] ss:$16 sps:$4 sm:$0xff]  }
 0x3b7   :  { %9293 = vmatpush1.bf16.msra.mxu1 %v11679_v23  ;;  %8966 = vmatprep.subr.bf16.mxu0 %v11684_v30  ;;  %v11747_v23 = vld [vmem:[#allocation6 + $0x26c] ss:$16 sps:$4 sm:$0xff]   ;;  %v11742_v30 = vld [vmem:[#allocation6 + $0x260] ss:$16 sps:$4 sm:$0xff]  }
 0x3b8   :  { %9294 = vmatprep.subr.bf16.mxu1 %v11687_v31  ;;  %v11745_v31 = vld [vmem:[#allocation6 + $0x268] ss:$16 sps:$4 sm:$0xff]  }
 0x3ba   :  { %8967 = vmatpush1.bf16.msra.mxu0 %v11682_v32  ;;  %v11750_v32 = vld [vmem:[#allocation6 + $0x284] ss:$16 sps:$4 sm:$0xff]  }
 0x3bb   :  { %9295 = vmatpush1.bf16.msra.mxu1 %v11685_v33  ;;  %8968 = vmatprep.subr.bf16.mxu0 %v11690_v35  ;;  %v11753_v33 = vld [vmem:[#allocation6 + $0x28c] ss:$16 sps:$4 sm:$0xff]   ;;  %v11748_v35 = vld [vmem:[#allocation6 + $0x280] ss:$16 sps:$4 sm:$0xff]  }
 0x3bc   :  { %9296 = vmatprep.subr.bf16.mxu1 %v11693_v36  ;;  %v11751_v36 = vld [vmem:[#allocation6 + $0x288] ss:$16 sps:$4 sm:$0xff]  }
 0x3be   :  { %8969 = vmatpush1.bf16.msra.mxu0 %v11688_v37  ;;  %v11756_v37 = vld [vmem:[#allocation6 + $0x2a4] ss:$16 sps:$4 sm:$0xff]  }
 0x3bf   :  { %9297 = vmatpush1.bf16.msra.mxu1 %v11691_v39  ;;  %8970 = vmatprep.subr.bf16.mxu0 %v11696_v40  ;;  %v11759_v39 = vld [vmem:[#allocation6 + $0x2ac] ss:$16 sps:$4 sm:$0xff]   ;;  %v11754_v40 = vld [vmem:[#allocation6 + $0x2a0] ss:$16 sps:$4 sm:$0xff]  }
 0x3c0   :  { %9298 = vmatprep.subr.bf16.mxu1 %v11699_v41  ;;  %v11757_v41 = vld [vmem:[#allocation6 + $0x2a8] ss:$16 sps:$4 sm:$0xff]  }
 0x3c2   :  { %8971 = vmatpush1.bf16.msra.mxu0 %v11694_v42  ;;  %v11762_v42 = vld [vmem:[#allocation6 + $0x2c4] ss:$16 sps:$4 sm:$0xff]  }
 0x3c3   :  { %9299 = vmatpush1.bf16.msra.mxu1 %v11697_v25  ;;  %8972 = vmatprep.subr.bf16.mxu0 %v11702_v43  ;;  %v11765_v25 = vld [vmem:[#allocation6 + $0x2cc] ss:$16 sps:$4 sm:$0xff]   ;;  %v11760_v43 = vld [vmem:[#allocation6 + $0x2c0] ss:$16 sps:$4 sm:$0xff]  }
 0x3c4   :  { %9300 = vmatprep.subr.bf16.mxu1 %v11705_v44  ;;  %v11763_v44 = vld [vmem:[#allocation6 + $0x2c8] ss:$16 sps:$4 sm:$0xff]  }
 0x3c6   :  { %8973 = vmatpush1.bf16.msra.mxu0 %v11700_v45  ;;  %v11768_v45 = vld [vmem:[#allocation6 + $0x2e4] ss:$16 sps:$4 sm:$0xff]  }
 0x3c7   :  { %9301 = vmatpush1.bf16.msra.mxu1 %v11703_v46  ;;  %8974 = vmatprep.subr.bf16.mxu0 %v11708_v47  ;;  %v11771_v46 = vld [vmem:[#allocation6 + $0x2ec] ss:$16 sps:$4 sm:$0xff]   ;;  %v11766_v47 = vld [vmem:[#allocation6 + $0x2e0] ss:$16 sps:$4 sm:$0xff]  }
 0x3c8   :  { %9302 = vmatprep.subr.bf16.mxu1 %v11711_v48  ;;  %v11769_v48 = vld [vmem:[#allocation6 + $0x2e8] ss:$16 sps:$4 sm:$0xff]  }
 0x3ca   :  { %8975 = vmatpush1.bf16.msra.mxu0 %v11706_v50  ;;  %v11774_v50 = vld [vmem:[#allocation6 + $0x304] ss:$16 sps:$4 sm:$0xff]  }
 0x3cb   :  { %9303 = vmatpush1.bf16.msra.mxu1 %v11709_v34  ;;  %8976 = vmatprep.subr.bf16.mxu0 %v11714_v52  ;;  %v11772_v34 = vld [vmem:[#allocation6 + $0x300] ss:$16 sps:$4 sm:$0xff]   ;;  %v11775_v52 = vld [vmem:[#allocation6 + $0x308] ss:$16 sps:$4 sm:$0xff]  }
 0x3cc   :  { %9304 = vmatprep.subr.bf16.mxu1 %v11717_v38  ;;  %v11780_v38 = vld [vmem:[#allocation6 + $0x324] ss:$16 sps:$4 sm:$0xff]  }
 0x3ce   :  { %8977 = vmatpush1.bf16.msra.mxu0 %v11712_v57  ;;  %v11778_v57 = vld [vmem:[#allocation6 + $0x320] ss:$16 sps:$4 sm:$0xff]  }
 0x3cf   :  { %9305 = vmatpush1.bf16.msra.mxu1 %v11715_v55  ;;  %8978 = vmatprep.subr.bf16.mxu0 %v11720_v56  ;;  %v11786_v55 = vld [vmem:[#allocation6 + $0x344] ss:$16 sps:$4 sm:$0xff]   ;;  %v11789_v56 = vld [vmem:[#allocation6 + $0x34c] ss:$16 sps:$4 sm:$0xff]  }
 0x3d0   :  { %9306 = vmatprep.subr.bf16.mxu1 %v11723_v58  ;;  %v11784_v58 = vld [vmem:[#allocation6 + $0x340] ss:$16 sps:$4 sm:$0xff]  }
 0x3d2   :  { %8979 = vmatpush1.bf16.msra.mxu0 %v11718_v60  ;;  %v11792_v60 = vld [vmem:[#allocation6 + $0x364] ss:$16 sps:$4 sm:$0xff]  }
 0x3d3   :  { %9307 = vmatpush1.bf16.msra.mxu1 %v11721_v63  ;;  %8989 = vmatprep.subr.bf16.mxu0 %v11726_v4  ;;  %v11790_v63 = vld [vmem:[#allocation6 + $0x360] ss:$16 sps:$4 sm:$0xff]   ;;  %v11793_v4 = vld [vmem:[#allocation6 + $0x368] ss:$16 sps:$4 sm:$0xff]  }
 0x3d4   :  { %9317 = vmatprep.subr.bf16.mxu1 %v11729_v9  ;;  %v11798_v9 = vld [vmem:[#allocation6 + $0x384] ss:$16 sps:$4 sm:$0xff]  }
 0x3d5   :  { %8981 = vmatmul.mubr.bf16.vlgmr.msra.gmra.mrb[16].mxu0 %v5838_v13 }
 0x3d6   :  { %9309 = vmatmul.mubr.bf16.vlgmr.msra.gmra.mrb[16].mxu1 %v5838_v13  ;;  %8990 = vmatpush1.bf16.msra.mxu0 %v11724_v61  ;;  %v11796_v61 = vld [vmem:[#allocation6 + $0x380] ss:$16 sps:$4 sm:$0xff]   ;;  %v12922_v13 = vsub.s32 2, %v12889_v3 }
 0x3d7   :  { %9021 = vmatprep.mubr.bf16.mxu0 %v5841_v18  ;;  %9318 = vmatpush1.bf16.msra.mxu1 %v11727_v14  ;;  %v11799_v14 = vld [vmem:[#allocation6 + $0x388] ss:$16 sps:$4 sm:$0xff]  }
 0x3d8   :  { %9349 = vmatprep.mubr.bf16.mxu1 %v5841_v18  ;;  %8991 = vmatprep.subr.bf16.mxu0 %v11732_v12  ;;  %v11804_v12 = vld [vmem:[#allocation6 + $0x3a4] ss:$16 sps:$4 sm:$0xff]   ;;  %v11807_v18 = vld [vmem:[#allocation6 + $0x3ac] ss:$16 sps:$4 sm:$0xff]  }
 0x3d9   :  { %9319 = vmatprep.subr.bf16.mxu1 %v11735_v5  ;;  %v940_v5 = vsub.s32 5, %v12889_v3 }
 0x3da   :  { %8992 = vmatpush1.bf16.msra.mxu0 %v11730_v21  ;;  %v11802_v21 = vld [vmem:[#allocation6 + $0x3a0] ss:$16 sps:$4 sm:$0xff]  }
 0x3db   :  { %9320 = vmatpush1.bf16.msra.mxu1 %v11733_v22  ;;  %8993 = vmatprep.subr.bf16.mxu0 %v11738_v24  ;;  %v929_v22 = vrot.slane %v12894_v20, %v12922_v13  ;;  %v11805_v24 = vld [vmem:[#allocation6 + $0x3a8] ss:$16 sps:$4 sm:$0xff]  }
 0x3dc   :  { %9321 = vmatprep.subr.bf16.mxu1 %v11741_v26  ;;  %v11810_v26 = vld [vmem:[#allocation6 + $0x3c4] ss:$16 sps:$4 sm:$0xff]  }
 0x3de   :  { %8994 = vmatpush1.bf16.msra.mxu0 %v11736_v27  ;;  %v11813_v27 = vld [vmem:[#allocation6 + $0x3cc] ss:$16 sps:$4 sm:$0xff]  }
 0x3df   :  { %9322 = vmatpush1.bf16.msra.mxu1 %v11739_v28  ;;  %8995 = vmatprep.subr.bf16.mxu0 %v11744_v29  ;;  %v941_v28 = vrot.slane %v12894_v20, %v940_v5  ;;  %v11808_v29 = vld [vmem:[#allocation6 + $0x3c0] ss:$16 sps:$4 sm:$0xff]  }
 0x3e0   :  { %9323 = vmatprep.subr.bf16.mxu1 %v11747_v23  ;;  %v11475_v23 = vadd.f32 %v12855_v1, %v929_v22  ;;  %v11820_v1 = vld [vmem:[#allocation6 + $0x400] ss:$16 sps:$4 sm:$0xff]   ;;  %v11873_v22 = vld [vmem:[#allocation6 + $0x50c] ss:$16 sps:$4 sm:$0xff]  }
 0x3e2   :  { %8996 = vmatpush1.bf16.msra.mxu0 %v11742_v30  ;;  %v11811_v30 = vld [vmem:[#allocation6 + $0x3c8] ss:$16 sps:$4 sm:$0xff]  }
 0x3e3   :  { %9324 = vmatpush1.bf16.msra.mxu1 %v11745_v31  ;;  %8997 = vmatprep.subr.bf16.mxu0 %v11750_v32  ;;  %v11816_v31 = vld [vmem:[#allocation6 + $0x3e4] ss:$16 sps:$4 sm:$0xff]   ;;  %v11819_v32 = vld [vmem:[#allocation6 + $0x3ec] ss:$16 sps:$4 sm:$0xff]  }
 0x3e4   :  { %9325 = vmatprep.subr.bf16.mxu1 %v11753_v33  ;;  %v11478_v33 = vadd.f32 %v12877_v16, %v941_v28  ;;  %v11831_v16 = vld [vmem:[#allocation6 + $0x42c] ss:$16 sps:$4 sm:$0xff]  }
 0x3e5   :  { %v11879_v28 = vld [vmem:[#allocation6 + $0x52c] ss:$16 sps:$4 sm:$0xff]  }
 0x3e6   :  { %8998 = vmatpush1.bf16.msra.mxu0 %v11748_v35  ;;  %v11814_v35 = vld [vmem:[#allocation6 + $0x3e0] ss:$16 sps:$4 sm:$0xff]  }
 0x3e7   :  { %9326 = vmatpush1.bf16.msra.mxu1 %v11751_v36  ;;  %8999 = vmatprep.subr.bf16.mxu0 %v11756_v37  ;;  %v5824_v36 = vmax.f32 %v11475_v23, 0.0  ;;  %v11817_v37 = vld [vmem:[#allocation6 + $0x3e8] ss:$16 sps:$4 sm:$0xff]  }
 0x3e8   :  { %9327 = vmatprep.subr.bf16.mxu1 %v11759_v39  ;;  %v11822_v39 = vld [vmem:[#allocation6 + $0x404] ss:$16 sps:$4 sm:$0xff]   ;;  %v11877_v23 = vld [vmem:[#allocation6 + $0x528] ss:$16 sps:$4 sm:$0xff]  }
 0x3ea   :  { %9000 = vmatpush1.bf16.msra.mxu0 %v11754_v40  ;;  %v11825_v40 = vld [vmem:[#allocation6 + $0x40c] ss:$16 sps:$4 sm:$0xff]  }
 0x3eb   :  { %9328 = vmatpush1.bf16.msra.mxu1 %v11757_v41  ;;  %9001 = vmatprep.subr.bf16.mxu0 %v11762_v42  ;;  %v5827_v41 = vmax.f32 %v11478_v33, 0.0  ;;  %v5840_v42 = vpack.c.bf16 %v5824_v36, %v5824_v36  ;;  %v11883_v33 = vld [vmem:[#allocation6 + $0x548] ss:$16 sps:$4 sm:$0xff]   ;;  %v11891_v36 = vld [vmem:[#allocation6 + $0x56c] ss:$16 sps:$4 sm:$0xff]  }
 0x3ec   :  { %9329 = vmatprep.subr.bf16.mxu1 %v11765_v25  ;;  %v11823_v25 = vld [vmem:[#allocation6 + $0x408] ss:$16 sps:$4 sm:$0xff]  }
 0x3ee   :  { %9002 = vmatpush1.bf16.msra.mxu0 %v11760_v43  ;;  %v11828_v43 = vld [vmem:[#allocation6 + $0x424] ss:$16 sps:$4 sm:$0xff]  }
 0x3ef   :  { %9330 = vmatpush1.bf16.msra.mxu1 %v11763_v44  ;;  %9003 = vmatprep.subr.bf16.mxu0 %v11768_v45  ;;  %v5843_v44 = vpack.c.bf16 %v5827_v41, %v5827_v41  ;;  %v11826_v45 = vld [vmem:[#allocation6 + $0x420] ss:$16 sps:$4 sm:$0xff]   ;;  %v11897_v41 = vld [vmem:[#allocation6 + $0x58c] ss:$16 sps:$4 sm:$0xff]  }
 0x3f0   :  { %9331 = vmatprep.subr.bf16.mxu1 %v11771_v46  ;;  %v11829_v46 = vld [vmem:[#allocation6 + $0x428] ss:$16 sps:$4 sm:$0xff]  }
 0x3f2   :  { %9004 = vmatpush1.bf16.msra.mxu0 %v11766_v47  ;;  %v11834_v47 = vld [vmem:[#allocation6 + $0x444] ss:$16 sps:$4 sm:$0xff]  }
 0x3f3   :  { %9332 = vmatpush1.bf16.msra.mxu1 %v11769_v48  ;;  %9005 = vmatprep.subr.bf16.mxu0 %v11774_v50  ;;  %v11837_v48 = vld [vmem:[#allocation6 + $0x44c] ss:$16 sps:$4 sm:$0xff]   ;;  %v11832_v50 = vld [vmem:[#allocation6 + $0x440] ss:$16 sps:$4 sm:$0xff]  }
 0x3f4   :  { %9333 = vmatprep.subr.bf16.mxu1 %v11777_v51  ;;  %v11835_v51 = vld [vmem:[#allocation6 + $0x448] ss:$16 sps:$4 sm:$0xff]  }
 0x3f6   :  { %9006 = vmatpush1.bf16.msra.mxu0 %v11772_v34  ;;  %v11840_v34 = vld [vmem:[#allocation6 + $0x464] ss:$16 sps:$4 sm:$0xff]  }
 0x3f7   :  { %9334 = vmatpush1.bf16.msra.mxu1 %v11775_v52  ;;  %9007 = vmatprep.subr.bf16.mxu0 %v11780_v38  ;;  %v11843_v52 = vld [vmem:[#allocation6 + $0x46c] ss:$16 sps:$4 sm:$0xff]   ;;  %v11838_v38 = vld [vmem:[#allocation6 + $0x460] ss:$16 sps:$4 sm:$0xff]  }
 0x3f8   :  { %9335 = vmatprep.subr.bf16.mxu1 %v11783_v53  ;;  %v11841_v53 = vld [vmem:[#allocation6 + $0x468] ss:$16 sps:$4 sm:$0xff]  }
 0x3fa   :  { %9008 = vmatpush1.bf16.msra.mxu0 %v11778_v57  ;;  %v11846_v57 = vld [vmem:[#allocation6 + $0x484] ss:$16 sps:$4 sm:$0xff]  }
 0x3fb   :  { %9336 = vmatpush1.bf16.msra.mxu1 %v11781_v54  ;;  %9009 = vmatprep.subr.bf16.mxu0 %v11786_v55  ;;  %v11849_v54 = vld [vmem:[#allocation6 + $0x48c] ss:$16 sps:$4 sm:$0xff]   ;;  %v11844_v55 = vld [vmem:[#allocation6 + $0x480] ss:$16 sps:$4 sm:$0xff]  }
 0x3fc   :  { %9337 = vmatprep.subr.bf16.mxu1 %v11789_v56  ;;  %v11847_v56 = vld [vmem:[#allocation6 + $0x488] ss:$16 sps:$4 sm:$0xff]  }
 0x3fe   :  { %9010 = vmatpush1.bf16.msra.mxu0 %v11784_v58  ;;  %v11852_v58 = vld [vmem:[#allocation6 + $0x4a4] ss:$16 sps:$4 sm:$0xff]  }
 0x3ff   :  { %9338 = vmatpush1.bf16.msra.mxu1 %v11787_v59  ;;  %9011 = vmatprep.subr.bf16.mxu0 %v11792_v60  ;;  %v11855_v59 = vld [vmem:[#allocation6 + $0x4ac] ss:$16 sps:$4 sm:$0xff]   ;;  %v11850_v60 = vld [vmem:[#allocation6 + $0x4a0] ss:$16 sps:$4 sm:$0xff]  }
 0x400   :  { %9339 = vmatprep.subr.bf16.mxu1 %v11795_v62  ;;  %v11853_v62 = vld [vmem:[#allocation6 + $0x4a8] ss:$16 sps:$4 sm:$0xff]  }
 0x402   :  { %9012 = vmatpush1.bf16.msra.mxu0 %v11790_v63  ;;  %v11858_v63 = vld [vmem:[#allocation6 + $0x4c4] ss:$16 sps:$4 sm:$0xff]  }
 0x403   :  { %9340 = vmatpush1.bf16.msra.mxu1 %v11793_v4  ;;  %9013 = vmatprep.subr.bf16.mxu0 %v11798_v9  ;;  %v11861_v4 = vld [vmem:[#allocation6 + $0x4cc] ss:$16 sps:$4 sm:$0xff]   ;;  %v11856_v9 = vld [vmem:[#allocation6 + $0x4c0] ss:$16 sps:$4 sm:$0xff]  }
 0x404   :  { %9341 = vmatprep.subr.bf16.mxu1 %v11801_v11  ;;  %v11859_v11 = vld [vmem:[#allocation6 + $0x4c8] ss:$16 sps:$4 sm:$0xff]  }
 0x406   :  { %9014 = vmatpush1.bf16.msra.mxu0 %v11796_v61  ;;  %v11864_v61 = vld [vmem:[#allocation6 + $0x4e4] ss:$16 sps:$4 sm:$0xff]  }
 0x407   :  { %9342 = vmatpush1.bf16.msra.mxu1 %v11799_v14  ;;  %9015 = vmatprep.subr.bf16.mxu0 %v11804_v12  ;;  %v11867_v14 = vld [vmem:[#allocation6 + $0x4ec] ss:$16 sps:$4 sm:$0xff]   ;;  %v11862_v12 = vld [vmem:[#allocation6 + $0x4e0] ss:$16 sps:$4 sm:$0xff]  }
 0x408   :  { %9343 = vmatprep.subr.bf16.mxu1 %v11807_v18  ;;  %v11865_v18 = vld [vmem:[#allocation6 + $0x4e8] ss:$16 sps:$4 sm:$0xff]  }
 0x40a   :  { %9016 = vmatpush1.bf16.msra.mxu0 %v11802_v21  ;;  %v11870_v21 = vld [vmem:[#allocation6 + $0x504] ss:$16 sps:$4 sm:$0xff]  }
 0x40b   :  { %9344 = vmatpush1.bf16.msra.mxu1 %v11805_v24  ;;  %9017 = vmatprep.subr.bf16.mxu0 %v11810_v26  ;;  %v11868_v24 = vld [vmem:[#allocation6 + $0x500] ss:$16 sps:$4 sm:$0xff]   ;;  %v11871_v26 = vld [vmem:[#allocation6 + $0x508] ss:$16 sps:$4 sm:$0xff]  }
 0x40c   :  { %9345 = vmatprep.subr.bf16.mxu1 %v11813_v27  ;;  %v11876_v27 = vld [vmem:[#allocation6 + $0x524] ss:$16 sps:$4 sm:$0xff]  }
 0x40e   :  { %9018 = vmatpush1.bf16.msra.mxu0 %v11808_v29  ;;  %v11874_v29 = vld [vmem:[#allocation6 + $0x520] ss:$16 sps:$4 sm:$0xff]  }
 0x40f   :  { %9346 = vmatpush1.bf16.msra.mxu1 %v11811_v30  ;;  %9019 = vmatprep.subr.bf16.mxu0 %v11816_v31  ;;  %v11882_v30 = vld [vmem:[#allocation6 + $0x544] ss:$16 sps:$4 sm:$0xff]   ;;  %v11885_v31 = vld [vmem:[#allocation6 + $0x54c] ss:$16 sps:$4 sm:$0xff]  }
 0x410   :  { %9347 = vmatprep.subr.bf16.mxu1 %v11819_v32  ;;  %v11880_v32 = vld [vmem:[#allocation6 + $0x540] ss:$16 sps:$4 sm:$0xff]  }
 0x412   :  { %9020 = vmatpush1.bf16.msra.mxu0 %v11814_v35  ;;  %v11888_v35 = vld [vmem:[#allocation6 + $0x564] ss:$16 sps:$4 sm:$0xff]  }
 0x413   :  { %9348 = vmatpush1.bf16.msra.mxu1 %v11817_v37  ;;  %9030 = vmatprep.subr.bf16.mxu0 %v11822_v39  ;;  %v11886_v37 = vld [vmem:[#allocation6 + $0x560] ss:$16 sps:$4 sm:$0xff]   ;;  %v11889_v39 = vld [vmem:[#allocation6 + $0x568] ss:$16 sps:$4 sm:$0xff]  }
 0x414   :  { %9358 = vmatprep.subr.bf16.mxu1 %v11825_v40  ;;  %v11894_v40 = vld [vmem:[#allocation6 + $0x584] ss:$16 sps:$4 sm:$0xff]  }
 0x415   :  { %9022 = vmatmul.mubr.bf16.vlgmr.msra.gmra.mrb[16].mxu0 %v5840_v42 }
 0x416   :  { %9350 = vmatmul.mubr.bf16.vlgmr.msra.gmra.mrb[16].mxu1 %v5840_v42  ;;  %9031 = vmatpush1.bf16.msra.mxu0 %v11820_v1  ;;  %v11892_v1 = vld [vmem:[#allocation6 + $0x580] ss:$16 sps:$4 sm:$0xff]   ;;  %v936_v42 = vsub.s32 4, %v12889_v3 }
 0x417   :  { %9062 = vmatprep.mubr.bf16.mxu0 %v5843_v44  ;;  %9359 = vmatpush1.bf16.msra.mxu1 %v11823_v25  ;;  %v11895_v25 = vld [vmem:[#allocation6 + $0x588] ss:$16 sps:$4 sm:$0xff]  }
 0x418   :  { %9390 = vmatprep.mubr.bf16.mxu1 %v5843_v44  ;;  %9032 = vmatprep.subr.bf16.mxu0 %v11828_v43  ;;  %v11900_v43 = vld [vmem:[#allocation6 + $0x5a4] ss:$16 sps:$4 sm:$0xff]   ;;  %v11903_v44 = vld [vmem:[#allocation6 + $0x5ac] ss:$16 sps:$4 sm:$0xff]  }
 0x419   :  { %9360 = vmatprep.subr.bf16.mxu1 %v11831_v16  ;;  %v948_v16 = vsub.s32 7, %v12889_v3 }
 0x41a   :  { %9033 = vmatpush1.bf16.msra.mxu0 %v11826_v45  ;;  %v11898_v45 = vld [vmem:[#allocation6 + $0x5a0] ss:$16 sps:$4 sm:$0xff]  }
 0x41b   :  { %9361 = vmatpush1.bf16.msra.mxu1 %v11829_v46  ;;  %9034 = vmatprep.subr.bf16.mxu0 %v11834_v47  ;;  %v937_v46 = vrot.slane %v12894_v20, %v936_v42  ;;  %v11901_v47 = vld [vmem:[#allocation6 + $0x5a8] ss:$16 sps:$4 sm:$0xff]  }
 0x41c   :  { %9362 = vmatprep.subr.bf16.mxu1 %v11837_v48  ;;  %v11906_v48 = vld [vmem:[#allocation6 + $0x5c4] ss:$16 sps:$4 sm:$0xff]  }
 0x41e   :  { %9035 = vmatpush1.bf16.msra.mxu0 %v11832_v50  ;;  %v11909_v50 = vld [vmem:[#allocation6 + $0x5cc] ss:$16 sps:$4 sm:$0xff]  }
 0x41f   :  { %9363 = vmatpush1.bf16.msra.mxu1 %v11835_v51  ;;  %9036 = vmatprep.subr.bf16.mxu0 %v11840_v34  ;;  %v949_v51 = vrot.slane %v12894_v20, %v948_v16  ;;  %v11904_v34 = vld [vmem:[#allocation6 + $0x5c0] ss:$16 sps:$4 sm:$0xff]   ;;  %v11921_v20 = vld [vmem:[#allocation6 + $0x60c] ss:$16 sps:$4 sm:$0xff]  }
 0x420   :  { %9364 = vmatprep.subr.bf16.mxu1 %v11843_v52  ;;  %v11477_v52 = vadd.f32 %v12873_v10, %v937_v46  ;;  %v11916_v10 = vld [vmem:[#allocation6 + $0x600] ss:$16 sps:$4 sm:$0xff]   ;;  %v11955_v46 = vld [vmem:[#allocation6 + $0x6c8] ss:$16 sps:$4 sm:$0xff]  }
 0x422   :  { %9037 = vmatpush1.bf16.msra.mxu0 %v11838_v38  ;;  %v11907_v38 = vld [vmem:[#allocation6 + $0x5c8] ss:$16 sps:$4 sm:$0xff]  }
 0x423   :  { %9365 = vmatpush1.bf16.msra.mxu1 %v11841_v53  ;;  %9038 = vmatprep.subr.bf16.mxu0 %v11846_v57  ;;  %v11912_v53 = vld [vmem:[#allocation6 + $0x5e4] ss:$16 sps:$4 sm:$0xff]   ;;  %v11915_v57 = vld [vmem:[#allocation6 + $0x5ec] ss:$16 sps:$4 sm:$0xff]  }
 0x424   :  { %9366 = vmatprep.subr.bf16.mxu1 %v11849_v54  ;;  %v11480_v54 = vadd.f32 %v12879_v19, %v949_v51  ;;  %v11927_v19 = vld [vmem:[#allocation6 + $0x62c] ss:$16 sps:$4 sm:$0xff]   ;;  %v11958_v51 = vld [vmem:[#allocation6 + $0x6e0] ss:$16 sps:$4 sm:$0xff]  }
 0x426   :  { %9039 = vmatpush1.bf16.msra.mxu0 %v11844_v55  ;;  %v11910_v55 = vld [vmem:[#allocation6 + $0x5e0] ss:$16 sps:$4 sm:$0xff]  }
 0x427   :  { %9367 = vmatpush1.bf16.msra.mxu1 %v11847_v56  ;;  %9040 = vmatprep.subr.bf16.mxu0 %v11852_v58  ;;  %v5826_v56 = vmax.f32 %v11477_v52, 0.0  ;;  %v11913_v58 = vld [vmem:[#allocation6 + $0x5e8] ss:$16 sps:$4 sm:$0xff]   ;;  %v11966_v52 = vld [vmem:[#allocation6 + $0x704] ss:$16 sps:$4 sm:$0xff]  }
 0x428   :  { %9368 = vmatprep.subr.bf16.mxu1 %v11855_v59  ;;  %v11918_v59 = vld [vmem:[#allocation6 + $0x604] ss:$16 sps:$4 sm:$0xff]  }
 0x42a   :  { %9041 = vmatpush1.bf16.msra.mxu0 %v11850_v60  ;;  %v5829_v60 = vmax.f32 %v11480_v54, 0.0  ;;  %v11972_v54 = vld [vmem:[#allocation6 + $0x724] ss:$16 sps:$4 sm:$0xff]  }
 0x42b   :  { %9369 = vmatpush1.bf16.msra.mxu1 %v11853_v62  ;;  %9042 = vmatprep.subr.bf16.mxu0 %v11858_v63  ;;  %v5842_v62 = vpack.c.bf16 %v5826_v56, %v5826_v56  ;;  %v11919_v63 = vld [vmem:[#allocation6 + $0x608] ss:$16 sps:$4 sm:$0xff]   ;;  %v11970_v56 = vld [vmem:[#allocation6 + $0x720] ss:$16 sps:$4 sm:$0xff]  }
 0x42c   :  { %9370 = vmatprep.subr.bf16.mxu1 %v11861_v4  ;;  %v11924_v4 = vld [vmem:[#allocation6 + $0x624] ss:$16 sps:$4 sm:$0xff]  }
 0x42e   :  { %9043 = vmatpush1.bf16.msra.mxu0 %v11856_v9  ;;  %v5845_v9 = vpack.c.bf16 %v5829_v60, %v5829_v60  ;;  %v11976_v60 = vld [vmem:[#allocation6 + $0x740] ss:$16 sps:$4 sm:$0xff]  }
 0x42f   :  { %9371 = vmatpush1.bf16.msra.mxu1 %v11859_v11  ;;  %9044 = vmatprep.subr.bf16.mxu0 %v11864_v61  ;;  %v11922_v11 = vld [vmem:[#allocation6 + $0x620] ss:$16 sps:$4 sm:$0xff]   ;;  %v11925_v61 = vld [vmem:[#allocation6 + $0x628] ss:$16 sps:$4 sm:$0xff]  }
 0x430   :  { %9372 = vmatprep.subr.bf16.mxu1 %v11867_v14  ;;  %v11930_v14 = vld [vmem:[#allocation6 + $0x644] ss:$16 sps:$4 sm:$0xff]  }
 0x432   :  { %9045 = vmatpush1.bf16.msra.mxu0 %v11862_v12  ;;  %v11933_v12 = vld [vmem:[#allocation6 + $0x64c] ss:$16 sps:$4 sm:$0xff]  }
 0x433   :  { %9373 = vmatpush1.bf16.msra.mxu1 %v11865_v18  ;;  %9046 = vmatprep.subr.bf16.mxu0 %v11870_v21  ;;  %v11928_v18 = vld [vmem:[#allocation6 + $0x640] ss:$16 sps:$4 sm:$0xff]   ;;  %v11931_v21 = vld [vmem:[#allocation6 + $0x648] ss:$16 sps:$4 sm:$0xff]  }
 0x434   :  { %9374 = vmatprep.subr.bf16.mxu1 %v11873_v22  ;;  %v11936_v22 = vld [vmem:[#allocation6 + $0x664] ss:$16 sps:$4 sm:$0xff]  }
 0x436   :  { %9047 = vmatpush1.bf16.msra.mxu0 %v11868_v24  ;;  %v11939_v24 = vld [vmem:[#allocation6 + $0x66c] ss:$16 sps:$4 sm:$0xff]  }
 0x437   :  { %9375 = vmatpush1.bf16.msra.mxu1 %v11871_v26  ;;  %9048 = vmatprep.subr.bf16.mxu0 %v11876_v27  ;;  %v11934_v26 = vld [vmem:[#allocation6 + $0x660] ss:$16 sps:$4 sm:$0xff]   ;;  %v11937_v27 = vld [vmem:[#allocation6 + $0x668] ss:$16 sps:$4 sm:$0xff]  }
 0x438   :  { %9376 = vmatprep.subr.bf16.mxu1 %v11879_v28  ;;  %v11942_v28 = vld [vmem:[#allocation6 + $0x684] ss:$16 sps:$4 sm:$0xff]  }
 0x43a   :  { %9049 = vmatpush1.bf16.msra.mxu0 %v11874_v29  ;;  %v11945_v29 = vld [vmem:[#allocation6 + $0x68c] ss:$16 sps:$4 sm:$0xff]  }
 0x43b   :  { %9377 = vmatpush1.bf16.msra.mxu1 %v11877_v23  ;;  %9050 = vmatprep.subr.bf16.mxu0 %v11882_v30  ;;  %v11940_v23 = vld [vmem:[#allocation6 + $0x680] ss:$16 sps:$4 sm:$0xff]   ;;  %v11943_v30 = vld [vmem:[#allocation6 + $0x688] ss:$16 sps:$4 sm:$0xff]  }
 0x43c   :  { %9378 = vmatprep.subr.bf16.mxu1 %v11885_v31  ;;  %v11948_v31 = vld [vmem:[#allocation6 + $0x6a4] ss:$16 sps:$4 sm:$0xff]  }
 0x43e   :  { %9051 = vmatpush1.bf16.msra.mxu0 %v11880_v32  ;;  %v11951_v32 = vld [vmem:[#allocation6 + $0x6ac] ss:$16 sps:$4 sm:$0xff]  }
 0x43f   :  { %9379 = vmatpush1.bf16.msra.mxu1 %v11883_v33  ;;  %9052 = vmatprep.subr.bf16.mxu0 %v11888_v35  ;;  %v11946_v33 = vld [vmem:[#allocation6 + $0x6a0] ss:$16 sps:$4 sm:$0xff]   ;;  %v11949_v35 = vld [vmem:[#allocation6 + $0x6a8] ss:$16 sps:$4 sm:$0xff]  }
 0x440   :  { %9380 = vmatprep.subr.bf16.mxu1 %v11891_v36  ;;  %v11954_v36 = vld [vmem:[#allocation6 + $0x6c4] ss:$16 sps:$4 sm:$0xff]  }
 0x442   :  { %9053 = vmatpush1.bf16.msra.mxu0 %v11886_v37 }
 0x443   :  { %9381 = vmatpush1.bf16.msra.mxu1 %v11889_v39  ;;  %9054 = vmatprep.subr.bf16.mxu0 %v11894_v40  ;;  %v11957_v39 = vld [vmem:[#allocation6 + $0x6cc] ss:$16 sps:$4 sm:$0xff]  }
 0x444   :  { %9382 = vmatprep.subr.bf16.mxu1 %v11897_v41 }
 0x446   :  { %9055 = vmatpush1.bf16.msra.mxu0 %v11892_v1 }
 0x447   :  { %9383 = vmatpush1.bf16.msra.mxu1 %v11895_v25  ;;  %9056 = vmatprep.subr.bf16.mxu0 %v11900_v43  ;;  %v11952_v43 = vld [vmem:[#allocation6 + $0x6c0] ss:$16 sps:$4 sm:$0xff]  }
 0x448   :  { %9384 = vmatprep.subr.bf16.mxu1 %v11903_v44 }
 0x44a   :  { %9057 = vmatpush1.bf16.msra.mxu0 %v11898_v45 }
 0x44b   :  { %9385 = vmatpush1.bf16.msra.mxu1 %v11901_v47  ;;  %9058 = vmatprep.subr.bf16.mxu0 %v11906_v48  ;;  %v11960_v47 = vld [vmem:[#allocation6 + $0x6e4] ss:$16 sps:$4 sm:$0xff]  }
 0x44c   :  { %9386 = vmatprep.subr.bf16.mxu1 %v11909_v50  ;;  %v11963_v50 = vld [vmem:[#allocation6 + $0x6ec] ss:$16 sps:$4 sm:$0xff]  }
 0x44e   :  { %9059 = vmatpush1.bf16.msra.mxu0 %v11904_v34  ;;  %v11961_v34 = vld [vmem:[#allocation6 + $0x6e8] ss:$16 sps:$4 sm:$0xff]  }
 0x44f   :  { %9387 = vmatpush1.bf16.msra.mxu1 %v11907_v38  ;;  %9060 = vmatprep.subr.bf16.mxu0 %v11912_v53  ;;  %v11969_v38 = vld [vmem:[#allocation6 + $0x70c] ss:$16 sps:$4 sm:$0xff]   ;;  %v11964_v53 = vld [vmem:[#allocation6 + $0x700] ss:$16 sps:$4 sm:$0xff]  }
 0x450   :  { %9388 = vmatprep.subr.bf16.mxu1 %v11915_v57  ;;  %v11967_v57 = vld [vmem:[#allocation6 + $0x708] ss:$16 sps:$4 sm:$0xff]  }
 0x452   :  { %9061 = vmatpush1.bf16.msra.mxu0 %v11910_v55  ;;  %v11975_v55 = vld [vmem:[#allocation6 + $0x72c] ss:$16 sps:$4 sm:$0xff]  }
 0x453   :  { %9389 = vmatpush1.bf16.msra.mxu1 %v11913_v58  ;;  %9071 = vmatprep.subr.bf16.mxu0 %v11918_v59  ;;  %v11973_v58 = vld [vmem:[#allocation6 + $0x728] ss:$16 sps:$4 sm:$0xff]   ;;  %v11978_v59 = vld [vmem:[#allocation6 + $0x744] ss:$16 sps:$4 sm:$0xff]  }
 0x454   :  { %9399 = vmatprep.subr.bf16.mxu1 %v11921_v20  ;;  %v11981_v20 = vld [vmem:[#allocation6 + $0x74c] ss:$16 sps:$4 sm:$0xff]  }
 0x455   :  { %9063 = vmatmul.mubr.bf16.vlgmr.msra.gmra.mrb[16].mxu0 %v5842_v62 }
 0x456   :  { %9391 = vmatmul.mubr.bf16.vlgmr.msra.gmra.mrb[16].mxu1 %v5842_v62  ;;  %9072 = vmatpush1.bf16.msra.mxu0 %v11916_v10  ;;  %v11979_v10 = vld [vmem:[#allocation6 + $0x748] ss:$16 sps:$4 sm:$0xff]   ;;  %v11984_v62 = vld [vmem:[#allocation6 + $0x764] ss:$16 sps:$4 sm:$0xff]  }
 0x457   :  { %9103 = vmatprep.mubr.bf16.mxu0 %v5845_v9  ;;  %9400 = vmatpush1.bf16.msra.mxu1 %v11919_v63  ;;  %v11987_v63 = vld [vmem:[#allocation6 + $0x76c] ss:$16 sps:$4 sm:$0xff]  }
 0x458   :  { %9431 = vmatprep.mubr.bf16.mxu1 %v5845_v9  ;;  %9073 = vmatprep.subr.bf16.mxu0 %v11924_v4  ;;  %v11982_v4 = vld [vmem:[#allocation6 + $0x760] ss:$16 sps:$4 sm:$0xff]   ;;  %v11985_v9 = vld [vmem:[#allocation6 + $0x768] ss:$16 sps:$4 sm:$0xff]  }
 0x459   :  { %9401 = vmatprep.subr.bf16.mxu1 %v11927_v19  ;;  %v11990_v19 = vld [vmem:[#allocation6 + $0x784] ss:$16 sps:$4 sm:$0xff]  }
 0x45a   :  { %9074 = vmatpush1.bf16.msra.mxu0 %v11922_v11  ;;  %v11993_v11 = vld [vmem:[#allocation6 + $0x78c] ss:$16 sps:$4 sm:$0xff]  }
 0x45b   :  { %9402 = vmatpush1.bf16.msra.mxu1 %v11925_v61  ;;  %9075 = vmatprep.subr.bf16.mxu0 %v11930_v14  ;;  %v11988_v61 = vld [vmem:[#allocation6 + $0x780] ss:$16 sps:$4 sm:$0xff]   ;;  %v944_v14 = vsub.s32 6, %v12889_v3 }
 0x45c   :  { %9403 = vmatprep.subr.bf16.mxu1 %v11933_v12  ;;  %v11991_v12 = vld [vmem:[#allocation6 + $0x788] ss:$16 sps:$4 sm:$0xff]  }
 0x45e   :  { %9076 = vmatpush1.bf16.msra.mxu0 %v11928_v18  ;;  %v11996_v18 = vld [vmem:[#allocation6 + $0x7a4] ss:$16 sps:$4 sm:$0xff]  }
 0x45f   :  { %9404 = vmatpush1.bf16.msra.mxu1 %v11931_v21  ;;  %9077 = vmatprep.subr.bf16.mxu0 %v11936_v22  ;;  %v11999_v21 = vld [vmem:[#allocation6 + $0x7ac] ss:$16 sps:$4 sm:$0xff]  }
 0x460   :  { %9405 = vmatprep.subr.bf16.mxu1 %v11939_v24  ;;  %v12951_v22 = vld [vmem:[#allocation4 + $0x8] sm:$0xff]  ;;  %v11994_v24 = vld [vmem:[#allocation6 + $0x7a0] ss:$16 sps:$4 sm:$0xff]  }
 0x462   :  { %9078 = vmatpush1.bf16.msra.mxu0 %v11934_v26  ;;  %v12436_v26 = vld [vmem:[#allocation4] sm:$0xff] }
 0x463   :  { %9406 = vmatpush1.bf16.msra.mxu1 %v11937_v27  ;;  %9079 = vmatprep.subr.bf16.mxu0 %v11942_v28  ;;  %v945_v27 = vrot.slane %v12436_v26, %v944_v14  ;;  %v11997_v28 = vld [vmem:[#allocation6 + $0x7a8] ss:$16 sps:$4 sm:$0xff]   ;;  %v12059_v26 = vld [vmem:[#allocation6 + $0x8ec] ss:$16 sps:$4 sm:$0xff]  }
 0x464   :  { %9407 = vmatprep.subr.bf16.mxu1 %v11945_v29  ;;  %v12002_v29 = vld [vmem:[#allocation6 + $0x7c4] ss:$16 sps:$4 sm:$0xff]  }
 0x466   :  { %9080 = vmatpush1.bf16.msra.mxu0 %v11940_v23  ;;  %v12005_v23 = vld [vmem:[#allocation6 + $0x7cc] ss:$16 sps:$4 sm:$0xff]  }
 0x467   :  { %9408 = vmatpush1.bf16.msra.mxu1 %v11943_v30  ;;  %9081 = vmatprep.subr.bf16.mxu0 %v11948_v31  ;;  %v957_v30 = vrot.slane %v12951_v22, %v12892_v17  ;;  %v12000_v31 = vld [vmem:[#allocation6 + $0x7c0] ss:$16 sps:$4 sm:$0xff]  }
 0x468   :  { %v12942_v37 = vpop.f32.mrb[12].mxu0  ;;  %9409 = vmatprep.subr.bf16.mxu1 %v11951_v32  ;;  %v12944_v40 = vpop.f32.mrb[12].mxu1  ;;  %v11479_v32 = vadd.f32 %v12875_v15, %v945_v27  ;;  %v12012_v15 = vld [vmem:[#allocation6 + $0x800] ss:$16 sps:$4 sm:$0xff]  }
 0x469   :  { %v12946_v41 = vpop.f32.mrb[13].mxu0  ;;  %v12948_v1 = vpop.f32.mrb[13].mxu1  ;;  %v12054_v27 = vld [vmem:[#allocation6 + $0x8e0] ss:$16 sps:$4 sm:$0xff]  }
 0x46a   :  { %v5696_v25 = vpop.f32.mrb[14].mxu0  ;;  %9082 = vmatpush1.bf16.msra.mxu0 %v11946_v33  ;;  %v5819_v44 = vpop.f32.mrb[14].mxu1  ;;  %v12003_v33 = vld [vmem:[#allocation6 + $0x7c8] ss:$16 sps:$4 sm:$0xff]  }
 0x46b   :  { %9410 = vmatpush1.bf16.msra.mxu1 %v11949_v35  ;;  %v5697_v45 = vpop.f32.mrb[15].mxu0  ;;  %9083 = vmatprep.subr.bf16.mxu0 %v11954_v36  ;;  %v5820_v48 = vpop.f32.mrb[15].mxu1  ;;  %v12008_v35 = vld [vmem:[#allocation6 + $0x7e4] ss:$16 sps:$4 sm:$0xff]   ;;  %v12011_v36 = vld [vmem:[#allocation6 + $0x7ec] ss:$16 sps:$4 sm:$0xff]  }
 0x46c   :  { %9411 = vmatprep.subr.bf16.mxu1 %v11957_v39  ;;  %v11482_v39 = vadd.f32 %v12905_v7, %v957_v30  ;;  %v12006_v25 = vld [vmem:[#allocation6 + $0x7e0] ss:$16 sps:$4 sm:$0xff]   ;;  %v12009_v44 = vld [vmem:[#allocation6 + $0x7e8] ss:$16 sps:$4 sm:$0xff]   ;;  %v12014_v45 = vld [vmem:[#allocation6 + $0x804] ss:$16 sps:$4 sm:$0xff]  }
 0x46d   :  { %v12023_v7 = vld [vmem:[#allocation6 + $0x82c] ss:$16 sps:$4 sm:$0xff]   ;;  %v12060_v30 = vld [vmem:[#allocation6 + $0x900] ss:$16 sps:$4 sm:$0xff]  }
 0x46e   :  { %9084 = vmatpush1.bf16.msra.mxu0 %v11952_v43  ;;  %v5828_v43 = vmax.f32 %v11479_v32, 0.0  ;;  %v12068_v32 = vld [vmem:[#allocation6 + $0x924] ss:$16 sps:$4 sm:$0xff]  }
 0x46f   :  { %9412 = vmatpush1.bf16.msra.mxu1 %v11955_v46  ;;  %9085 = vmatprep.subr.bf16.mxu0 %v11960_v47  ;;  %v12017_v46 = vld [vmem:[#allocation6 + $0x80c] ss:$16 sps:$4 sm:$0xff]   ;;  %v5831_v47 = vmax.f32 %v11482_v39, 0.0  ;;  %v12074_v39 = vld [vmem:[#allocation6 + $0x944] ss:$16 sps:$4 sm:$0xff]  }
 0x470   :  { %9413 = vmatprep.subr.bf16.mxu1 %v11963_v50  ;;  %v5844_v48 = vpack.c.bf16 %v5828_v43, %v5828_v43  ;;  %v12015_v50 = vld [vmem:[#allocation6 + $0x808] ss:$16 sps:$4 sm:$0xff]   ;;  %v12072_v43 = vld [vmem:[#allocation6 + $0x940] ss:$16 sps:$4 sm:$0xff]  }
 0x472   :  { %9086 = vmatpush1.bf16.msra.mxu0 %v11958_v51  ;;  %v12020_v51 = vld [vmem:[#allocation6 + $0x824] ss:$16 sps:$4 sm:$0xff]  }
 0x473   :  { %9414 = vmatpush1.bf16.msra.mxu1 %v11961_v34  ;;  %9087 = vmatprep.subr.bf16.mxu0 %v11966_v52  ;;  %v5847_v34 = vpack.c.bf16 %v5831_v47, %v5831_v47  ;;  %v12018_v52 = vld [vmem:[#allocation6 + $0x820] ss:$16 sps:$4 sm:$0xff]  }
 0x474   :  { %9415 = vmatprep.subr.bf16.mxu1 %v11969_v38  ;;  %v12021_v38 = vld [vmem:[#allocation6 + $0x828] ss:$16 sps:$4 sm:$0xff]   ;;  %v12078_v47 = vld [vmem:[#allocation6 + $0x960] ss:$16 sps:$4 sm:$0xff]  }
 0x476   :  { %9088 = vmatpush1.bf16.msra.mxu0 %v11964_v53  ;;  %v12026_v53 = vld [vmem:[#allocation6 + $0x844] ss:$16 sps:$4 sm:$0xff]  }
 0x477   :  { %9416 = vmatpush1.bf16.msra.mxu1 %v11967_v57  ;;  %9089 = vmatprep.subr.bf16.mxu0 %v11972_v54  ;;  %v12029_v57 = vld [vmem:[#allocation6 + $0x84c] ss:$16 sps:$4 sm:$0xff]   ;;  %v12024_v54 = vld [vmem:[#allocation6 + $0x840] ss:$16 sps:$4 sm:$0xff]  }
 0x478   :  { %9417 = vmatprep.subr.bf16.mxu1 %v11975_v55  ;;  %v12027_v55 = vld [vmem:[#allocation6 + $0x848] ss:$16 sps:$4 sm:$0xff]  }
 0x47a   :  { %9090 = vmatpush1.bf16.msra.mxu0 %v11970_v56  ;;  %v12032_v56 = vld [vmem:[#allocation6 + $0x864] ss:$16 sps:$4 sm:$0xff]  }
 0x47b   :  { %9418 = vmatpush1.bf16.msra.mxu1 %v11973_v58  ;;  %9091 = vmatprep.subr.bf16.mxu0 %v11978_v59  ;;  %v12035_v58 = vld [vmem:[#allocation6 + $0x86c] ss:$16 sps:$4 sm:$0xff]   ;;  %v12030_v59 = vld [vmem:[#allocation6 + $0x860] ss:$16 sps:$4 sm:$0xff]  }
 0x47c   :  { %9419 = vmatprep.subr.bf16.mxu1 %v11981_v20  ;;  %v12033_v20 = vld [vmem:[#allocation6 + $0x868] ss:$16 sps:$4 sm:$0xff]  }
 0x47e   :  { %9092 = vmatpush1.bf16.msra.mxu0 %v11976_v60  ;;  %v12038_v60 = vld [vmem:[#allocation6 + $0x884] ss:$16 sps:$4 sm:$0xff]  }
 0x47f   :  { %9420 = vmatpush1.bf16.msra.mxu1 %v11979_v10  ;;  %9093 = vmatprep.subr.bf16.mxu0 %v11984_v62  ;;  %v12041_v10 = vld [vmem:[#allocation6 + $0x88c] ss:$16 sps:$4 sm:$0xff]   ;;  %v12036_v62 = vld [vmem:[#allocation6 + $0x880] ss:$16 sps:$4 sm:$0xff]  }
 0x480   :  { %9421 = vmatprep.subr.bf16.mxu1 %v11987_v63  ;;  %v12039_v63 = vld [vmem:[#allocation6 + $0x888] ss:$16 sps:$4 sm:$0xff]  }
 0x482   :  { %9094 = vmatpush1.bf16.msra.mxu0 %v11982_v4  ;;  %v12044_v4 = vld [vmem:[#allocation6 + $0x8a4] ss:$16 sps:$4 sm:$0xff]  }
 0x483   :  { %9422 = vmatpush1.bf16.msra.mxu1 %v11985_v9  ;;  %9095 = vmatprep.subr.bf16.mxu0 %v11990_v19  ;;  %v12047_v9 = vld [vmem:[#allocation6 + $0x8ac] ss:$16 sps:$4 sm:$0xff]   ;;  %v12042_v19 = vld [vmem:[#allocation6 + $0x8a0] ss:$16 sps:$4 sm:$0xff]  }
 0x484   :  { %9423 = vmatprep.subr.bf16.mxu1 %v11993_v11  ;;  %v12045_v11 = vld [vmem:[#allocation6 + $0x8a8] ss:$16 sps:$4 sm:$0xff]  }
 0x486   :  { %9096 = vmatpush1.bf16.msra.mxu0 %v11988_v61  ;;  %v12050_v61 = vld [vmem:[#allocation6 + $0x8c4] ss:$16 sps:$4 sm:$0xff]  }
 0x487   :  { %9424 = vmatpush1.bf16.msra.mxu1 %v11991_v12  ;;  %9097 = vmatprep.subr.bf16.mxu0 %v11996_v18  ;;  %v12053_v12 = vld [vmem:[#allocation6 + $0x8cc] ss:$16 sps:$4 sm:$0xff]   ;;  %v12048_v18 = vld [vmem:[#allocation6 + $0x8c0] ss:$16 sps:$4 sm:$0xff]  }
 0x488   :  { %9425 = vmatprep.subr.bf16.mxu1 %v11999_v21  ;;  %v12051_v21 = vld [vmem:[#allocation6 + $0x8c8] ss:$16 sps:$4 sm:$0xff]  }
 0x48a   :  { %9098 = vmatpush1.bf16.msra.mxu0 %v11994_v24  ;;  %v12056_v24 = vld [vmem:[#allocation6 + $0x8e4] ss:$16 sps:$4 sm:$0xff]  }
 0x48b   :  { %9426 = vmatpush1.bf16.msra.mxu1 %v11997_v28  ;;  %9099 = vmatprep.subr.bf16.mxu0 %v12002_v29  ;;  %v12057_v28 = vld [vmem:[#allocation6 + $0x8e8] ss:$16 sps:$4 sm:$0xff]   ;;  %v12062_v29 = vld [vmem:[#allocation6 + $0x904] ss:$16 sps:$4 sm:$0xff]  }
 0x48c   :  { %9427 = vmatprep.subr.bf16.mxu1 %v12005_v23  ;;  %v12065_v23 = vld [vmem:[#allocation6 + $0x90c] ss:$16 sps:$4 sm:$0xff]  }
 0x48e   :  { %9100 = vmatpush1.bf16.msra.mxu0 %v12000_v31  ;;  %v12063_v31 = vld [vmem:[#allocation6 + $0x908] ss:$16 sps:$4 sm:$0xff]  }
 0x48f   :  { %9428 = vmatpush1.bf16.msra.mxu1 %v12003_v33  ;;  %9101 = vmatprep.subr.bf16.mxu0 %v12008_v35  ;;  %v12071_v33 = vld [vmem:[#allocation6 + $0x92c] ss:$16 sps:$4 sm:$0xff]   ;;  %v12066_v35 = vld [vmem:[#allocation6 + $0x920] ss:$16 sps:$4 sm:$0xff]  }
 0x490   :  { %9429 = vmatprep.subr.bf16.mxu1 %v12011_v36  ;;  %v12069_v36 = vld [vmem:[#allocation6 + $0x928] ss:$16 sps:$4 sm:$0xff]  }
 0x492   :  { %9102 = vmatpush1.bf16.msra.mxu0 %v12006_v25  ;;  %v12077_v25 = vld [vmem:[#allocation6 + $0x94c] ss:$16 sps:$4 sm:$0xff]  }
 0x493   :  { %9430 = vmatpush1.bf16.msra.mxu1 %v12009_v44  ;;  %9112 = vmatprep.subr.bf16.mxu0 %v12014_v45  ;;  %v12075_v44 = vld [vmem:[#allocation6 + $0x948] ss:$16 sps:$4 sm:$0xff]   ;;  %v12080_v45 = vld [vmem:[#allocation6 + $0x964] ss:$16 sps:$4 sm:$0xff]  }
 0x494   :  { %9440 = vmatprep.subr.bf16.mxu1 %v12017_v46  ;;  %v12083_v46 = vld [vmem:[#allocation6 + $0x96c] ss:$16 sps:$4 sm:$0xff]  }
 0x495   :  { %9104 = vmatmul.mubr.bf16.vlgmr.msra.gmra.mrb[16].mxu0 %v5844_v48 }
 0x496   :  { %9432 = vmatmul.mubr.bf16.vlgmr.msra.gmra.mrb[16].mxu1 %v5844_v48  ;;  %9113 = vmatpush1.bf16.msra.mxu0 %v12012_v15  ;;  %v12081_v15 = vld [vmem:[#allocation6 + $0x968] ss:$16 sps:$4 sm:$0xff]   ;;  %v12086_v48 = vld [vmem:[#allocation6 + $0x984] ss:$16 sps:$4 sm:$0xff]  }
 0x497   :  { %9144 = vmatprep.mubr.bf16.mxu0 %v5847_v34  ;;  %9441 = vmatpush1.bf16.msra.mxu1 %v12015_v50  ;;  %v12089_v50 = vld [vmem:[#allocation6 + $0x98c] ss:$16 sps:$4 sm:$0xff]  }
 0x498   :  { %9472 = vmatprep.mubr.bf16.mxu1 %v5847_v34  ;;  %9114 = vmatprep.subr.bf16.mxu0 %v12020_v51  ;;  %v12084_v51 = vld [vmem:[#allocation6 + $0x980] ss:$16 sps:$4 sm:$0xff]   ;;  %v12087_v34 = vld [vmem:[#allocation6 + $0x988] ss:$16 sps:$4 sm:$0xff]  }
 0x499   :  { %9442 = vmatprep.subr.bf16.mxu1 %v12023_v7  ;;  %v12092_v7 = vld [vmem:[#allocation6 + $0x9a4] ss:$16 sps:$4 sm:$0xff]  }
 0x49a   :  { %9115 = vmatpush1.bf16.msra.mxu0 %v12018_v52  ;;  %v12095_v52 = vld [vmem:[#allocation6 + $0x9ac] ss:$16 sps:$4 sm:$0xff]  }
 0x49b   :  { %9443 = vmatpush1.bf16.msra.mxu1 %v12021_v38  ;;  %9116 = vmatprep.subr.bf16.mxu0 %v12026_v53  ;;  %v12090_v38 = vld [vmem:[#allocation6 + $0x9a0] ss:$16 sps:$4 sm:$0xff]   ;;  %v953_v53 = vrot.slane %v12951_v22, %v12910_v2 }
 0x49c   :  { %9444 = vmatprep.subr.bf16.mxu1 %v12029_v57  ;;  %v12093_v57 = vld [vmem:[#allocation6 + $0x9a8] ss:$16 sps:$4 sm:$0xff]  }
 0x49e   :  { %9117 = vmatpush1.bf16.msra.mxu0 %v12024_v54  ;;  %v12098_v54 = vld [vmem:[#allocation6 + $0x9c4] ss:$16 sps:$4 sm:$0xff]  }
 0x49f   :  { %9445 = vmatpush1.bf16.msra.mxu1 %v12027_v55  ;;  %9118 = vmatprep.subr.bf16.mxu0 %v12032_v56  ;;  %v12101_v55 = vld [vmem:[#allocation6 + $0x9cc] ss:$16 sps:$4 sm:$0xff]   ;;  %v965_v56 = vrot.slane %v12951_v22, %v12913_v49 }
 0x4a0   :  { %9446 = vmatprep.subr.bf16.mxu1 %v12035_v58  ;;  %v12096_v58 = vld [vmem:[#allocation6 + $0x9c0] ss:$16 sps:$4 sm:$0xff]  }
 0x4a2   :  { %9119 = vmatpush1.bf16.msra.mxu0 %v12030_v59  ;;  %v11481_v59 = vadd.f32 %v12901_v0, %v953_v53  ;;  %v12108_v0 = vld [vmem:[#allocation6 + $0xa00] ss:$16 sps:$4 sm:$0xff]   ;;  %v12158_v53 = vld [vmem:[#allocation6 + $0xb04] ss:$16 sps:$4 sm:$0xff]  }
 0x4a3   :  { %9447 = vmatpush1.bf16.msra.mxu1 %v12033_v20  ;;  %9120 = vmatprep.subr.bf16.mxu0 %v12038_v60  ;;  %v12099_v20 = vld [vmem:[#allocation6 + $0x9c8] ss:$16 sps:$4 sm:$0xff]   ;;  %v12104_v60 = vld [vmem:[#allocation6 + $0x9e4] ss:$16 sps:$4 sm:$0xff]  }
 0x4a4   :  { %9448 = vmatprep.subr.bf16.mxu1 %v12041_v10  ;;  %v12107_v10 = vld [vmem:[#allocation6 + $0x9ec] ss:$16 sps:$4 sm:$0xff]  }
 0x4a6   :  { %9121 = vmatpush1.bf16.msra.mxu0 %v12036_v62  ;;  %v11484_v62 = vadd.f32 %v12907_v8, %v965_v56  ;;  %v12119_v8 = vld [vmem:[#allocation6 + $0xa2c] ss:$16 sps:$4 sm:$0xff]   ;;  %v12164_v56 = vld [vmem:[#allocation6 + $0xb24] ss:$16 sps:$4 sm:$0xff]  }
 0x4a7   :  { %9449 = vmatpush1.bf16.msra.mxu1 %v12039_v63  ;;  %9122 = vmatprep.subr.bf16.mxu0 %v12044_v4  ;;  %v12102_v63 = vld [vmem:[#allocation6 + $0x9e0] ss:$16 sps:$4 sm:$0xff]   ;;  %v5830_v4 = vmax.f32 %v11481_v59, 0.0 }
 0x4a8   :  { %9450 = vmatprep.subr.bf16.mxu1 %v12047_v9  ;;  %v12105_v9 = vld [vmem:[#allocation6 + $0x9e8] ss:$16 sps:$4 sm:$0xff]   ;;  %v12162_v59 = vld [vmem:[#allocation6 + $0xb20] ss:$16 sps:$4 sm:$0xff]  }
 0x4aa   :  { %9123 = vmatpush1.bf16.msra.mxu0 %v12042_v19  ;;  %v12110_v19 = vld [vmem:[#allocation6 + $0xa04] ss:$16 sps:$4 sm:$0xff]  }
 0x4ab   :  { %9451 = vmatpush1.bf16.msra.mxu1 %v12045_v11  ;;  %9124 = vmatprep.subr.bf16.mxu0 %v12050_v61  ;;  %v12113_v11 = vld [vmem:[#allocation6 + $0xa0c] ss:$16 sps:$4 sm:$0xff]   ;;  %v5833_v61 = vmax.f32 %v11484_v62, 0.0  ;;  %v12168_v62 = vld [vmem:[#allocation6 + $0xb40] ss:$16 sps:$4 sm:$0xff]  }
 0x4ac   :  { %9452 = vmatprep.subr.bf16.mxu1 %v12053_v12  ;;  %v5846_v12 = vpack.c.bf16 %v5830_v4, %v5830_v4  ;;  %v12176_v4 = vld [vmem:[#allocation6 + $0xb64] ss:$16 sps:$4 sm:$0xff]  }
 0x4ae   :  { %9125 = vmatpush1.bf16.msra.mxu0 %v12048_v18  ;;  %v12111_v18 = vld [vmem:[#allocation6 + $0xa08] ss:$16 sps:$4 sm:$0xff]  }
 0x4af   :  { %9453 = vmatpush1.bf16.msra.mxu1 %v12051_v21  ;;  %9126 = vmatprep.subr.bf16.mxu0 %v12056_v24  ;;  %v12116_v21 = vld [vmem:[#allocation6 + $0xa24] ss:$16 sps:$4 sm:$0xff]   ;;  %v5849_v24 = vpack.c.bf16 %v5833_v61, %v5833_v61 }
 0x4b0   :  { %9454 = vmatprep.subr.bf16.mxu1 %v12059_v26  ;;  %v12114_v26 = vld [vmem:[#allocation6 + $0xa20] ss:$16 sps:$4 sm:$0xff]   ;;  %v12182_v61 = vld [vmem:[#allocation6 + $0xb84] ss:$16 sps:$4 sm:$0xff]  }
 0x4b2   :  { %9127 = vmatpush1.bf16.msra.mxu0 %v12054_v27  ;;  %v12117_v27 = vld [vmem:[#allocation6 + $0xa28] ss:$16 sps:$4 sm:$0xff]  }
 0x4b3   :  { %9455 = vmatpush1.bf16.msra.mxu1 %v12057_v28  ;;  %9128 = vmatprep.subr.bf16.mxu0 %v12062_v29  ;;  %v12122_v28 = vld [vmem:[#allocation6 + $0xa44] ss:$16 sps:$4 sm:$0xff]   ;;  %v12125_v29 = vld [vmem:[#allocation6 + $0xa4c] ss:$16 sps:$4 sm:$0xff]  }
 0x4b4   :  { %9456 = vmatprep.subr.bf16.mxu1 %v12065_v23  ;;  %v12120_v23 = vld [vmem:[#allocation6 + $0xa40] ss:$16 sps:$4 sm:$0xff]  }
 0x4b6   :  { %9129 = vmatpush1.bf16.msra.mxu0 %v12060_v30  ;;  %v12123_v30 = vld [vmem:[#allocation6 + $0xa48] ss:$16 sps:$4 sm:$0xff]  }
 0x4b7   :  { %9457 = vmatpush1.bf16.msra.mxu1 %v12063_v31  ;;  %9130 = vmatprep.subr.bf16.mxu0 %v12068_v32  ;;  %v12128_v31 = vld [vmem:[#allocation6 + $0xa64] ss:$16 sps:$4 sm:$0xff]   ;;  %v12131_v32 = vld [vmem:[#allocation6 + $0xa6c] ss:$16 sps:$4 sm:$0xff]  }
 0x4b8   :  { %9458 = vmatprep.subr.bf16.mxu1 %v12071_v33  ;;  %v12126_v33 = vld [vmem:[#allocation6 + $0xa60] ss:$16 sps:$4 sm:$0xff]  }
 0x4ba   :  { %9131 = vmatpush1.bf16.msra.mxu0 %v12066_v35  ;;  %v12129_v35 = vld [vmem:[#allocation6 + $0xa68] ss:$16 sps:$4 sm:$0xff]  }
 0x4bb   :  { %9459 = vmatpush1.bf16.msra.mxu1 %v12069_v36  ;;  %9132 = vmatprep.subr.bf16.mxu0 %v12074_v39  ;;  %v12134_v36 = vld [vmem:[#allocation6 + $0xa84] ss:$16 sps:$4 sm:$0xff]   ;;  %v12137_v39 = vld [vmem:[#allocation6 + $0xa8c] ss:$16 sps:$4 sm:$0xff]  }
 0x4bc   :  { %9460 = vmatprep.subr.bf16.mxu1 %v12077_v25  ;;  %v12132_v25 = vld [vmem:[#allocation6 + $0xa80] ss:$16 sps:$4 sm:$0xff]  }
 0x4be   :  { %9133 = vmatpush1.bf16.msra.mxu0 %v12072_v43  ;;  %v12135_v43 = vld [vmem:[#allocation6 + $0xa88] ss:$16 sps:$4 sm:$0xff]  }
 0x4bf   :  { %9461 = vmatpush1.bf16.msra.mxu1 %v12075_v44  ;;  %9134 = vmatprep.subr.bf16.mxu0 %v12080_v45  ;;  %v12140_v44 = vld [vmem:[#allocation6 + $0xaa4] ss:$16 sps:$4 sm:$0xff]   ;;  %v12143_v45 = vld [vmem:[#allocation6 + $0xaac] ss:$16 sps:$4 sm:$0xff]  }
 0x4c0   :  { %9462 = vmatprep.subr.bf16.mxu1 %v12083_v46  ;;  %v12138_v46 = vld [vmem:[#allocation6 + $0xaa0] ss:$16 sps:$4 sm:$0xff]  }
 0x4c2   :  { %9135 = vmatpush1.bf16.msra.mxu0 %v12078_v47  ;;  %v12141_v47 = vld [vmem:[#allocation6 + $0xaa8] ss:$16 sps:$4 sm:$0xff]  }
 0x4c3   :  { %9463 = vmatpush1.bf16.msra.mxu1 %v12081_v15  ;;  %9136 = vmatprep.subr.bf16.mxu0 %v12086_v48  ;;  %v12146_v15 = vld [vmem:[#allocation6 + $0xac4] ss:$16 sps:$4 sm:$0xff]   ;;  %v12149_v48 = vld [vmem:[#allocation6 + $0xacc] ss:$16 sps:$4 sm:$0xff]  }
 0x4c4   :  { %9464 = vmatprep.subr.bf16.mxu1 %v12089_v50  ;;  %v12144_v50 = vld [vmem:[#allocation6 + $0xac0] ss:$16 sps:$4 sm:$0xff]  }
 0x4c6   :  { %9137 = vmatpush1.bf16.msra.mxu0 %v12084_v51  ;;  %v12147_v51 = vld [vmem:[#allocation6 + $0xac8] ss:$16 sps:$4 sm:$0xff]  }
 0x4c7   :  { %9465 = vmatpush1.bf16.msra.mxu1 %v12087_v34  ;;  %9138 = vmatprep.subr.bf16.mxu0 %v12092_v7  ;;  %v12152_v34 = vld [vmem:[#allocation6 + $0xae4] ss:$16 sps:$4 sm:$0xff]   ;;  %v12155_v7 = vld [vmem:[#allocation6 + $0xaec] ss:$16 sps:$4 sm:$0xff]  }
 0x4c8   :  { %9466 = vmatprep.subr.bf16.mxu1 %v12095_v52  ;;  %v12150_v52 = vld [vmem:[#allocation6 + $0xae0] ss:$16 sps:$4 sm:$0xff]  }
 0x4ca   :  { %9139 = vmatpush1.bf16.msra.mxu0 %v12090_v38  ;;  %v12153_v38 = vld [vmem:[#allocation6 + $0xae8] ss:$16 sps:$4 sm:$0xff]  }
 0x4cb   :  { %9467 = vmatpush1.bf16.msra.mxu1 %v12093_v57  ;;  %9140 = vmatprep.subr.bf16.mxu0 %v12098_v54  ;;  %v12161_v57 = vld [vmem:[#allocation6 + $0xb0c] ss:$16 sps:$4 sm:$0xff]   ;;  %v12156_v54 = vld [vmem:[#allocation6 + $0xb00] ss:$16 sps:$4 sm:$0xff]  }
 0x4cc   :  { %9468 = vmatprep.subr.bf16.mxu1 %v12101_v55  ;;  %v12159_v55 = vld [vmem:[#allocation6 + $0xb08] ss:$16 sps:$4 sm:$0xff]  }
 0x4ce   :  { %9141 = vmatpush1.bf16.msra.mxu0 %v12096_v58  ;;  %v12167_v58 = vld [vmem:[#allocation6 + $0xb2c] ss:$16 sps:$4 sm:$0xff]  }
 0x4cf   :  { %9469 = vmatpush1.bf16.msra.mxu1 %v12099_v20  ;;  %9142 = vmatprep.subr.bf16.mxu0 %v12104_v60  ;;  %v12165_v20 = vld [vmem:[#allocation6 + $0xb28] ss:$16 sps:$4 sm:$0xff]   ;;  %v12170_v60 = vld [vmem:[#allocation6 + $0xb44] ss:$16 sps:$4 sm:$0xff]  }
 0x4d0   :  { %9470 = vmatprep.subr.bf16.mxu1 %v12107_v10  ;;  %v12173_v10 = vld [vmem:[#allocation6 + $0xb4c] ss:$16 sps:$4 sm:$0xff]  }
 0x4d2   :  { %9143 = vmatpush1.bf16.msra.mxu0 %v12102_v63  ;;  %v12171_v63 = vld [vmem:[#allocation6 + $0xb48] ss:$16 sps:$4 sm:$0xff]  }
 0x4d3   :  { %9471 = vmatpush1.bf16.msra.mxu1 %v12105_v9  ;;  %9153 = vmatprep.subr.bf16.mxu0 %v12110_v19  ;;  %v12179_v9 = vld [vmem:[#allocation6 + $0xb6c] ss:$16 sps:$4 sm:$0xff]   ;;  %v12174_v19 = vld [vmem:[#allocation6 + $0xb60] ss:$16 sps:$4 sm:$0xff]  }
 0x4d4   :  { %9481 = vmatprep.subr.bf16.mxu1 %v12113_v11  ;;  %v12177_v11 = vld [vmem:[#allocation6 + $0xb68] ss:$16 sps:$4 sm:$0xff]  }
 0x4d5   :  { %9145 = vmatmul.mubr.bf16.vlgmr.msra.gmra.mrb[16].mxu0 %v5846_v12 }
 0x4d6   :  { %9473 = vmatmul.mubr.bf16.vlgmr.msra.gmra.mrb[16].mxu1 %v5846_v12  ;;  %9154 = vmatpush1.bf16.msra.mxu0 %v12108_v0  ;;  %v12185_v0 = vld [vmem:[#allocation6 + $0xb8c] ss:$16 sps:$4 sm:$0xff]   ;;  %v12180_v12 = vld [vmem:[#allocation6 + $0xb80] ss:$16 sps:$4 sm:$0xff]  }
 0x4d7   :  { %9185 = vmatprep.mubr.bf16.mxu0 %v5849_v24  ;;  %9482 = vmatpush1.bf16.msra.mxu1 %v12111_v18  ;;  %v12183_v18 = vld [vmem:[#allocation6 + $0xb88] ss:$16 sps:$4 sm:$0xff]  }
 0x4d8   :  { %9513 = vmatprep.mubr.bf16.mxu1 %v5849_v24  ;;  %9155 = vmatprep.subr.bf16.mxu0 %v12116_v21  ;;  %v12188_v21 = vld [vmem:[#allocation6 + $0xba4] ss:$16 sps:$4 sm:$0xff]   ;;  %v12191_v24 = vld [vmem:[#allocation6 + $0xbac] ss:$16 sps:$4 sm:$0xff]  }
 0x4d9   :  { %9483 = vmatprep.subr.bf16.mxu1 %v12119_v8  ;;  %v12186_v8 = vld [vmem:[#allocation6 + $0xba0] ss:$16 sps:$4 sm:$0xff]  }
 0x4da   :  { %9156 = vmatpush1.bf16.msra.mxu0 %v12114_v26  ;;  %v961_v26 = vrot.slane %v12951_v22, %v12922_v13 }
 0x4db   :  { %9484 = vmatpush1.bf16.msra.mxu1 %v12117_v27  ;;  %9157 = vmatprep.subr.bf16.mxu0 %v12122_v28  ;;  %v12189_v27 = vld [vmem:[#allocation6 + $0xba8] ss:$16 sps:$4 sm:$0xff]   ;;  %v12194_v28 = vld [vmem:[#allocation6 + $0xbc4] ss:$16 sps:$4 sm:$0xff]  }
 0x4dc   :  { %9485 = vmatprep.subr.bf16.mxu1 %v12125_v29  ;;  %v12197_v29 = vld [vmem:[#allocation6 + $0xbcc] ss:$16 sps:$4 sm:$0xff]  }
 0x4de   :  { %9158 = vmatpush1.bf16.msra.mxu0 %v12120_v23  ;;  %v973_v23 = vrot.slane %v12951_v22, %v940_v5  ;;  %v12209_v5 = vld [vmem:[#allocation6 + $0xc0c] ss:$16 sps:$4 sm:$0xff]  }
 0x4df   :  { %9486 = vmatpush1.bf16.msra.mxu1 %v12123_v30  ;;  %9159 = vmatprep.subr.bf16.mxu0 %v12128_v31  ;;  %v12192_v30 = vld [vmem:[#allocation6 + $0xbc0] ss:$16 sps:$4 sm:$0xff]   ;;  %v11483_v31 = vadd.f32 %v12903_v6, %v961_v26  ;;  %v12255_v26 = vld [vmem:[#allocation6 + $0xd08] ss:$16 sps:$4 sm:$0xff]  }
 0x4e0   :  { %9487 = vmatprep.subr.bf16.mxu1 %v12131_v32  ;;  %v12195_v32 = vld [vmem:[#allocation6 + $0xbc8] ss:$16 sps:$4 sm:$0xff]   ;;  %v12204_v6 = vld [vmem:[#allocation6 + $0xc00] ss:$16 sps:$4 sm:$0xff]  }
 0x4e2   :  { %9160 = vmatpush1.bf16.msra.mxu0 %v12126_v33  ;;  %v12200_v33 = vld [vmem:[#allocation6 + $0xbe4] ss:$16 sps:$4 sm:$0xff]  }
 0x4e3   :  { %9488 = vmatpush1.bf16.msra.mxu1 %v12129_v35  ;;  %9161 = vmatprep.subr.bf16.mxu0 %v12134_v36  ;;  %v12203_v35 = vld [vmem:[#allocation6 + $0xbec] ss:$16 sps:$4 sm:$0xff]   ;;  %v11486_v36 = vadd.f32 %v12946_v41, %v973_v23  ;;  %v12261_v23 = vld [vmem:[#allocation6 + $0xd28] ss:$16 sps:$4 sm:$0xff]  }
 0x4e4   :  { %9489 = vmatprep.subr.bf16.mxu1 %v12137_v39  ;;  %v12198_v39 = vld [vmem:[#allocation6 + $0xbe0] ss:$16 sps:$4 sm:$0xff]   ;;  %v12215_v41 = vld [vmem:[#allocation6 + $0xc2c] ss:$16 sps:$4 sm:$0xff]  }
 0x4e6   :  { %9162 = vmatpush1.bf16.msra.mxu0 %v12132_v25  ;;  %v5832_v25 = vmax.f32 %v11483_v31, 0.0  ;;  %v12269_v31 = vld [vmem:[#allocation6 + $0xd4c] ss:$16 sps:$4 sm:$0xff]  }
 0x4e7   :  { %9490 = vmatpush1.bf16.msra.mxu1 %v12135_v43  ;;  %9163 = vmatprep.subr.bf16.mxu0 %v12140_v44  ;;  %v12201_v43 = vld [vmem:[#allocation6 + $0xbe8] ss:$16 sps:$4 sm:$0xff]   ;;  %v12206_v44 = vld [vmem:[#allocation6 + $0xc04] ss:$16 sps:$4 sm:$0xff]  }
 0x4e8   :  { %9491 = vmatprep.subr.bf16.mxu1 %v12143_v45  ;;  %v5835_v45 = vmax.f32 %v11486_v36, 0.0  ;;  %v12275_v36 = vld [vmem:[#allocation6 + $0xd6c] ss:$16 sps:$4 sm:$0xff]  }
 0x4ea   :  { %9164 = vmatpush1.bf16.msra.mxu0 %v12138_v46  ;;  %v5848_v46 = vpack.c.bf16 %v5832_v25, %v5832_v25  ;;  %v12273_v25 = vld [vmem:[#allocation6 + $0xd68] ss:$16 sps:$4 sm:$0xff]  }
 0x4eb   :  { %9492 = vmatpush1.bf16.msra.mxu1 %v12141_v47  ;;  %9165 = vmatprep.subr.bf16.mxu0 %v12146_v15  ;;  %v12207_v47 = vld [vmem:[#allocation6 + $0xc08] ss:$16 sps:$4 sm:$0xff]   ;;  %v12212_v15 = vld [vmem:[#allocation6 + $0xc24] ss:$16 sps:$4 sm:$0xff]  }
 0x4ec   :  { %9493 = vmatprep.subr.bf16.mxu1 %v12149_v48  ;;  %v5851_v48 = vpack.c.bf16 %v5835_v45, %v5835_v45  ;;  %v12279_v45 = vld [vmem:[#allocation6 + $0xd88] ss:$16 sps:$4 sm:$0xff]  }
 0x4ee   :  { %9166 = vmatpush1.bf16.msra.mxu0 %v12144_v50  ;;  %v12210_v50 = vld [vmem:[#allocation6 + $0xc20] ss:$16 sps:$4 sm:$0xff]  }
 0x4ef   :  { %9494 = vmatpush1.bf16.msra.mxu1 %v12147_v51  ;;  %9167 = vmatprep.subr.bf16.mxu0 %v12152_v34  ;;  %v12213_v51 = vld [vmem:[#allocation6 + $0xc28] ss:$16 sps:$4 sm:$0xff]   ;;  %v12218_v34 = vld [vmem:[#allocation6 + $0xc44] ss:$16 sps:$4 sm:$0xff]  }
 0x4f0   :  { %9495 = vmatprep.subr.bf16.mxu1 %v12155_v7  ;;  %v12221_v7 = vld [vmem:[#allocation6 + $0xc4c] ss:$16 sps:$4 sm:$0xff]  }
 0x4f2   :  { %9168 = vmatpush1.bf16.msra.mxu0 %v12150_v52  ;;  %v12216_v52 = vld [vmem:[#allocation6 + $0xc40] ss:$16 sps:$4 sm:$0xff]  }
 0x4f3   :  { %9496 = vmatpush1.bf16.msra.mxu1 %v12153_v38  ;;  %9169 = vmatprep.subr.bf16.mxu0 %v12158_v53  ;;  %v12219_v38 = vld [vmem:[#allocation6 + $0xc48] ss:$16 sps:$4 sm:$0xff]   ;;  %v12224_v53 = vld [vmem:[#allocation6 + $0xc64] ss:$16 sps:$4 sm:$0xff]  }
 0x4f4   :  { %9497 = vmatprep.subr.bf16.mxu1 %v12161_v57  ;;  %v12227_v57 = vld [vmem:[#allocation6 + $0xc6c] ss:$16 sps:$4 sm:$0xff]  }
 0x4f6   :  { %9170 = vmatpush1.bf16.msra.mxu0 %v12156_v54  ;;  %v12222_v54 = vld [vmem:[#allocation6 + $0xc60] ss:$16 sps:$4 sm:$0xff]  }
 0x4f7   :  { %9498 = vmatpush1.bf16.msra.mxu1 %v12159_v55  ;;  %9171 = vmatprep.subr.bf16.mxu0 %v12164_v56  ;;  %v12225_v55 = vld [vmem:[#allocation6 + $0xc68] ss:$16 sps:$4 sm:$0xff]   ;;  %v12230_v56 = vld [vmem:[#allocation6 + $0xc84] ss:$16 sps:$4 sm:$0xff]  }
 0x4f8   :  { %9499 = vmatprep.subr.bf16.mxu1 %v12167_v58  ;;  %v12233_v58 = vld [vmem:[#allocation6 + $0xc8c] ss:$16 sps:$4 sm:$0xff]  }
 0x4fa   :  { %9172 = vmatpush1.bf16.msra.mxu0 %v12162_v59  ;;  %v12228_v59 = vld [vmem:[#allocation6 + $0xc80] ss:$16 sps:$4 sm:$0xff]  }
 0x4fb   :  { %9500 = vmatpush1.bf16.msra.mxu1 %v12165_v20  ;;  %9173 = vmatprep.subr.bf16.mxu0 %v12170_v60  ;;  %v12231_v20 = vld [vmem:[#allocation6 + $0xc88] ss:$16 sps:$4 sm:$0xff]   ;;  %v12236_v60 = vld [vmem:[#allocation6 + $0xca4] ss:$16 sps:$4 sm:$0xff]  }
 0x4fc   :  { %9501 = vmatprep.subr.bf16.mxu1 %v12173_v10  ;;  %v12239_v10 = vld [vmem:[#allocation6 + $0xcac] ss:$16 sps:$4 sm:$0xff]  }
 0x4fe   :  { %9174 = vmatpush1.bf16.msra.mxu0 %v12168_v62  ;;  %v12234_v62 = vld [vmem:[#allocation6 + $0xca0] ss:$16 sps:$4 sm:$0xff]  }
 0x4ff   :  { %9502 = vmatpush1.bf16.msra.mxu1 %v12171_v63  ;;  %9175 = vmatprep.subr.bf16.mxu0 %v12176_v4  ;;  %v12237_v63 = vld [vmem:[#allocation6 + $0xca8] ss:$16 sps:$4 sm:$0xff]   ;;  %v12242_v4 = vld [vmem:[#allocation6 + $0xcc4] ss:$16 sps:$4 sm:$0xff]  }
 0x500   :  { %9503 = vmatprep.subr.bf16.mxu1 %v12179_v9  ;;  %v12245_v9 = vld [vmem:[#allocation6 + $0xccc] ss:$16 sps:$4 sm:$0xff]  }
 0x502   :  { %9176 = vmatpush1.bf16.msra.mxu0 %v12174_v19  ;;  %v12240_v19 = vld [vmem:[#allocation6 + $0xcc0] ss:$16 sps:$4 sm:$0xff]  }
 0x503   :  { %9504 = vmatpush1.bf16.msra.mxu1 %v12177_v11  ;;  %9177 = vmatprep.subr.bf16.mxu0 %v12182_v61  ;;  %v12243_v11 = vld [vmem:[#allocation6 + $0xcc8] ss:$16 sps:$4 sm:$0xff]   ;;  %v12248_v61 = vld [vmem:[#allocation6 + $0xce4] ss:$16 sps:$4 sm:$0xff]  }
 0x504   :  { %9505 = vmatprep.subr.bf16.mxu1 %v12185_v0  ;;  %v12251_v0 = vld [vmem:[#allocation6 + $0xcec] ss:$16 sps:$4 sm:$0xff]  }
 0x506   :  { %9178 = vmatpush1.bf16.msra.mxu0 %v12180_v12  ;;  %v12246_v12 = vld [vmem:[#allocation6 + $0xce0] ss:$16 sps:$4 sm:$0xff]  }
 0x507   :  { %9506 = vmatpush1.bf16.msra.mxu1 %v12183_v18  ;;  %9179 = vmatprep.subr.bf16.mxu0 %v12188_v21  ;;  %v12249_v18 = vld [vmem:[#allocation6 + $0xce8] ss:$16 sps:$4 sm:$0xff]   ;;  %v12254_v21 = vld [vmem:[#allocation6 + $0xd04] ss:$16 sps:$4 sm:$0xff]  }
 0x508   :  { %9507 = vmatprep.subr.bf16.mxu1 %v12191_v24  ;;  %v12257_v24 = vld [vmem:[#allocation6 + $0xd0c] ss:$16 sps:$4 sm:$0xff]  }
 0x50a   :  { %9180 = vmatpush1.bf16.msra.mxu0 %v12186_v8  ;;  %v12252_v8 = vld [vmem:[#allocation6 + $0xd00] ss:$16 sps:$4 sm:$0xff]  }
 0x50b   :  { %9508 = vmatpush1.bf16.msra.mxu1 %v12189_v27  ;;  %9181 = vmatprep.subr.bf16.mxu0 %v12194_v28  ;;  %v12260_v27 = vld [vmem:[#allocation6 + $0xd24] ss:$16 sps:$4 sm:$0xff]   ;;  %v12263_v28 = vld [vmem:[#allocation6 + $0xd2c] ss:$16 sps:$4 sm:$0xff]  }
 0x50c   :  { %9509 = vmatprep.subr.bf16.mxu1 %v12197_v29  ;;  %v12258_v29 = vld [vmem:[#allocation6 + $0xd20] ss:$16 sps:$4 sm:$0xff]  }
 0x50e   :  { %9182 = vmatpush1.bf16.msra.mxu0 %v12192_v30  ;;  %v12266_v30 = vld [vmem:[#allocation6 + $0xd44] ss:$16 sps:$4 sm:$0xff]  }
 0x50f   :  { %9510 = vmatpush1.bf16.msra.mxu1 %v12195_v32  ;;  %9183 = vmatprep.subr.bf16.mxu0 %v12200_v33  ;;  %v12264_v32 = vld [vmem:[#allocation6 + $0xd40] ss:$16 sps:$4 sm:$0xff]   ;;  %v12267_v33 = vld [vmem:[#allocation6 + $0xd48] ss:$16 sps:$4 sm:$0xff]  }
 0x510   :  { %9511 = vmatprep.subr.bf16.mxu1 %v12203_v35  ;;  %v12272_v35 = vld [vmem:[#allocation6 + $0xd64] ss:$16 sps:$4 sm:$0xff]  }
 0x512   :  { %9184 = vmatpush1.bf16.msra.mxu0 %v12198_v39  ;;  %v12270_v39 = vld [vmem:[#allocation6 + $0xd60] ss:$16 sps:$4 sm:$0xff]  }
 0x513   :  { %9512 = vmatpush1.bf16.msra.mxu1 %v12201_v43  ;;  %9194 = vmatprep.subr.bf16.mxu0 %v12206_v44  ;;  %v12278_v43 = vld [vmem:[#allocation6 + $0xd84] ss:$16 sps:$4 sm:$0xff]   ;;  %v12281_v44 = vld [vmem:[#allocation6 + $0xd8c] ss:$16 sps:$4 sm:$0xff]  }
 0x514   :  { %9522 = vmatprep.subr.bf16.mxu1 %v12209_v5  ;;  %v12276_v5 = vld [vmem:[#allocation6 + $0xd80] ss:$16 sps:$4 sm:$0xff]  }
 0x515   :  { %9186 = vmatmul.mubr.bf16.vlgmr.msra.gmra.mrb[16].mxu0 %v5848_v46 }
 0x516   :  { %9514 = vmatmul.mubr.bf16.vlgmr.msra.gmra.mrb[16].mxu1 %v5848_v46  ;;  %9195 = vmatpush1.bf16.msra.mxu0 %v12204_v6  ;;  %v12284_v6 = vld [vmem:[#allocation6 + $0xda4] ss:$16 sps:$4 sm:$0xff]   ;;  %v12287_v46 = vld [vmem:[#allocation6 + $0xdac] ss:$16 sps:$4 sm:$0xff]  }
 0x517   :  { %9226 = vmatprep.mubr.bf16.mxu0 %v5851_v48  ;;  %9523 = vmatpush1.bf16.msra.mxu1 %v12207_v47  ;;  %v12282_v47 = vld [vmem:[#allocation6 + $0xda0] ss:$16 sps:$4 sm:$0xff]  }
 0x518   :  { %9554 = vmatprep.mubr.bf16.mxu1 %v5851_v48  ;;  %9196 = vmatprep.subr.bf16.mxu0 %v12212_v15  ;;  %v969_v15 = vrot.slane %v12951_v22, %v936_v42  ;;  %v12285_v48 = vld [vmem:[#allocation6 + $0xda8] ss:$16 sps:$4 sm:$0xff]   ;;  %v12299_v42 = vld [vmem:[#allocation6 + $0xdec] ss:$16 sps:$4 sm:$0xff]  }
 0x519   :  { %9524 = vmatprep.subr.bf16.mxu1 %v12215_v41  ;;  %v12290_v41 = vld [vmem:[#allocation6 + $0xdc4] ss:$16 sps:$4 sm:$0xff]  }
 0x51a   :  { %9197 = vmatpush1.bf16.msra.mxu0 %v12210_v50  ;;  %v12293_v50 = vld [vmem:[#allocation6 + $0xdcc] ss:$16 sps:$4 sm:$0xff]  }
 0x51b   :  { %9525 = vmatpush1.bf16.msra.mxu1 %v12213_v51  ;;  %9198 = vmatprep.subr.bf16.mxu0 %v12218_v34  ;;  %v981_v51 = vrot.slane %v12951_v22, %v948_v16  ;;  %v12288_v34 = vld [vmem:[#allocation6 + $0xdc0] ss:$16 sps:$4 sm:$0xff]   ;;  %v12305_v16 = vld [vmem:[#allocation6 + $0xe0c] ss:$16 sps:$4 sm:$0xff]  }
 0x51c   :  { %9526 = vmatprep.subr.bf16.mxu1 %v12221_v7  ;;  %v11485_v7 = vadd.f32 %v12942_v37, %v969_v15  ;;  %v12300_v37 = vld [vmem:[#allocation6 + $0xe00] ss:$16 sps:$4 sm:$0xff]   ;;  %v12362_v15 = vld [vmem:[#allocation6 + $0xf44] ss:$16 sps:$4 sm:$0xff]  }
 0x51e   :  { %9199 = vmatpush1.bf16.msra.mxu0 %v12216_v52  ;;  %v12291_v52 = vld [vmem:[#allocation6 + $0xdc8] ss:$16 sps:$4 sm:$0xff]  }
 0x51f   :  { %9527 = vmatpush1.bf16.msra.mxu1 %v12219_v38  ;;  %9200 = vmatprep.subr.bf16.mxu0 %v12224_v53  ;;  %v12296_v38 = vld [vmem:[#allocation6 + $0xde4] ss:$16 sps:$4 sm:$0xff]   ;;  %v11488_v53 = vadd.f32 %v12948_v1, %v981_v51  ;;  %v12311_v1 = vld [vmem:[#allocation6 + $0xe2c] ss:$16 sps:$4 sm:$0xff]  }
 0x520   :  { %9528 = vmatprep.subr.bf16.mxu1 %v12227_v57  ;;  %v12294_v57 = vld [vmem:[#allocation6 + $0xde0] ss:$16 sps:$4 sm:$0xff]   ;;  %v12368_v51 = vld [vmem:[#allocation6 + $0xf64] ss:$16 sps:$4 sm:$0xff]  }
 0x521   :  { %v5837_v22 = vmax.f32 %v11488_v53, 0.0  ;;  %v12372_v53 = vld [vmem:[#allocation6 + $0xf80] ss:$16 sps:$4 sm:$0xff]  }
 0x522   :  { %9201 = vmatpush1.bf16.msra.mxu0 %v12222_v54  ;;  %v5834_v54 = vmax.f32 %v11485_v7, 0.0  ;;  %v12366_v7 = vld [vmem:[#allocation6 + $0xf60] ss:$16 sps:$4 sm:$0xff]  }
 0x523   :  { %9529 = vmatpush1.bf16.msra.mxu1 %v12225_v55  ;;  %9202 = vmatprep.subr.bf16.mxu0 %v12230_v56  ;;  %v12297_v55 = vld [vmem:[#allocation6 + $0xde8] ss:$16 sps:$4 sm:$0xff]   ;;  %v12302_v56 = vld [vmem:[#allocation6 + $0xe04] ss:$16 sps:$4 sm:$0xff]  }
 0x524   :  { %9530 = vmatprep.subr.bf16.mxu1 %v12233_v58  ;;  %v5850_v58 = vpack.c.bf16 %v5834_v54, %v5834_v54  ;;  %v12380_v54 = vld [vmem:[#allocation6 + $0xfa4] ss:$16 sps:$4 sm:$0xff]  }
 0x526   :  { %9203 = vmatpush1.bf16.msra.mxu0 %v12228_v59  ;;  %v12303_v59 = vld [vmem:[#allocation6 + $0xe08] ss:$16 sps:$4 sm:$0xff]  }
 0x527   :  { %9531 = vmatpush1.bf16.msra.mxu1 %v12231_v20  ;;  %9204 = vmatprep.subr.bf16.mxu0 %v12236_v60  ;;  %v12308_v20 = vld [vmem:[#allocation6 + $0xe24] ss:$16 sps:$4 sm:$0xff]   ;;  %v5853_v60 = vpack.c.bf16 %v5837_v22, %v5837_v22 }
 0x528   :  { %9532 = vmatprep.subr.bf16.mxu1 %v12239_v10  ;;  %v12306_v10 = vld [vmem:[#allocation6 + $0xe20] ss:$16 sps:$4 sm:$0xff]  }
 0x52a   :  { %9205 = vmatpush1.bf16.msra.mxu0 %v12234_v62  ;;  %v12309_v62 = vld [vmem:[#allocation6 + $0xe28] ss:$16 sps:$4 sm:$0xff]  }
 0x52b   :  { %9533 = vmatpush1.bf16.msra.mxu1 %v12237_v63  ;;  %9206 = vmatprep.subr.bf16.mxu0 %v12242_v4  ;;  %v12314_v63 = vld [vmem:[#allocation6 + $0xe44] ss:$16 sps:$4 sm:$0xff]   ;;  %v12317_v4 = vld [vmem:[#allocation6 + $0xe4c] ss:$16 sps:$4 sm:$0xff]  }
 0x52c   :  { %9534 = vmatprep.subr.bf16.mxu1 %v12245_v9  ;;  %v12312_v9 = vld [vmem:[#allocation6 + $0xe40] ss:$16 sps:$4 sm:$0xff]  }
 0x52e   :  { %9207 = vmatpush1.bf16.msra.mxu0 %v12240_v19  ;;  %v12315_v19 = vld [vmem:[#allocation6 + $0xe48] ss:$16 sps:$4 sm:$0xff]  }
 0x52f   :  { %9535 = vmatpush1.bf16.msra.mxu1 %v12243_v11  ;;  %9208 = vmatprep.subr.bf16.mxu0 %v12248_v61  ;;  %v12320_v11 = vld [vmem:[#allocation6 + $0xe64] ss:$16 sps:$4 sm:$0xff]   ;;  %v12323_v61 = vld [vmem:[#allocation6 + $0xe6c] ss:$16 sps:$4 sm:$0xff]  }
 0x530   :  { %9536 = vmatprep.subr.bf16.mxu1 %v12251_v0  ;;  %v12318_v0 = vld [vmem:[#allocation6 + $0xe60] ss:$16 sps:$4 sm:$0xff]  }
 0x532   :  { %9209 = vmatpush1.bf16.msra.mxu0 %v12246_v12  ;;  %v12321_v12 = vld [vmem:[#allocation6 + $0xe68] ss:$16 sps:$4 sm:$0xff]  }
 0x533   :  { %9537 = vmatpush1.bf16.msra.mxu1 %v12249_v18  ;;  %9210 = vmatprep.subr.bf16.mxu0 %v12254_v21  ;;  %v12326_v18 = vld [vmem:[#allocation6 + $0xe84] ss:$16 sps:$4 sm:$0xff]   ;;  %v12329_v21 = vld [vmem:[#allocation6 + $0xe8c] ss:$16 sps:$4 sm:$0xff]  }
 0x534   :  { %9538 = vmatprep.subr.bf16.mxu1 %v12257_v24  ;;  %v12324_v24 = vld [vmem:[#allocation6 + $0xe80] ss:$16 sps:$4 sm:$0xff]  }
 0x536   :  { %9211 = vmatpush1.bf16.msra.mxu0 %v12252_v8  ;;  %v12327_v8 = vld [vmem:[#allocation6 + $0xe88] ss:$16 sps:$4 sm:$0xff]  }
 0x537   :  { %9539 = vmatpush1.bf16.msra.mxu1 %v12255_v26  ;;  %9212 = vmatprep.subr.bf16.mxu0 %v12260_v27  ;;  %v12332_v26 = vld [vmem:[#allocation6 + $0xea4] ss:$16 sps:$4 sm:$0xff]   ;;  %v12335_v27 = vld [vmem:[#allocation6 + $0xeac] ss:$16 sps:$4 sm:$0xff]  }
 0x538   :  { %9540 = vmatprep.subr.bf16.mxu1 %v12263_v28  ;;  %v12330_v28 = vld [vmem:[#allocation6 + $0xea0] ss:$16 sps:$4 sm:$0xff]  }
 0x53a   :  { %9213 = vmatpush1.bf16.msra.mxu0 %v12258_v29  ;;  %v12333_v29 = vld [vmem:[#allocation6 + $0xea8] ss:$16 sps:$4 sm:$0xff]  }
 0x53b   :  { %9541 = vmatpush1.bf16.msra.mxu1 %v12261_v23  ;;  %9214 = vmatprep.subr.bf16.mxu0 %v12266_v30  ;;  %v12338_v23 = vld [vmem:[#allocation6 + $0xec4] ss:$16 sps:$4 sm:$0xff]   ;;  %v12341_v30 = vld [vmem:[#allocation6 + $0xecc] ss:$16 sps:$4 sm:$0xff]  }
 0x53c   :  { %9542 = vmatprep.subr.bf16.mxu1 %v12269_v31  ;;  %v12336_v31 = vld [vmem:[#allocation6 + $0xec0] ss:$16 sps:$4 sm:$0xff]  }
 0x53e   :  { %9215 = vmatpush1.bf16.msra.mxu0 %v12264_v32  ;;  %v12339_v32 = vld [vmem:[#allocation6 + $0xec8] ss:$16 sps:$4 sm:$0xff]  }
 0x53f   :  { %9543 = vmatpush1.bf16.msra.mxu1 %v12267_v33  ;;  %9216 = vmatprep.subr.bf16.mxu0 %v12272_v35  ;;  %v12344_v33 = vld [vmem:[#allocation6 + $0xee4] ss:$16 sps:$4 sm:$0xff]   ;;  %v12347_v35 = vld [vmem:[#allocation6 + $0xeec] ss:$16 sps:$4 sm:$0xff]  }
 0x540   :  { %9544 = vmatprep.subr.bf16.mxu1 %v12275_v36  ;;  %v12342_v36 = vld [vmem:[#allocation6 + $0xee0] ss:$16 sps:$4 sm:$0xff]  }
 0x542   :  { %9217 = vmatpush1.bf16.msra.mxu0 %v12270_v39  ;;  %v12345_v39 = vld [vmem:[#allocation6 + $0xee8] ss:$16 sps:$4 sm:$0xff]  }
 0x543   :  { %9545 = vmatpush1.bf16.msra.mxu1 %v12273_v25  ;;  %9218 = vmatprep.subr.bf16.mxu0 %v12278_v43  ;;  %v12350_v25 = vld [vmem:[#allocation6 + $0xf04] ss:$16 sps:$4 sm:$0xff]   ;;  %v12353_v43 = vld [vmem:[#allocation6 + $0xf0c] ss:$16 sps:$4 sm:$0xff]  }
 0x544   :  { %9546 = vmatprep.subr.bf16.mxu1 %v12281_v44  ;;  %v12348_v44 = vld [vmem:[#allocation6 + $0xf00] ss:$16 sps:$4 sm:$0xff]  }
 0x546   :  { %9219 = vmatpush1.bf16.msra.mxu0 %v12276_v5  ;;  %v12351_v5 = vld [vmem:[#allocation6 + $0xf08] ss:$16 sps:$4 sm:$0xff]  }
 0x547   :  { %9547 = vmatpush1.bf16.msra.mxu1 %v12279_v45  ;;  %9220 = vmatprep.subr.bf16.mxu0 %v12284_v6  ;;  %v12356_v45 = vld [vmem:[#allocation6 + $0xf24] ss:$16 sps:$4 sm:$0xff]   ;;  %v12359_v6 = vld [vmem:[#allocation6 + $0xf2c] ss:$16 sps:$4 sm:$0xff]  }
 0x548   :  { %9548 = vmatprep.subr.bf16.mxu1 %v12287_v46  ;;  %v12354_v46 = vld [vmem:[#allocation6 + $0xf20] ss:$16 sps:$4 sm:$0xff]  }
 0x54a   :  { %9221 = vmatpush1.bf16.msra.mxu0 %v12282_v47  ;;  %v12357_v47 = vld [vmem:[#allocation6 + $0xf28] ss:$16 sps:$4 sm:$0xff]  }
 0x54b   :  { %9549 = vmatpush1.bf16.msra.mxu1 %v12285_v48  ;;  %9222 = vmatprep.subr.bf16.mxu0 %v12290_v41  ;;  %v12365_v48 = vld [vmem:[#allocation6 + $0xf4c] ss:$16 sps:$4 sm:$0xff]   ;;  %v12360_v41 = vld [vmem:[#allocation6 + $0xf40] ss:$16 sps:$4 sm:$0xff]  }
 0x54c   :  { %9550 = vmatprep.subr.bf16.mxu1 %v12293_v50  ;;  %v12363_v50 = vld [vmem:[#allocation6 + $0xf48] ss:$16 sps:$4 sm:$0xff]  }
 0x54e   :  { %9223 = vmatpush1.bf16.msra.mxu0 %v12288_v34  ;;  %v12371_v34 = vld [vmem:[#allocation6 + $0xf6c] ss:$16 sps:$4 sm:$0xff]  }
 0x54f   :  { %9551 = vmatpush1.bf16.msra.mxu1 %v12291_v52  ;;  %9224 = vmatprep.subr.bf16.mxu0 %v12296_v38  ;;  %v12369_v52 = vld [vmem:[#allocation6 + $0xf68] ss:$16 sps:$4 sm:$0xff]   ;;  %v12374_v38 = vld [vmem:[#allocation6 + $0xf84] ss:$16 sps:$4 sm:$0xff]  }
 0x550   :  { %9552 = vmatprep.subr.bf16.mxu1 %v12299_v42  ;;  %v12377_v42 = vld [vmem:[#allocation6 + $0xf8c] ss:$16 sps:$4 sm:$0xff]  }
 0x552   :  { %9225 = vmatpush1.bf16.msra.mxu0 %v12294_v57  ;;  %v12375_v57 = vld [vmem:[#allocation6 + $0xf88] ss:$16 sps:$4 sm:$0xff]  }
 0x553   :  { %9553 = vmatpush1.bf16.msra.mxu1 %v12297_v55  ;;  %9235 = vmatprep.subr.bf16.mxu0 %v12302_v56  ;;  %v12383_v55 = vld [vmem:[#allocation6 + $0xfac] ss:$16 sps:$4 sm:$0xff]   ;;  %v12378_v56 = vld [vmem:[#allocation6 + $0xfa0] ss:$16 sps:$4 sm:$0xff]  }
 0x554   :  { %9563 = vmatprep.subr.bf16.mxu1 %v12305_v16  ;;  %v12437_v16 = vld [vmem:[#allocation4 + $0x8] sm:$0xff] }
 0x555   :  { %9227 = vmatmul.mubr.bf16.vlgmr.msra.gmra.mrb[16].mxu0 %v5850_v58  ;;  %v977_v22 = vrot.slane %v12437_v16, %v944_v14  ;;  %v12393_v14 = vld [vmem:[#allocation6 + $0xfe8] ss:$16 sps:$4 sm:$0xff]  }
 0x556   :  { %9555 = vmatmul.mubr.bf16.vlgmr.msra.gmra.mrb[16].mxu1 %v5850_v58  ;;  %9236 = vmatpush1.bf16.msra.mxu0 %v12300_v37  ;;  %v12381_v37 = vld [vmem:[#allocation6 + $0xfa8] ss:$16 sps:$4 sm:$0xff]   ;;  %v12386_v58 = vld [vmem:[#allocation6 + $0xfc4] ss:$16 sps:$4 sm:$0xff]  }
 0x557   :  { %9267 = vmatprep.mubr.bf16.mxu0 %v5853_v60  ;;  %9564 = vmatpush1.bf16.msra.mxu1 %v12303_v59  ;;  %v12389_v59 = vld [vmem:[#allocation6 + $0xfcc] ss:$16 sps:$4 sm:$0xff]  }
 0x558   :  { %9595 = vmatprep.mubr.bf16.mxu1 %v5853_v60  ;;  %9237 = vmatprep.subr.bf16.mxu0 %v12308_v20  ;;  %v12384_v20 = vld [vmem:[#allocation6 + $0xfc0] ss:$16 sps:$4 sm:$0xff]   ;;  %v11487_v60 = vadd.f32 %v12944_v40, %v977_v22  ;;  %v12399_v40 = vld [vmem:[#allocation9 + $0x80] sm:$0xff]  }
 0x559   :  { %9565 = vmatprep.subr.bf16.mxu1 %v12311_v1  ;;  %v12387_v1 = vld [vmem:[#allocation6 + $0xfc8] ss:$16 sps:$4 sm:$0xff]  }
 0x55a   :  { %9238 = vmatpush1.bf16.msra.mxu0 %v12306_v10  ;;  %v12392_v10 = vld [vmem:[#allocation6 + $0xfe4] ss:$16 sps:$4 sm:$0xff]   ;;  %v5836_v3 = vmax.f32 %v11487_v60, 0.0 }
 0x55b   :  { %9566 = vmatpush1.bf16.msra.mxu1 %v12309_v62  ;;  %9239 = vmatprep.subr.bf16.mxu0 %v12314_v63  ;;  %v12395_v62 = vld [vmem:[#allocation6 + $0xfec] ss:$16 sps:$4 sm:$0xff]   ;;  %v12390_v63 = vld [vmem:[#allocation6 + $0xfe0] ss:$16 sps:$4 sm:$0xff]  }
 0x55c   :  { %9567 = vmatprep.subr.bf16.mxu1 %v12317_v4  ;;  %v12396_v4 = vld [vmem:[#allocation9 + $0x40] sm:$0xff]  }
 0x55e   :  { %9240 = vmatpush1.bf16.msra.mxu0 %v12312_v9  ;;  %v12397_v9 = vld [vmem:[#allocation9 + $0xc0] sm:$0xff]  }
 0x55f   :  { %9568 = vmatpush1.bf16.msra.mxu1 %v12315_v19  ;;  %9241 = vmatprep.subr.bf16.mxu0 %v12320_v11  ;;  %v12398_v19 = vld [vmem:[#allocation9] sm:$0xff]   ;;  %v5852_v11 = vpack.c.bf16 %v5836_v3, %v5836_v3 }
 0x560   :  { %9569 = vmatprep.subr.bf16.mxu1 %v12323_v61  ;;  %v12400_v61 = vld [vmem:[#allocation9 + $0x48] sm:$0xff]   ;;  %v12431_v3 = vld [vmem:[#allocation12 + $0x18] sm:$0xff]  }
 0x562   :  { %9242 = vmatpush1.bf16.msra.mxu0 %v12318_v0  ;;  %v12401_v0 = vld [vmem:[#allocation9 + $0xc8] sm:$0xff]  }
 0x563   :  { %9570 = vmatpush1.bf16.msra.mxu1 %v12321_v12  ;;  %9243 = vmatprep.subr.bf16.mxu0 %v12326_v18  ;;  %v12402_v12 = vld [vmem:[#allocation9 + $0x8] sm:$0xff]  }
 0x564   :  { %9571 = vmatprep.subr.bf16.mxu1 %v12329_v21  ;;  %v12403_v18 = vld [vmem:[#allocation9 + $0x88] sm:$0xff]   ;;  %v12404_v21 = vld [vmem:[#allocation9 + $0x50] sm:$0xff]  }
 0x566   :  { %9244 = vmatpush1.bf16.msra.mxu0 %v12324_v24  ;;  %v12405_v24 = vld [vmem:[#allocation9 + $0xd0] sm:$0xff]  }
 0x567   :  { %9572 = vmatpush1.bf16.msra.mxu1 %v12327_v8  ;;  %9245 = vmatprep.subr.bf16.mxu0 %v12332_v26  ;;  %v12406_v8 = vld [vmem:[#allocation9 + $0x10] sm:$0xff]  }
 0x568   :  { %9573 = vmatprep.subr.bf16.mxu1 %v12335_v27  ;;  %v12407_v26 = vld [vmem:[#allocation9 + $0x90] sm:$0xff]   ;;  %v12408_v27 = vld [vmem:[#allocation9 + $0x58] sm:$0xff]  }
 0x56a   :  { %9246 = vmatpush1.bf16.msra.mxu0 %v12330_v28  ;;  %v12409_v28 = vld [vmem:[#allocation9 + $0xd8] sm:$0xff]  }
 0x56b   :  { %9574 = vmatpush1.bf16.msra.mxu1 %v12333_v29  ;;  %9247 = vmatprep.subr.bf16.mxu0 %v12338_v23  ;;  %v12410_v29 = vld [vmem:[#allocation9 + $0x18] sm:$0xff]  }
 0x56c   :  { %9575 = vmatprep.subr.bf16.mxu1 %v12341_v30  ;;  %v12411_v23 = vld [vmem:[#allocation9 + $0x98] sm:$0xff]   ;;  %v12412_v30 = vld [vmem:[#allocation9 + $0x60] sm:$0xff]  }
 0x56e   :  { %9248 = vmatpush1.bf16.msra.mxu0 %v12336_v31  ;;  %v12413_v31 = vld [vmem:[#allocation9 + $0xe0] sm:$0xff]  }
 0x56f   :  { %9576 = vmatpush1.bf16.msra.mxu1 %v12339_v32  ;;  %9249 = vmatprep.subr.bf16.mxu0 %v12344_v33  ;;  %v12414_v32 = vld [vmem:[#allocation9 + $0x20] sm:$0xff]  }
 0x570   :  { %9577 = vmatprep.subr.bf16.mxu1 %v12347_v35  ;;  %v12415_v33 = vld [vmem:[#allocation9 + $0xa0] sm:$0xff]   ;;  %v12416_v35 = vld [vmem:[#allocation9 + $0x68] sm:$0xff]  }
 0x572   :  { %9250 = vmatpush1.bf16.msra.mxu0 %v12342_v36  ;;  %v12417_v36 = vld [vmem:[#allocation9 + $0xe8] sm:$0xff]  }
 0x573   :  { %9578 = vmatpush1.bf16.msra.mxu1 %v12345_v39  ;;  %9251 = vmatprep.subr.bf16.mxu0 %v12350_v25  ;;  %v12418_v39 = vld [vmem:[#allocation9 + $0x28] sm:$0xff]  }
 0x574   :  { %9579 = vmatprep.subr.bf16.mxu1 %v12353_v43  ;;  %v12419_v25 = vld [vmem:[#allocation9 + $0xa8] sm:$0xff]   ;;  %v12420_v43 = vld [vmem:[#allocation9 + $0x70] sm:$0xff]  }
 0x576   :  { %9252 = vmatpush1.bf16.msra.mxu0 %v12348_v44  ;;  %v12421_v44 = vld [vmem:[#allocation9 + $0xf0] sm:$0xff]  }
 0x577   :  { %9580 = vmatpush1.bf16.msra.mxu1 %v12351_v5  ;;  %9253 = vmatprep.subr.bf16.mxu0 %v12356_v45  ;;  %v12422_v5 = vld [vmem:[#allocation9 + $0x30] sm:$0xff]  }
 0x578   :  { %9581 = vmatprep.subr.bf16.mxu1 %v12359_v6  ;;  %v12423_v45 = vld [vmem:[#allocation9 + $0xb0] sm:$0xff]   ;;  %v12424_v6 = vld [vmem:[#allocation9 + $0x78] sm:$0xff]  }
 0x57a   :  { %9254 = vmatpush1.bf16.msra.mxu0 %v12354_v46  ;;  %v12425_v46 = vld [vmem:[#allocation9 + $0xf8] sm:$0xff]  }
 0x57b   :  { %9582 = vmatpush1.bf16.msra.mxu1 %v12357_v47  ;;  %9255 = vmatprep.subr.bf16.mxu0 %v12362_v15  ;;  %v12426_v47 = vld [vmem:[#allocation9 + $0x38] sm:$0xff]  }
 0x57c   :  { %9583 = vmatprep.subr.bf16.mxu1 %v12365_v48  ;;  %v12427_v15 = vld [vmem:[#allocation9 + $0xb8] sm:$0xff]   ;;  %v12637_v48 = vmov 0.0  }
 0x57e   :  { %9256 = vmatpush1.bf16.msra.mxu0 %v12360_v41  ;;  %v6366_v41 = vld [vmem:[#allocation7] sm:$0xf] }
 0x57f   :  { %9584 = vmatpush1.bf16.msra.mxu1 %v12363_v50  ;;  %9257 = vmatprep.subr.bf16.mxu0 %v12368_v51  ;;  %v6371_v50 = vrot.slane %v6366_v41, %v12910_v2  ;;  %v6379_v51 = vrot.slane %v6366_v41, %v12922_v13 }
 0x580   :  { %9585 = vmatprep.subr.bf16.mxu1 %v12371_v34  ;;  %v6375_v34 = vrot.slane %v6366_v41, %v12892_v17  ;;  %v12428_v17 = vld [vmem:[#allocation12] sm:$0xff]  }
 0x582   :  { %9258 = vmatpush1.bf16.msra.mxu0 %v12366_v7  ;;  %v6383_v7 = vrot.slane %v6366_v41, %v12913_v49 }
 0x583   :  { %9586 = vmatpush1.bf16.msra.mxu1 %v12369_v52  ;;  %9259 = vmatprep.subr.bf16.mxu0 %v12374_v38 }
 0x584   :  { %9587 = vmatprep.subr.bf16.mxu1 %v12377_v42 }
 0x586   :  { %9260 = vmatpush1.bf16.msra.mxu0 %v12372_v53 }
 0x587   :  { %9588 = vmatpush1.bf16.msra.mxu1 %v12375_v57  ;;  %9261 = vmatprep.subr.bf16.mxu0 %v12380_v54 }
 0x588   :  { %9589 = vmatprep.subr.bf16.mxu1 %v12383_v55 }
 0x58a   :  { %9262 = vmatpush1.bf16.msra.mxu0 %v12378_v56 }
 0x58b   :  { %9590 = vmatpush1.bf16.msra.mxu1 %v12381_v37  ;;  %9263 = vmatprep.subr.bf16.mxu0 %v12386_v58 }
 0x58c   :  { %9591 = vmatprep.subr.bf16.mxu1 %v12389_v59 }
 0x58e   :  { %9264 = vmatpush1.bf16.msra.mxu0 %v12384_v20 }
 0x58f   :  { %9592 = vmatpush1.bf16.msra.mxu1 %v12387_v1  ;;  %9265 = vmatprep.subr.bf16.mxu0 %v12392_v10 }
 0x590   :  { %9593 = vmatprep.subr.bf16.mxu1 %v12395_v62  ;;  %v12429_v62 = vld [vmem:[#allocation12 + $0x8] sm:$0xff]  }
 0x592   :  { %9266 = vmatpush1.bf16.msra.mxu0 %v12390_v63  ;;  %v12430_v63 = vld [vmem:[#allocation12 + $0x10] sm:$0xff]  }
 0x593   :  { %9594 = vmatpush1.bf16.msra.mxu1 %v12393_v14  ;;  %11400 = vmatprep.subr.bf16.mxu0 %v12396_v4  ;;  %v12432_v14 = vld [vmem:[#allocation12 + $0x20] sm:$0xff]   ;;  %v12433_v4 = vld [vmem:[#allocation12 + $0x28] sm:$0xff]  }
 0x594   :  { %11422 = vmatprep.subr.bf16.mxu1 %v12397_v9  ;;  %v12434_v9 = vld [vmem:[#allocation12 + $0x30] sm:$0xff]  }
 0x595   :  { %9268 = vmatmul.mubr.bf16.vlgmr.msra.gmra.mrb[16].mxu0 %v5852_v11 }
 0x596   :  { %9596 = vmatmul.mubr.bf16.vlgmr.msra.gmra.mrb[16].mxu1 %v5852_v11  ;;  %11401 = vmatpush3.bf16.msra.mxu0 %v12398_v19  ;;  %v12435_v19 = vld [vmem:[#allocation12 + $0x38] sm:$0xff]  }
 0x597   :  { %11423 = vmatpush3.bf16.msra.mxu1 %v12399_v40  ;;  %11402 = vmatprep.subr.bf16.mxu0 %v12400_v61  ;;  %v11358_v61 = vld [vmem:[#allocation10] ss:$0 sm:$0xff] }
 0x598   :  { %11424 = vmatprep.subr.bf16.mxu1 %v12401_v0 }
 0x59a   :  { %11403 = vmatpush3.bf16.msra.mxu0 %v12402_v12 }
 0x59b   :  { %11425 = vmatpush3.bf16.msra.mxu1 %v12403_v18  ;;  %11404 = vmatprep.subr.bf16.mxu0 %v12404_v21 }
 0x59c   :  { %11426 = vmatprep.subr.bf16.mxu1 %v12405_v24 }
 0x59e   :  { %11405 = vmatpush3.bf16.msra.mxu0 %v12406_v8 }
 0x59f   :  { %11427 = vmatpush3.bf16.msra.mxu1 %v12407_v26  ;;  %11406 = vmatprep.subr.bf16.mxu0 %v12408_v27 }
 0x5a0   :  { %11428 = vmatprep.subr.bf16.mxu1 %v12409_v28 }
 0x5a2   :  { %11407 = vmatpush3.bf16.msra.mxu0 %v12410_v29 }
 0x5a3   :  { %11429 = vmatpush3.bf16.msra.mxu1 %v12411_v23  ;;  %11408 = vmatprep.subr.bf16.mxu0 %v12412_v30 }
 0x5a4   :  { %11430 = vmatprep.subr.bf16.mxu1 %v12413_v31  ;;  %v11391_v31 = vld [vmem:[#allocation13] ss:$0 sm:$0xff] }
 0x5a6   :  { %11409 = vmatpush3.bf16.msra.mxu0 %v12414_v32 }
 0x5a7   :  { %11431 = vmatpush3.bf16.msra.mxu1 %v12415_v33  ;;  %11410 = vmatprep.subr.bf16.mxu0 %v12416_v35 }
 0x5a8   :  { %11432 = vmatprep.subr.bf16.mxu1 %v12417_v36 }
 0x5aa   :  { %11411 = vmatpush3.bf16.msra.mxu0 %v12418_v39 }
 0x5ab   :  { %11433 = vmatpush3.bf16.msra.mxu1 %v12419_v25  ;;  %11412 = vmatprep.subr.bf16.mxu0 %v12420_v43 }
 0x5ac   :  { %11434 = vmatprep.subr.bf16.mxu1 %v12421_v44 }
 0x5ae   :  { %11413 = vmatpush3.bf16.msra.mxu0 %v12422_v5 }
 0x5af   :  { %11435 = vmatpush3.bf16.msra.mxu1 %v12423_v45  ;;  %11414 = vmatprep.subr.bf16.mxu0 %v12424_v6 }
 0x5b0   :  { %11436 = vmatprep.subr.bf16.mxu1 %v12425_v46 }
 0x5b2   :  { %11415 = vmatpush3.bf16.msra.mxu0 %v12426_v47 }
 0x5b3   :  { %11437 = vmatpush3.bf16.msra.mxu1 %v12427_v15  ;;  %11453 = vmatprep.subr.bf16.mxu0 %v12637_v48 }
 0x668   :  { %v9269_v52 = vpop.f32.mrb[16].mxu0 }
 0x669   :  { %v11489_v38 = vadd.f32 %v9269_v52, %v6371_v50  ;;  %v9597_v42 = vpop.f32.mrb[16].mxu1  ;;  %v9271_v53 = vpop.f32.mrb[17].mxu0 }
 0x66a   :  { %v11491_v57 = vadd.f32 %v9597_v42, %v6379_v51  ;;  %v11490_v54 = vadd.f32 %v9271_v53, %v6375_v34  ;;  %v9599_v55 = vpop.f32.mrb[17].mxu1  ;;  %v9273_v56 = vpop.f32.mrb[18].mxu0 }
 0x66b   :  { %v9604_v16 = vmax.f32 %v11489_v38, 0.0  ;;  %v11492_v22 = vadd.f32 %v9599_v55, %v6383_v7  ;;  %v9601_v37 = vpop.f32.mrb[18].mxu1  ;;  %v9274_v58 = vpop.f32.mrb[19].mxu0 }
 0x66c   :  { %v9606_v59 = vmax.f32 %v11491_v57, 0.0  ;;  %v9605_v2 = vmax.f32 %v11490_v54, 0.0  ;;  %v9602_v20 = vpop.f32.mrb[19].mxu1 }
 0x66d   :  { %v9607_v13 = vmax.f32 %v11492_v22, 0.0  ;;  %v9608_v1 = vpack.c.bf16 %v9604_v16, %v9604_v16 }
 0x66e   :  { %v9609_v60 = vpack.c.bf16 %v9605_v2, %v9605_v2  ;;  %v9610_v10 = vpack.c.bf16 %v9606_v59, %v9606_v59 }
 0x66f   :  { %v9611_v49 = vpack.c.bf16 %v9607_v13, %v9607_v13 }
 0x670   :  { %9907 = vmatprep.mubr.bf16.mxu0 %v9609_v60 }
 0x671   :  { %9947 = vmatprep.mubr.bf16.mxu1 %v9611_v49  ;;  %9908 = vmatmul.mubr.bf16.vlgmr.msra.gmra.mrb[20].mxu0 %v9608_v1 }
 0x672   :  { %9948 = vmatmul.mubr.bf16.vlgmr.msra.gmra.mrb[20].mxu1 %v9610_v10  ;;  %11454 = vmatpush3.bf16.msra.mxu0 %v12428_v17 }
 0x673   :  { %11455 = vmatprep.subr.bf16.mxu0 %v12637_v48  ;;  %11469 = vmatprep.mubr.msk.bf16.mxu0 %vm12638_vm0, %v12637_v48 }
 0x676   :  { %11456 = vmatpush3.bf16.msra.mxu0 %v12429_v62 }
 0x677   :  { %11457 = vmatprep.subr.bf16.mxu0 %v12637_v48 }
 0x67a   :  { %11458 = vmatpush3.bf16.msra.mxu0 %v12430_v63 }
 0x67b   :  { %11459 = vmatprep.subr.bf16.mxu0 %v12637_v48 }
 0x67e   :  { %11460 = vmatpush3.bf16.msra.mxu0 %v12431_v3 }
 0x67f   :  { %11461 = vmatprep.subr.bf16.mxu0 %v12637_v48 }
 0x682   :  { %11462 = vmatpush3.bf16.msra.mxu0 %v12432_v14 }
 0x683   :  { %11463 = vmatprep.subr.bf16.mxu0 %v12637_v48 }
 0x686   :  { %11464 = vmatpush3.bf16.msra.mxu0 %v12433_v4 }
 0x687   :  { %11465 = vmatprep.subr.bf16.mxu0 %v12637_v48 }
 0x68a   :  { %11466 = vmatpush3.bf16.msra.mxu0 %v12434_v9 }
 0x68b   :  { %11467 = vmatprep.subr.bf16.mxu0 %v12637_v48 }
 0x68e   :  { %11468 = vmatpush3.bf16.msra.mxu0 %v12435_v19 }
 0x744   :  { %v11416_v11 = vpop.f32.mrb[20].mxu0 }
 0x745   :  { %v11438_v40 = vpop.f32.mrb[20].mxu1  ;;  %v11417_v0 = vpop.f32.mrb[21].mxu0 }
 0x746   :  { %v11418_v12 = vadd.f32 %v11417_v0, %v11416_v11  ;;  %v11439_v18 = vpop.f32.mrb[21].mxu1  ;;  %v11419_v21 = vpop.f32.mrb[22].mxu0 }
 0x747   :  { %v11440_v24 = vadd.f32 %v11439_v18, %v11438_v40  ;;  %v11441_v8 = vpop.f32.mrb[22].mxu1  ;;  %v11420_v26 = vpop.f32.mrb[23].mxu0 }
 0x748   :  { %v9910_v27 = vadd.f32 %v11418_v12, %v11358_v61  ;;  %v11442_v28 = vpop.f32.mrb[23].mxu1 }
 0x74a   :  { %v9950_v29 = vadd.f32 %v11440_v24, %v9910_v27 }
 0x74c   :  { %v9955_v23 = vmax.f32 %v9950_v29, 0.0 }
 0x74e   :  { %v9956_v30 = vpack.c.bf16 %v9955_v23, %v9955_v23 }
 0x750   :  { %11470 = vmatmul.mubr.bf16.vlgmr.msra.gmra.mrb[24].mxu0 %v9956_v30 }
 0x823   :  { %v10062_v32 = vpop.f32.mrb[24].mxu0 }
 0x824   :  { %v10063_v33 = vadd.f32 %v11391_v31, %v10062_v32  ;;  %v11471_v35 = vpop.f32.mrb[25].mxu0 }
 0x825   :  { %v10065_v36 = vpop.f32.mrb[26].mxu0 }
 0x826   :  { %10068 = vst [vmem:[%s12999_s9] sm:$0xff] %v10063_v33  ;;  %v11472_v39 = vpop.f32.mrb[27].mxu0 }
 0x827   :  { %10073 = vsyncpa [#allocation3], 1 }
 0x828   :  { %10074 = vsyncpa [#allocation5], 1 }
 0x829   :  { %10075 = vsyncpa [#allocation8], 1 }
 0x82a   :  { %10076 = vsyncpa [#allocation11], 1 }
 0x82b   :  { %10077 = vsyncpa [#allocation14], 1 }

</bundles_post_ra>
